<compile_context>
chip_gen: v7x
topology: tpu7x:2x2x1
jax: 0.10.0
libtpu: 0.0.40
codegen_flags: <defaults>
</compile_context>

<pallas_src>
import math
from functools import partial

import jax
import jax.numpy as jnp
from jax.experimental import pallas as pl
from jax.experimental.pallas import tpu as pltpu


# ----------------------------- fused kernel --------------------------------

def fused_encoder_kernel(patches_ref, conv_w_ref, bias_pe_ref,
                         wqkv_ref, bqkv_ref, wo_ref, bo_ref,
                         ln1_g_ref, ln1_b_ref,
                         w1_ref, b1_ref, w2_ref, b2_ref,
                         ln2_g_ref, ln2_b_ref,
                         proj_ref,
                         out_ref,
                         act_ref, attn_ref,
                         *, n_heads, s_real):
    l = pl.program_id(1)
    n_layers = pl.num_programs(1)

    bt, s_pad, _ = patches_ref.shape
    d = conv_w_ref.shape[1]
    dh = d // n_heads
    m = bt * s_pad
    scale = 1.0 / math.sqrt(dh)

    # ---- l == 0: fused patch-embed + cls token + positional encoding -------
    # patches row 0 is a zero "cls slot", pad rows are zero; bias_pe already
    # holds (cls + pe[0]) in row 0, (conv_b + pe[i]) in patch rows, 0 in pads.
    @pl.when(l == 0)
    def _():
        for b in range(bt):                                      # Bt is small
            tok = jnp.dot(patches_ref[b], conv_w_ref[...],
                          preferred_element_type=jnp.float32)    # (s_pad, d)
            act_ref[b * s_pad:(b + 1) * s_pad, :] = tok + bias_pe_ref[...]

    x = act_ref[...]                                             # (m, d) f32
    x_bf = x.astype(jnp.bfloat16)

    # ---- fused full-width QKV projection: one (m, d) x (d, 3d) matmul ------
    qkv = jnp.dot(x_bf, wqkv_ref[0],
                  preferred_element_type=jnp.float32) + bqkv_ref[0]
    q_all = (qkv[:, 0:d] * scale).astype(jnp.bfloat16)           # scale in q
    k_all = qkv[:, d:2 * d].astype(jnp.bfloat16)
    v_all = qkv[:, 2 * d:3 * d].astype(jnp.bfloat16)

    # key-padding mask, hoisted out of the per-(batch, head) loops
    key_valid = jax.lax.broadcasted_iota(jnp.int32, (s_pad, s_pad), 1) < s_real

    # per-(batch, head) scores / softmax / PV; each head output is stored into
    # a lane-concatenated VMEM scratch so the O-projection is one K=d matmul.
    for b in range(bt):                                          # static, small
        r0 = b * s_pad
        for h in range(n_heads):
            c0 = h * dh                                          # 32-aligned
            qh = q_all[r0:r0 + s_pad, c0:c0 + dh]
            kh = k_all[r0:r0 + s_pad, c0:c0 + dh]
            vh = v_all[r0:r0 + s_pad, c0:c0 + dh]
            s = jax.lax.dot_general(qh, kh, (((1,), (1,)), ((), ())),
                                    preferred_element_type=jnp.float32)
            s = jnp.where(key_valid, s, -1e30)
            s = s - jnp.max(s, axis=-1, keepdims=True)
            p = jnp.exp(s)
            p = p * pl.reciprocal(jnp.sum(p, axis=-1, keepdims=True),
                                  approx=True)
            o = jnp.dot(p.astype(jnp.bfloat16), vh,
                        preferred_element_type=jnp.float32)      # (s_pad, dh)
            attn_ref[r0:r0 + s_pad, c0:c0 + dh] = o.astype(attn_ref.dtype)

    # ---- output projection: single full-width (m, d) x (d, d) matmul -------
    attn = jnp.dot(attn_ref[...], wo_ref[0],
                   preferred_element_type=jnp.float32) + bo_ref[0]

    # ---- residual + LayerNorm 1 (f32) ---------------------------------------
    h1 = x + attn
    mu = jnp.mean(h1, axis=-1, keepdims=True)
    var = jnp.mean((h1 - mu) ** 2, axis=-1, keepdims=True)
    h1 = (h1 - mu) * jax.lax.rsqrt(var + 1e-5) * ln1_g_ref[0] + ln1_b_ref[0]

    # ---- MLP: d -> 4d -> d, GELU; bf16 matmuls / f32 accumulation ----------
    f = jnp.dot(h1.astype(jnp.bfloat16), w1_ref[0],
                preferred_element_type=jnp.float32) + b1_ref[0]
    f = jax.nn.gelu(f)
    f = jnp.dot(f.astype(jnp.bfloat16), w2_ref[0],
                preferred_element_type=jnp.float32) + b2_ref[0]

    # ---- residual + LayerNorm 2 (f32) ---------------------------------------
    h2 = h1 + f
    mu2 = jnp.mean(h2, axis=-1, keepdims=True)
    var2 = jnp.mean((h2 - mu2) ** 2, axis=-1, keepdims=True)
    h2 = (h2 - mu2) * jax.lax.rsqrt(var2 + 1e-5) * ln2_g_ref[0] + ln2_b_ref[0]

    act_ref[...] = h2                                            # stays in VMEM

    # ---- l == L-1: fused CLS-row projection + L2 normalization -------------
    @pl.when(l == n_layers - 1)
    def _():
        for b in range(bt):
            cls = h2[b * s_pad:b * s_pad + 1, :]                 # (1, d)
            y = jnp.dot(cls.astype(jnp.bfloat16), proj_ref[...],
                        preferred_element_type=jnp.float32)      # (1, e)
            inv = jax.lax.rsqrt(jnp.sum(y * y, axis=-1, keepdims=True) + 1e-12)
            out_ref[b:b + 1, :] = (y * inv).astype(out_ref.dtype)


# ------------------------------ wrappers ------------------------------------

def _const_spec(shape):
    nd = len(shape)
    return pl.BlockSpec(shape, lambda bi, l, _nd=nd: (0,) * _nd)


def _layer_spec(shape):
    nd = len(shape)
    return pl.BlockSpec((1,) + tuple(shape[1:]),
                        lambda bi, l, _nd=nd: (l,) + (0,) * (_nd - 1))


_LAYER_PARAM_ORDER = ('wqkv', 'bqkv', 'wo', 'bo', 'ln1_g', 'ln1_b',
                      'w1', 'b1', 'w2', 'b2', 'ln2_g', 'ln2_b')


def extract_patches(x, ph, pw):
    # layout: x is NCHW (B, C, H, W) — identical to the PyTorch Conv2d input.
    B, C, H, W = x.shape
    HP, WP = H // ph, W // pw
    x = x.reshape(B, C, HP, ph, WP, pw)
    x = x.transpose(0, 2, 4, 1, 3, 5)                 # (B, HP, WP, C, ph, pw)
    return x.reshape(B, HP * WP, C * ph * pw)


def image_encoder_forward(x, params, n_heads, patch_size, block_b=None):
    ph, pw = patch_size
    B = x.shape[0]
    patches = extract_patches(x, ph, pw)               # (B, Np, Cp) f32
    Np, Cp = patches.shape[1], patches.shape[2]
    D = params['conv_w'].shape[1]
    E = params['projection'].shape[1]
    L = params['layers']['wqkv'].shape[0]
    s_real = Np + 1                                     # cls + patches
    s_pad = ((s_real + 7) // 8) * 8                     # 8-aligned sequence

    # pad patches: row 0 reserved for the cls token, trailing rows zero (bf16)
    patches_padded = jnp.zeros((B, s_pad, Cp), jnp.bfloat16)
    patches_padded = patches_padded.at[:, 1:1 + Np, :].set(
        patches.astype(jnp.bfloat16))

    # fused per-row bias: row0 = cls + pe[0]; rows 1..Np = conv_b + pe[i]; pads = 0
    pe = params['pos_enc']
    bias_pe = jnp.zeros((s_pad, D), jnp.float32)
    bias_pe = bias_pe.at[0:1].set(params['cls_token'].reshape(1, D) + pe[0:1])
    bias_pe = bias_pe.at[1:1 + Np].set(params['conv_b'] + pe[1:1 + Np])

    bt = B if block_b is None else block_b
    assert B % bt == 0

    args = [patches_padded, params['conv_w'], bias_pe]
    in_specs = [pl.BlockSpec((bt, s_pad, Cp), lambda bi, l: (bi, 0, 0)),
                _const_spec(params['conv_w'].shape),
                _const_spec(bias_pe.shape)]
    for name in _LAYER_PARAM_ORDER:
        w = params['layers'][name]
        args.append(w)
        in_specs.append(_layer_spec(w.shape))
    args.append(params['projection'])
    in_specs.append(_const_spec(params['projection'].shape))

    return pl.pallas_call(
        partial(fused_encoder_kernel, n_heads=n_heads, s_real=s_real),
        out_shape=jax.ShapeDtypeStruct((B, E), jnp.float32),
        grid=(B // bt, L),
        in_specs=in_specs,
        out_specs=pl.BlockSpec((bt, E), lambda bi, l: (bi, 0)),
        scratch_shapes=[pltpu.VMEM((bt * s_pad, D), jnp.float32),    # activation
                        pltpu.VMEM((bt * s_pad, D), jnp.bfloat16)],  # head outs
        compiler_params=pltpu.CompilerParams(
            dimension_semantics=("parallel", "arbitrary")),
    )(*args)


# ------------------------------ params --------------------------------------

def sinusoidal_pe(max_len, d):
    pos = jnp.arange(max_len, dtype=jnp.float32)[:, None]
    div = jnp.exp(jnp.arange(0, d, 2, dtype=jnp.float32)
                  * (-math.log(10000.0) / d))
    pe = jnp.zeros((max_len, d), dtype=jnp.float32)
    pe = pe.at[:, 0::2].set(jnp.sin(pos * div))
    pe = pe.at[:, 1::2].set(jnp.cos(pos * div))
    return pe


def init_params(key, hidden_dim, image_size, patch_size, n_channels,
                n_layers, n_heads, embedd_dim):
    ph, pw = patch_size
    num_patches = (image_size[0] // ph) * (image_size[1] // pw)
    max_seq = num_patches + 1
    cp = n_channels * ph * pw
    ffn = 4 * hidden_dim
    L, D = n_layers, hidden_dim

    keys = iter(jax.random.split(key, 16))
    bf16 = jnp.bfloat16

    def nrm(shape, dtype=jnp.float32, scale=0.02):
        w = scale * jax.random.normal(next(keys), shape, dtype=jnp.float32)
        return w.astype(dtype)

    params = {
        'conv_w': nrm((cp, D), bf16),
        'conv_b': nrm((1, D)),
        'cls_token': nrm((1, 1, D), scale=1.0),
        'projection': nrm((D, embedd_dim), bf16, scale=1.0),
        'pos_enc': sinusoidal_pe(max_seq, D),
        'layers': {
            # fused QKV: lanes [0,D)=Q (head-major), [D,2D)=K, [2D,3D)=V
            'wqkv': nrm((L, D, 3 * D), bf16), 'bqkv': nrm((L, 1, 3 * D)),
            'wo':   nrm((L, D, D), bf16),     'bo':   nrm((L, 1, D)),
            'ln1_g': jnp.ones((L, 1, D), jnp.float32),
            'ln1_b': jnp.zeros((L, 1, D), jnp.float32),
            'w1': nrm((L, D, ffn), bf16), 'b1': nrm((L, 1, ffn)),
            'w2': nrm((L, ffn, D), bf16), 'b2': nrm((L, 1, D)),
            'ln2_g': jnp.ones((L, 1, D), jnp.float32),
            'ln2_b': jnp.zeros((L, 1, D), jnp.float32),
        },
    }
    return params


# ------------------------------ main -----------------------------------------

if __name__ == "__main__":
    B = 2
    n_channels = 4
    image_size = (16, 16)
    patch_size = (4, 4)          # 16 patches -> real seq length 17, padded to 24
    hidden_dim = 128             # lane-aligned (multiple of 128)
    n_heads = 4                  # head dim = 32
    n_layers = 2
    embedd_dim = 128             # lane-aligned output (no masked partial stores)

    key = jax.random.PRNGKey(0)
    key_x, key_p = jax.random.split(key)
    x = jax.random.normal(key_x, (B, n_channels, *image_size), dtype=jnp.float32)
    params = init_params(key_p, hidden_dim, image_size, patch_size, n_channels,
                         n_layers, n_heads, embedd_dim)

    fwd = jax.jit(image_encoder_forward, static_argnums=(2, 3, 4))
    out = fwd(x, params, n_heads, patch_size, B)
    out = jax.block_until_ready(out)

    assert out.shape == (B, embedd_dim), out.shape
    assert bool(jnp.all(jnp.isfinite(out)))
    # rows are L2-normalized
    assert bool(jnp.allclose(jnp.linalg.norm(out, axis=-1), 1.0, atol=1e-3))
    print("KERNEL_OK")
</pallas_src>

<mosaic_0001>
module attributes {stable_mosaic.version = 11 : i64} {
  func.func @fused_encoder_kernel(%arg0: i32, %arg1: i32, %arg2: memref<2x24x64xbf16, #tpu.memory_space<vmem>>, %arg3: memref<64x128xbf16, #tpu.memory_space<vmem>>, %arg4: memref<24x128xf32, #tpu.memory_space<vmem>>, %arg5: memref<1x128x384xbf16, #tpu.memory_space<vmem>>, %arg6: memref<1x1x384xf32, #tpu.memory_space<vmem>>, %arg7: memref<1x128x128xbf16, #tpu.memory_space<vmem>>, %arg8: memref<1x1x128xf32, #tpu.memory_space<vmem>>, %arg9: memref<1x1x128xf32, #tpu.memory_space<vmem>>, %arg10: memref<1x1x128xf32, #tpu.memory_space<vmem>>, %arg11: memref<1x128x512xbf16, #tpu.memory_space<vmem>>, %arg12: memref<1x1x512xf32, #tpu.memory_space<vmem>>, %arg13: memref<1x512x128xbf16, #tpu.memory_space<vmem>>, %arg14: memref<1x1x128xf32, #tpu.memory_space<vmem>>, %arg15: memref<1x1x128xf32, #tpu.memory_space<vmem>>, %arg16: memref<1x1x128xf32, #tpu.memory_space<vmem>>, %arg17: memref<128x128xbf16, #tpu.memory_space<vmem>>, %arg18: memref<2x128xf32, #tpu.memory_space<vmem>>, %arg19: memref<48x128xf32, #tpu.memory_space<vmem>>, %arg20: memref<48x128xbf16, #tpu.memory_space<vmem>>) attributes {dimension_semantics = [#tpu.dimension_semantics<parallel>, #tpu.dimension_semantics<arbitrary>], iteration_bounds = array<i64: 1, 2>, scalar_prefetch = 0 : i64, scratch_operands = 2 : i64, tpu.core_type = #tpu.core_type<tc>, window_params = [{transform_indices = @transform_0, window_bounds = array<i64: 2, 24, 64>}, {pipeline_mode = #tpu.pipeline_mode<synchronous>, transform_indices = @transform_1, window_bounds = array<i64: 64, 128>}, {pipeline_mode = #tpu.pipeline_mode<synchronous>, transform_indices = @transform_2, window_bounds = array<i64: 24, 128>}, {transform_indices = @transform_3, window_bounds = array<i64: 1, 128, 384>}, {transform_indices = @transform_4, window_bounds = array<i64: 1, 1, 384>}, {transform_indices = @transform_5, window_bounds = array<i64: 1, 128, 128>}, {transform_indices = @transform_6, window_bounds = array<i64: 1, 1, 128>}, {transform_indices = @transform_7, window_bounds = array<i64: 1, 1, 128>}, {transform_indices = @transform_8, window_bounds = array<i64: 1, 1, 128>}, {transform_indices = @transform_9, window_bounds = array<i64: 1, 128, 512>}, {transform_indices = @transform_10, window_bounds = array<i64: 1, 1, 512>}, {transform_indices = @transform_11, window_bounds = array<i64: 1, 512, 128>}, {transform_indices = @transform_12, window_bounds = array<i64: 1, 1, 128>}, {transform_indices = @transform_13, window_bounds = array<i64: 1, 1, 128>}, {transform_indices = @transform_14, window_bounds = array<i64: 1, 1, 128>}, {pipeline_mode = #tpu.pipeline_mode<synchronous>, transform_indices = @transform_15, window_bounds = array<i64: 128, 128>}, {transform_indices = @transform_16, window_bounds = array<i64: 2, 128>}]} {
    %c0_i32 = arith.constant 0 : i32
    %0 = arith.cmpi eq, %arg1, %c0_i32 : i32
    %1 = arith.extui %0 : i1 to i32
    %c0_i32_0 = arith.constant 0 : i32
    %2 = arith.cmpi ne, %1, %c0_i32_0 : i32
    scf.if %2 {
      %c0_113 = arith.constant 0 : index
      %c0_114 = arith.constant 0 : index
      %c0_115 = arith.constant 0 : index
      %278 = vector.load %arg2[%c0_113, %c0_114, %c0_115] : memref<2x24x64xbf16, #tpu.memory_space<vmem>>, vector<1x24x64xbf16>
      %279 = vector.shape_cast %278 : vector<1x24x64xbf16> to vector<24x64xbf16>
      %c0_116 = arith.constant 0 : index
      %c0_117 = arith.constant 0 : index
      %280 = vector.load %arg3[%c0_116, %c0_117] : memref<64x128xbf16, #tpu.memory_space<vmem>>, vector<64x128xbf16>
      %cst_118 = arith.constant dense<0.000000e+00> : vector<24x128xf32>
      %281 = tpu.matmul %279, %280, %cst_118 {dimension_numbers = #tpu.dot_dimension_numbers<[1], [0], [0], [1], [0, 0, 1, 1], [], []>} : vector<24x64xbf16>, vector<64x128xbf16>, vector<24x128xf32> -> vector<24x128xf32>
      %c0_119 = arith.constant 0 : index
      %c0_120 = arith.constant 0 : index
      %282 = vector.load %arg4[%c0_119, %c0_120] : memref<24x128xf32, #tpu.memory_space<vmem>>, vector<24x128xf32>
      %283 = arith.addf %281, %282 : vector<24x128xf32>
      %c0_121 = arith.constant 0 : index
      %c0_122 = arith.constant 0 : index
      %284 = vector.load %arg19[%c0_121, %c0_122] : memref<48x128xf32, #tpu.memory_space<vmem>>, vector<24x128xf32>
      tpu.vector_store %arg19[%c0_121, %c0_122], %283 {strides = array<i32>} : memref<48x128xf32, #tpu.memory_space<vmem>>, vector<24x128xf32>,
      %c1 = arith.constant 1 : index
      %c0_123 = arith.constant 0 : index
      %c0_124 = arith.constant 0 : index
      %285 = vector.load %arg2[%c1, %c0_123, %c0_124] : memref<2x24x64xbf16, #tpu.memory_space<vmem>>, vector<1x24x64xbf16>
      %286 = vector.shape_cast %285 : vector<1x24x64xbf16> to vector<24x64xbf16>
      %c0_125 = arith.constant 0 : index
      %c0_126 = arith.constant 0 : index
      %287 = vector.load %arg3[%c0_125, %c0_126] : memref<64x128xbf16, #tpu.memory_space<vmem>>, vector<64x128xbf16>
      %cst_127 = arith.constant dense<0.000000e+00> : vector<24x128xf32>
      %288 = tpu.matmul %286, %287, %cst_127 {dimension_numbers = #tpu.dot_dimension_numbers<[1], [0], [0], [1], [0, 0, 1, 1], [], []>} : vector<24x64xbf16>, vector<64x128xbf16>, vector<24x128xf32> -> vector<24x128xf32>
      %c0_128 = arith.constant 0 : index
      %c0_129 = arith.constant 0 : index
      %289 = vector.load %arg4[%c0_128, %c0_129] : memref<24x128xf32, #tpu.memory_space<vmem>>, vector<24x128xf32>
      %290 = arith.addf %288, %289 : vector<24x128xf32>
      %c24_130 = arith.constant 24 : index
      %c0_131 = arith.constant 0 : index
      %291 = vector.load %arg19[%c24_130, %c0_131] : memref<48x128xf32, #tpu.memory_space<vmem>>, vector<24x128xf32>
      tpu.vector_store %arg19[%c24_130, %c0_131], %290 {strides = array<i32>} : memref<48x128xf32, #tpu.memory_space<vmem>>, vector<24x128xf32>,
    } else {
    }
    %c0 = arith.constant 0 : index
    %c0_1 = arith.constant 0 : index
    %3 = vector.load %arg19[%c0, %c0_1] : memref<48x128xf32, #tpu.memory_space<vmem>>, vector<48x128xf32>
    %4 = arith.truncf %3 : vector<48x128xf32> to vector<48x128xbf16>
    %c0_2 = arith.constant 0 : index
    %c0_3 = arith.constant 0 : index
    %c0_4 = arith.constant 0 : index
    %5 = vector.load %arg5[%c0_2, %c0_3, %c0_4] : memref<1x128x384xbf16, #tpu.memory_space<vmem>>, vector<1x128x384xbf16>
    %6 = vector.shape_cast %5 : vector<1x128x384xbf16> to vector<128x384xbf16>
    %cst = arith.constant dense<0.000000e+00> : vector<48x384xf32>
    %7 = tpu.matmul %4, %6, %cst {dimension_numbers = #tpu.dot_dimension_numbers<[1], [0], [0], [1], [0, 0, 1, 1], [], []>} : vector<48x128xbf16>, vector<128x384xbf16>, vector<48x384xf32> -> vector<48x384xf32>
    %c0_5 = arith.constant 0 : index
    %c0_6 = arith.constant 0 : index
    %c0_7 = arith.constant 0 : index
    %8 = vector.load %arg6[%c0_5, %c0_6, %c0_7] : memref<1x1x384xf32, #tpu.memory_space<vmem>>, vector<1x1x384xf32>
    %9 = vector.shape_cast %8 : vector<1x1x384xf32> to vector<1x384xf32>
    %10 = vector.broadcast %9 : vector<1x384xf32> to vector<48x384xf32>
    %11 = arith.addf %7, %10 : vector<48x384xf32>
    %12 = vector.extract_strided_slice %11 {offsets = [0, 0], sizes = [48, 128], strides = [1, 1]} : vector<48x384xf32> to vector<48x128xf32>
    %cst_8 = arith.constant 0.176776692 : f32
    %13 = vector.broadcast %cst_8 : f32 to vector<48x128xf32>
    %14 = arith.mulf %12, %13 : vector<48x128xf32>
    %15 = arith.truncf %14 : vector<48x128xf32> to vector<48x128xbf16>
    %16 = vector.extract_strided_slice %11 {offsets = [0, 128], sizes = [48, 128], strides = [1, 1]} : vector<48x384xf32> to vector<48x128xf32>
    %17 = arith.truncf %16 : vector<48x128xf32> to vector<48x128xbf16>
    %18 = vector.extract_strided_slice %11 {offsets = [0, 256], sizes = [48, 128], strides = [1, 1]} : vector<48x384xf32> to vector<48x128xf32>
    %19 = arith.truncf %18 : vector<48x128xf32> to vector<48x128xbf16>
    %20 = tpu.iota {dimensions = array<i32: 1>} : vector<24x24xi32>
    %c17_i32 = arith.constant 17 : i32
    %21 = vector.broadcast %c17_i32 : i32 to vector<24x24xi32>
    %22 = arith.cmpi slt, %20, %21 : vector<24x24xi32>
    %23 = vector.extract_strided_slice %15 {offsets = [0, 0], sizes = [24, 32], strides = [1, 1]} : vector<48x128xbf16> to vector<24x32xbf16>
    %24 = vector.extract_strided_slice %17 {offsets = [0, 0], sizes = [24, 32], strides = [1, 1]} : vector<48x128xbf16> to vector<24x32xbf16>
    %25 = vector.extract_strided_slice %19 {offsets = [0, 0], sizes = [24, 32], strides = [1, 1]} : vector<48x128xbf16> to vector<24x32xbf16>
    %cst_9 = arith.constant dense<0.000000e+00> : vector<24x24xf32>
    %26 = tpu.matmul %23, %24, %cst_9 {dimension_numbers = #tpu.dot_dimension_numbers<[1], [1], [0], [0], [0, 0, 1, 0], [], []>} : vector<24x32xbf16>, vector<24x32xbf16>, vector<24x24xf32> -> vector<24x24xf32>
    %cst_10 = arith.constant -1.000000e+30 : f32
    %27 = vector.broadcast %cst_10 : f32 to vector<24x24xf32>
    %28 = arith.select %22, %26, %27 : vector<24x24xi1>, vector<24x24xf32>
    %cst_11 = arith.constant dense<0xFF800000> : vector<24xf32>
    %29 = vector.multi_reduction <maximumf>, %28, %cst_11 [1] : vector<24x24xf32> to vector<24xf32>
    %30 = vector.shape_cast %29 : vector<24xf32> to vector<24x1xf32>
    %31 = vector.broadcast %30 : vector<24x1xf32> to vector<24x24xf32>
    %32 = arith.subf %28, %31 : vector<24x24xf32>
    %33 = math.exp %32 : vector<24x24xf32>
    %cst_12 = arith.constant dense<0.000000e+00> : vector<24xf32>
    %34 = vector.multi_reduction <add>, %33, %cst_12 [1] : vector<24x24xf32> to vector<24xf32>
    %35 = vector.shape_cast %34 : vector<24xf32> to vector<24x1xf32>
    %36 = tpu.reciprocal %35 {approx = true} : vector<24x1xf32> -> vector<24x1xf32>
    %37 = vector.broadcast %36 : vector<24x1xf32> to vector<24x24xf32>
    %38 = arith.mulf %33, %37 : vector<24x24xf32>
    %39 = arith.truncf %38 : vector<24x24xf32> to vector<24x24xbf16>
    %cst_13 = arith.constant dense<0.000000e+00> : vector<24x32xf32>
    %40 = tpu.matmul %39, %25, %cst_13 {dimension_numbers = #tpu.dot_dimension_numbers<[1], [0], [0], [1], [0, 0, 1, 1], [], []>} : vector<24x24xbf16>, vector<24x32xbf16>, vector<24x32xf32> -> vector<24x32xf32>
    %41 = arith.truncf %40 : vector<24x32xf32> to vector<24x32xbf16>
    %c0_14 = arith.constant 0 : index
    %c0_15 = arith.constant 0 : index
    %42 = vector.load %arg20[%c0_14, %c0_15] : memref<48x128xbf16, #tpu.memory_space<vmem>>, vector<24x32xbf16>
    tpu.vector_store %arg20[%c0_14, %c0_15], %41 {strides = array<i32>} : memref<48x128xbf16, #tpu.memory_space<vmem>>, vector<24x32xbf16>,
    %43 = vector.extract_strided_slice %15 {offsets = [0, 32], sizes = [24, 32], strides = [1, 1]} : vector<48x128xbf16> to vector<24x32xbf16>
    %44 = vector.extract_strided_slice %17 {offsets = [0, 32], sizes = [24, 32], strides = [1, 1]} : vector<48x128xbf16> to vector<24x32xbf16>
    %45 = vector.extract_strided_slice %19 {offsets = [0, 32], sizes = [24, 32], strides = [1, 1]} : vector<48x128xbf16> to vector<24x32xbf16>
    %cst_16 = arith.constant dense<0.000000e+00> : vector<24x24xf32>
    %46 = tpu.matmul %43, %44, %cst_16 {dimension_numbers = #tpu.dot_dimension_numbers<[1], [1], [0], [0], [0, 0, 1, 0], [], []>} : vector<24x32xbf16>, vector<24x32xbf16>, vector<24x24xf32> -> vector<24x24xf32>
    %cst_17 = arith.constant -1.000000e+30 : f32
    %47 = vector.broadcast %cst_17 : f32 to vector<24x24xf32>
    %48 = arith.select %22, %46, %47 : vector<24x24xi1>, vector<24x24xf32>
    %cst_18 = arith.constant dense<0xFF800000> : vector<24xf32>
    %49 = vector.multi_reduction <maximumf>, %48, %cst_18 [1] : vector<24x24xf32> to vector<24xf32>
    %50 = vector.shape_cast %49 : vector<24xf32> to vector<24x1xf32>
    %51 = vector.broadcast %50 : vector<24x1xf32> to vector<24x24xf32>
    %52 = arith.subf %48, %51 : vector<24x24xf32>
    %53 = math.exp %52 : vector<24x24xf32>
    %cst_19 = arith.constant dense<0.000000e+00> : vector<24xf32>
    %54 = vector.multi_reduction <add>, %53, %cst_19 [1] : vector<24x24xf32> to vector<24xf32>
    %55 = vector.shape_cast %54 : vector<24xf32> to vector<24x1xf32>
    %56 = tpu.reciprocal %55 {approx = true} : vector<24x1xf32> -> vector<24x1xf32>
    %57 = vector.broadcast %56 : vector<24x1xf32> to vector<24x24xf32>
    %58 = arith.mulf %53, %57 : vector<24x24xf32>
    %59 = arith.truncf %58 : vector<24x24xf32> to vector<24x24xbf16>
    %cst_20 = arith.constant dense<0.000000e+00> : vector<24x32xf32>
    %60 = tpu.matmul %59, %45, %cst_20 {dimension_numbers = #tpu.dot_dimension_numbers<[1], [0], [0], [1], [0, 0, 1, 1], [], []>} : vector<24x24xbf16>, vector<24x32xbf16>, vector<24x32xf32> -> vector<24x32xf32>
    %61 = arith.truncf %60 : vector<24x32xf32> to vector<24x32xbf16>
    %c0_21 = arith.constant 0 : index
    %c32 = arith.constant 32 : index
    %62 = vector.load %arg20[%c0_21, %c32] : memref<48x128xbf16, #tpu.memory_space<vmem>>, vector<24x32xbf16>
    tpu.vector_store %arg20[%c0_21, %c32], %61 {strides = array<i32>} : memref<48x128xbf16, #tpu.memory_space<vmem>>, vector<24x32xbf16>,
    %63 = vector.extract_strided_slice %15 {offsets = [0, 64], sizes = [24, 32], strides = [1, 1]} : vector<48x128xbf16> to vector<24x32xbf16>
    %64 = vector.extract_strided_slice %17 {offsets = [0, 64], sizes = [24, 32], strides = [1, 1]} : vector<48x128xbf16> to vector<24x32xbf16>
    %65 = vector.extract_strided_slice %19 {offsets = [0, 64], sizes = [24, 32], strides = [1, 1]} : vector<48x128xbf16> to vector<24x32xbf16>
    %cst_22 = arith.constant dense<0.000000e+00> : vector<24x24xf32>
    %66 = tpu.matmul %63, %64, %cst_22 {dimension_numbers = #tpu.dot_dimension_numbers<[1], [1], [0], [0], [0, 0, 1, 0], [], []>} : vector<24x32xbf16>, vector<24x32xbf16>, vector<24x24xf32> -> vector<24x24xf32>
    %cst_23 = arith.constant -1.000000e+30 : f32
    %67 = vector.broadcast %cst_23 : f32 to vector<24x24xf32>
    %68 = arith.select %22, %66, %67 : vector<24x24xi1>, vector<24x24xf32>
    %cst_24 = arith.constant dense<0xFF800000> : vector<24xf32>
    %69 = vector.multi_reduction <maximumf>, %68, %cst_24 [1] : vector<24x24xf32> to vector<24xf32>
    %70 = vector.shape_cast %69 : vector<24xf32> to vector<24x1xf32>
    %71 = vector.broadcast %70 : vector<24x1xf32> to vector<24x24xf32>
    %72 = arith.subf %68, %71 : vector<24x24xf32>
    %73 = math.exp %72 : vector<24x24xf32>
    %cst_25 = arith.constant dense<0.000000e+00> : vector<24xf32>
    %74 = vector.multi_reduction <add>, %73, %cst_25 [1] : vector<24x24xf32> to vector<24xf32>
    %75 = vector.shape_cast %74 : vector<24xf32> to vector<24x1xf32>
    %76 = tpu.reciprocal %75 {approx = true} : vector<24x1xf32> -> vector<24x1xf32>
    %77 = vector.broadcast %76 : vector<24x1xf32> to vector<24x24xf32>
    %78 = arith.mulf %73, %77 : vector<24x24xf32>
    %79 = arith.truncf %78 : vector<24x24xf32> to vector<24x24xbf16>
    %cst_26 = arith.constant dense<0.000000e+00> : vector<24x32xf32>
    %80 = tpu.matmul %79, %65, %cst_26 {dimension_numbers = #tpu.dot_dimension_numbers<[1], [0], [0], [1], [0, 0, 1, 1], [], []>} : vector<24x24xbf16>, vector<24x32xbf16>, vector<24x32xf32> -> vector<24x32xf32>
    %81 = arith.truncf %80 : vector<24x32xf32> to vector<24x32xbf16>
    %c0_27 = arith.constant 0 : index
    %c64 = arith.constant 64 : index
    %82 = vector.load %arg20[%c0_27, %c64] : memref<48x128xbf16, #tpu.memory_space<vmem>>, vector<24x32xbf16>
    tpu.vector_store %arg20[%c0_27, %c64], %81 {strides = array<i32>} : memref<48x128xbf16, #tpu.memory_space<vmem>>, vector<24x32xbf16>,
    %83 = vector.extract_strided_slice %15 {offsets = [0, 96], sizes = [24, 32], strides = [1, 1]} : vector<48x128xbf16> to vector<24x32xbf16>
    %84 = vector.extract_strided_slice %17 {offsets = [0, 96], sizes = [24, 32], strides = [1, 1]} : vector<48x128xbf16> to vector<24x32xbf16>
    %85 = vector.extract_strided_slice %19 {offsets = [0, 96], sizes = [24, 32], strides = [1, 1]} : vector<48x128xbf16> to vector<24x32xbf16>
    %cst_28 = arith.constant dense<0.000000e+00> : vector<24x24xf32>
    %86 = tpu.matmul %83, %84, %cst_28 {dimension_numbers = #tpu.dot_dimension_numbers<[1], [1], [0], [0], [0, 0, 1, 0], [], []>} : vector<24x32xbf16>, vector<24x32xbf16>, vector<24x24xf32> -> vector<24x24xf32>
    %cst_29 = arith.constant -1.000000e+30 : f32
    %87 = vector.broadcast %cst_29 : f32 to vector<24x24xf32>
    %88 = arith.select %22, %86, %87 : vector<24x24xi1>, vector<24x24xf32>
    %cst_30 = arith.constant dense<0xFF800000> : vector<24xf32>
    %89 = vector.multi_reduction <maximumf>, %88, %cst_30 [1] : vector<24x24xf32> to vector<24xf32>
    %90 = vector.shape_cast %89 : vector<24xf32> to vector<24x1xf32>
    %91 = vector.broadcast %90 : vector<24x1xf32> to vector<24x24xf32>
    %92 = arith.subf %88, %91 : vector<24x24xf32>
    %93 = math.exp %92 : vector<24x24xf32>
    %cst_31 = arith.constant dense<0.000000e+00> : vector<24xf32>
    %94 = vector.multi_reduction <add>, %93, %cst_31 [1] : vector<24x24xf32> to vector<24xf32>
    %95 = vector.shape_cast %94 : vector<24xf32> to vector<24x1xf32>
    %96 = tpu.reciprocal %95 {approx = true} : vector<24x1xf32> -> vector<24x1xf32>
    %97 = vector.broadcast %96 : vector<24x1xf32> to vector<24x24xf32>
    %98 = arith.mulf %93, %97 : vector<24x24xf32>
    %99 = arith.truncf %98 : vector<24x24xf32> to vector<24x24xbf16>
    %cst_32 = arith.constant dense<0.000000e+00> : vector<24x32xf32>
    %100 = tpu.matmul %99, %85, %cst_32 {dimension_numbers = #tpu.dot_dimension_numbers<[1], [0], [0], [1], [0, 0, 1, 1], [], []>} : vector<24x24xbf16>, vector<24x32xbf16>, vector<24x32xf32> -> vector<24x32xf32>
    %101 = arith.truncf %100 : vector<24x32xf32> to vector<24x32xbf16>
    %c0_33 = arith.constant 0 : index
    %c96 = arith.constant 96 : index
    %102 = vector.load %arg20[%c0_33, %c96] : memref<48x128xbf16, #tpu.memory_space<vmem>>, vector<24x32xbf16>
    tpu.vector_store %arg20[%c0_33, %c96], %101 {strides = array<i32>} : memref<48x128xbf16, #tpu.memory_space<vmem>>, vector<24x32xbf16>,
    %103 = vector.extract_strided_slice %15 {offsets = [24, 0], sizes = [24, 32], strides = [1, 1]} : vector<48x128xbf16> to vector<24x32xbf16>
    %104 = vector.extract_strided_slice %17 {offsets = [24, 0], sizes = [24, 32], strides = [1, 1]} : vector<48x128xbf16> to vector<24x32xbf16>
    %105 = vector.extract_strided_slice %19 {offsets = [24, 0], sizes = [24, 32], strides = [1, 1]} : vector<48x128xbf16> to vector<24x32xbf16>
    %cst_34 = arith.constant dense<0.000000e+00> : vector<24x24xf32>
    %106 = tpu.matmul %103, %104, %cst_34 {dimension_numbers = #tpu.dot_dimension_numbers<[1], [1], [0], [0], [0, 0, 1, 0], [], []>} : vector<24x32xbf16>, vector<24x32xbf16>, vector<24x24xf32> -> vector<24x24xf32>
    %cst_35 = arith.constant -1.000000e+30 : f32
    %107 = vector.broadcast %cst_35 : f32 to vector<24x24xf32>
    %108 = arith.select %22, %106, %107 : vector<24x24xi1>, vector<24x24xf32>
    %cst_36 = arith.constant dense<0xFF800000> : vector<24xf32>
    %109 = vector.multi_reduction <maximumf>, %108, %cst_36 [1] : vector<24x24xf32> to vector<24xf32>
    %110 = vector.shape_cast %109 : vector<24xf32> to vector<24x1xf32>
    %111 = vector.broadcast %110 : vector<24x1xf32> to vector<24x24xf32>
    %112 = arith.subf %108, %111 : vector<24x24xf32>
    %113 = math.exp %112 : vector<24x24xf32>
    %cst_37 = arith.constant dense<0.000000e+00> : vector<24xf32>
    %114 = vector.multi_reduction <add>, %113, %cst_37 [1] : vector<24x24xf32> to vector<24xf32>
    %115 = vector.shape_cast %114 : vector<24xf32> to vector<24x1xf32>
    %116 = tpu.reciprocal %115 {approx = true} : vector<24x1xf32> -> vector<24x1xf32>
    %117 = vector.broadcast %116 : vector<24x1xf32> to vector<24x24xf32>
    %118 = arith.mulf %113, %117 : vector<24x24xf32>
    %119 = arith.truncf %118 : vector<24x24xf32> to vector<24x24xbf16>
    %cst_38 = arith.constant dense<0.000000e+00> : vector<24x32xf32>
    %120 = tpu.matmul %119, %105, %cst_38 {dimension_numbers = #tpu.dot_dimension_numbers<[1], [0], [0], [1], [0, 0, 1, 1], [], []>} : vector<24x24xbf16>, vector<24x32xbf16>, vector<24x32xf32> -> vector<24x32xf32>
    %121 = arith.truncf %120 : vector<24x32xf32> to vector<24x32xbf16>
    %c24 = arith.constant 24 : index
    %c0_39 = arith.constant 0 : index
    %122 = vector.load %arg20[%c24, %c0_39] : memref<48x128xbf16, #tpu.memory_space<vmem>>, vector<24x32xbf16>
    tpu.vector_store %arg20[%c24, %c0_39], %121 {strides = array<i32>} : memref<48x128xbf16, #tpu.memory_space<vmem>>, vector<24x32xbf16>,
    %123 = vector.extract_strided_slice %15 {offsets = [24, 32], sizes = [24, 32], strides = [1, 1]} : vector<48x128xbf16> to vector<24x32xbf16>
    %124 = vector.extract_strided_slice %17 {offsets = [24, 32], sizes = [24, 32], strides = [1, 1]} : vector<48x128xbf16> to vector<24x32xbf16>
    %125 = vector.extract_strided_slice %19 {offsets = [24, 32], sizes = [24, 32], strides = [1, 1]} : vector<48x128xbf16> to vector<24x32xbf16>
    %cst_40 = arith.constant dense<0.000000e+00> : vector<24x24xf32>
    %126 = tpu.matmul %123, %124, %cst_40 {dimension_numbers = #tpu.dot_dimension_numbers<[1], [1], [0], [0], [0, 0, 1, 0], [], []>} : vector<24x32xbf16>, vector<24x32xbf16>, vector<24x24xf32> -> vector<24x24xf32>
    %cst_41 = arith.constant -1.000000e+30 : f32
    %127 = vector.broadcast %cst_41 : f32 to vector<24x24xf32>
    %128 = arith.select %22, %126, %127 : vector<24x24xi1>, vector<24x24xf32>
    %cst_42 = arith.constant dense<0xFF800000> : vector<24xf32>
    %129 = vector.multi_reduction <maximumf>, %128, %cst_42 [1] : vector<24x24xf32> to vector<24xf32>
    %130 = vector.shape_cast %129 : vector<24xf32> to vector<24x1xf32>
    %131 = vector.broadcast %130 : vector<24x1xf32> to vector<24x24xf32>
    %132 = arith.subf %128, %131 : vector<24x24xf32>
    %133 = math.exp %132 : vector<24x24xf32>
    %cst_43 = arith.constant dense<0.000000e+00> : vector<24xf32>
    %134 = vector.multi_reduction <add>, %133, %cst_43 [1] : vector<24x24xf32> to vector<24xf32>
    %135 = vector.shape_cast %134 : vector<24xf32> to vector<24x1xf32>
    %136 = tpu.reciprocal %135 {approx = true} : vector<24x1xf32> -> vector<24x1xf32>
    %137 = vector.broadcast %136 : vector<24x1xf32> to vector<24x24xf32>
    %138 = arith.mulf %133, %137 : vector<24x24xf32>
    %139 = arith.truncf %138 : vector<24x24xf32> to vector<24x24xbf16>
    %cst_44 = arith.constant dense<0.000000e+00> : vector<24x32xf32>
    %140 = tpu.matmul %139, %125, %cst_44 {dimension_numbers = #tpu.dot_dimension_numbers<[1], [0], [0], [1], [0, 0, 1, 1], [], []>} : vector<24x24xbf16>, vector<24x32xbf16>, vector<24x32xf32> -> vector<24x32xf32>
    %141 = arith.truncf %140 : vector<24x32xf32> to vector<24x32xbf16>
    %c24_45 = arith.constant 24 : index
    %c32_46 = arith.constant 32 : index
    %142 = vector.load %arg20[%c24_45, %c32_46] : memref<48x128xbf16, #tpu.memory_space<vmem>>, vector<24x32xbf16>
    tpu.vector_store %arg20[%c24_45, %c32_46], %141 {strides = array<i32>} : memref<48x128xbf16, #tpu.memory_space<vmem>>, vector<24x32xbf16>,
    %143 = vector.extract_strided_slice %15 {offsets = [24, 64], sizes = [24, 32], strides = [1, 1]} : vector<48x128xbf16> to vector<24x32xbf16>
    %144 = vector.extract_strided_slice %17 {offsets = [24, 64], sizes = [24, 32], strides = [1, 1]} : vector<48x128xbf16> to vector<24x32xbf16>
    %145 = vector.extract_strided_slice %19 {offsets = [24, 64], sizes = [24, 32], strides = [1, 1]} : vector<48x128xbf16> to vector<24x32xbf16>
    %cst_47 = arith.constant dense<0.000000e+00> : vector<24x24xf32>
    %146 = tpu.matmul %143, %144, %cst_47 {dimension_numbers = #tpu.dot_dimension_numbers<[1], [1], [0], [0], [0, 0, 1, 0], [], []>} : vector<24x32xbf16>, vector<24x32xbf16>, vector<24x24xf32> -> vector<24x24xf32>
    %cst_48 = arith.constant -1.000000e+30 : f32
    %147 = vector.broadcast %cst_48 : f32 to vector<24x24xf32>
    %148 = arith.select %22, %146, %147 : vector<24x24xi1>, vector<24x24xf32>
    %cst_49 = arith.constant dense<0xFF800000> : vector<24xf32>
    %149 = vector.multi_reduction <maximumf>, %148, %cst_49 [1] : vector<24x24xf32> to vector<24xf32>
    %150 = vector.shape_cast %149 : vector<24xf32> to vector<24x1xf32>
    %151 = vector.broadcast %150 : vector<24x1xf32> to vector<24x24xf32>
    %152 = arith.subf %148, %151 : vector<24x24xf32>
    %153 = math.exp %152 : vector<24x24xf32>
    %cst_50 = arith.constant dense<0.000000e+00> : vector<24xf32>
    %154 = vector.multi_reduction <add>, %153, %cst_50 [1] : vector<24x24xf32> to vector<24xf32>
    %155 = vector.shape_cast %154 : vector<24xf32> to vector<24x1xf32>
    %156 = tpu.reciprocal %155 {approx = true} : vector<24x1xf32> -> vector<24x1xf32>
    %157 = vector.broadcast %156 : vector<24x1xf32> to vector<24x24xf32>
    %158 = arith.mulf %153, %157 : vector<24x24xf32>
    %159 = arith.truncf %158 : vector<24x24xf32> to vector<24x24xbf16>
    %cst_51 = arith.constant dense<0.000000e+00> : vector<24x32xf32>
    %160 = tpu.matmul %159, %145, %cst_51 {dimension_numbers = #tpu.dot_dimension_numbers<[1], [0], [0], [1], [0, 0, 1, 1], [], []>} : vector<24x24xbf16>, vector<24x32xbf16>, vector<24x32xf32> -> vector<24x32xf32>
    %161 = arith.truncf %160 : vector<24x32xf32> to vector<24x32xbf16>
    %c24_52 = arith.constant 24 : index
    %c64_53 = arith.constant 64 : index
    %162 = vector.load %arg20[%c24_52, %c64_53] : memref<48x128xbf16, #tpu.memory_space<vmem>>, vector<24x32xbf16>
    tpu.vector_store %arg20[%c24_52, %c64_53], %161 {strides = array<i32>} : memref<48x128xbf16, #tpu.memory_space<vmem>>, vector<24x32xbf16>,
    %163 = vector.extract_strided_slice %15 {offsets = [24, 96], sizes = [24, 32], strides = [1, 1]} : vector<48x128xbf16> to vector<24x32xbf16>
    %164 = vector.extract_strided_slice %17 {offsets = [24, 96], sizes = [24, 32], strides = [1, 1]} : vector<48x128xbf16> to vector<24x32xbf16>
    %165 = vector.extract_strided_slice %19 {offsets = [24, 96], sizes = [24, 32], strides = [1, 1]} : vector<48x128xbf16> to vector<24x32xbf16>
    %cst_54 = arith.constant dense<0.000000e+00> : vector<24x24xf32>
    %166 = tpu.matmul %163, %164, %cst_54 {dimension_numbers = #tpu.dot_dimension_numbers<[1], [1], [0], [0], [0, 0, 1, 0], [], []>} : vector<24x32xbf16>, vector<24x32xbf16>, vector<24x24xf32> -> vector<24x24xf32>
    %cst_55 = arith.constant -1.000000e+30 : f32
    %167 = vector.broadcast %cst_55 : f32 to vector<24x24xf32>
    %168 = arith.select %22, %166, %167 : vector<24x24xi1>, vector<24x24xf32>
    %cst_56 = arith.constant dense<0xFF800000> : vector<24xf32>
    %169 = vector.multi_reduction <maximumf>, %168, %cst_56 [1] : vector<24x24xf32> to vector<24xf32>
    %170 = vector.shape_cast %169 : vector<24xf32> to vector<24x1xf32>
    %171 = vector.broadcast %170 : vector<24x1xf32> to vector<24x24xf32>
    %172 = arith.subf %168, %171 : vector<24x24xf32>
    %173 = math.exp %172 : vector<24x24xf32>
    %cst_57 = arith.constant dense<0.000000e+00> : vector<24xf32>
    %174 = vector.multi_reduction <add>, %173, %cst_57 [1] : vector<24x24xf32> to vector<24xf32>
    %175 = vector.shape_cast %174 : vector<24xf32> to vector<24x1xf32>
    %176 = tpu.reciprocal %175 {approx = true} : vector<24x1xf32> -> vector<24x1xf32>
    %177 = vector.broadcast %176 : vector<24x1xf32> to vector<24x24xf32>
    %178 = arith.mulf %173, %177 : vector<24x24xf32>
    %179 = arith.truncf %178 : vector<24x24xf32> to vector<24x24xbf16>
    %cst_58 = arith.constant dense<0.000000e+00> : vector<24x32xf32>
    %180 = tpu.matmul %179, %165, %cst_58 {dimension_numbers = #tpu.dot_dimension_numbers<[1], [0], [0], [1], [0, 0, 1, 1], [], []>} : vector<24x24xbf16>, vector<24x32xbf16>, vector<24x32xf32> -> vector<24x32xf32>
    %181 = arith.truncf %180 : vector<24x32xf32> to vector<24x32xbf16>
    %c24_59 = arith.constant 24 : index
    %c96_60 = arith.constant 96 : index
    %182 = vector.load %arg20[%c24_59, %c96_60] : memref<48x128xbf16, #tpu.memory_space<vmem>>, vector<24x32xbf16>
    tpu.vector_store %arg20[%c24_59, %c96_60], %181 {strides = array<i32>} : memref<48x128xbf16, #tpu.memory_space<vmem>>, vector<24x32xbf16>,
    %c0_61 = arith.constant 0 : index
    %c0_62 = arith.constant 0 : index
    %183 = vector.load %arg20[%c0_61, %c0_62] : memref<48x128xbf16, #tpu.memory_space<vmem>>, vector<48x128xbf16>
    %c0_63 = arith.constant 0 : index
    %c0_64 = arith.constant 0 : index
    %c0_65 = arith.constant 0 : index
    %184 = vector.load %arg7[%c0_63, %c0_64, %c0_65] : memref<1x128x128xbf16, #tpu.memory_space<vmem>>, vector<1x128x128xbf16>
    %185 = vector.shape_cast %184 : vector<1x128x128xbf16> to vector<128x128xbf16>
    %cst_66 = arith.constant dense<0.000000e+00> : vector<48x128xf32>
    %186 = tpu.matmul %183, %185, %cst_66 {dimension_numbers = #tpu.dot_dimension_numbers<[1], [0], [0], [1], [0, 0, 1, 1], [], []>} : vector<48x128xbf16>, vector<128x128xbf16>, vector<48x128xf32> -> vector<48x128xf32>
    %c0_67 = arith.constant 0 : index
    %c0_68 = arith.constant 0 : index
    %c0_69 = arith.constant 0 : index
    %187 = vector.load %arg8[%c0_67, %c0_68, %c0_69] : memref<1x1x128xf32, #tpu.memory_space<vmem>>, vector<1x1x128xf32>
    %188 = vector.shape_cast %187 : vector<1x1x128xf32> to vector<1x128xf32>
    %189 = vector.broadcast %188 : vector<1x128xf32> to vector<48x128xf32>
    %190 = arith.addf %186, %189 : vector<48x128xf32>
    %191 = arith.addf %3, %190 : vector<48x128xf32>
    %cst_70 = arith.constant dense<0.000000e+00> : vector<48xf32>
    %192 = vector.multi_reduction <add>, %191, %cst_70 [1] : vector<48x128xf32> to vector<48xf32>
    %193 = vector.shape_cast %192 : vector<48xf32> to vector<48x1xf32>
    %cst_71 = arith.constant 1.280000e+02 : f32
    %194 = vector.broadcast %cst_71 : f32 to vector<48x1xf32>
    %195 = arith.divf %193, %194 : vector<48x1xf32>
    %196 = vector.broadcast %195 : vector<48x1xf32> to vector<48x128xf32>
    %197 = arith.subf %191, %196 : vector<48x128xf32>
    %198 = arith.mulf %197, %197 : vector<48x128xf32>
    %cst_72 = arith.constant dense<0.000000e+00> : vector<48xf32>
    %199 = vector.multi_reduction <add>, %198, %cst_72 [1] : vector<48x128xf32> to vector<48xf32>
    %200 = vector.shape_cast %199 : vector<48xf32> to vector<48x1xf32>
    %cst_73 = arith.constant 1.280000e+02 : f32
    %201 = vector.broadcast %cst_73 : f32 to vector<48x1xf32>
    %202 = arith.divf %200, %201 : vector<48x1xf32>
    %203 = vector.broadcast %195 : vector<48x1xf32> to vector<48x128xf32>
    %204 = arith.subf %191, %203 : vector<48x128xf32>
    %cst_74 = arith.constant 9.99999974E-6 : f32
    %205 = vector.broadcast %cst_74 : f32 to vector<48x1xf32>
    %206 = arith.addf %202, %205 : vector<48x1xf32>
    %207 = math.rsqrt %206 : vector<48x1xf32>
    %208 = vector.broadcast %207 : vector<48x1xf32> to vector<48x128xf32>
    %209 = arith.mulf %204, %208 : vector<48x128xf32>
    %c0_75 = arith.constant 0 : index
    %c0_76 = arith.constant 0 : index
    %c0_77 = arith.constant 0 : index
    %210 = vector.load %arg9[%c0_75, %c0_76, %c0_77] : memref<1x1x128xf32, #tpu.memory_space<vmem>>, vector<1x1x128xf32>
    %211 = vector.shape_cast %210 : vector<1x1x128xf32> to vector<1x128xf32>
    %212 = vector.broadcast %211 : vector<1x128xf32> to vector<48x128xf32>
    %213 = arith.mulf %209, %212 : vector<48x128xf32>
    %c0_78 = arith.constant 0 : index
    %c0_79 = arith.constant 0 : index
    %c0_80 = arith.constant 0 : index
    %214 = vector.load %arg10[%c0_78, %c0_79, %c0_80] : memref<1x1x128xf32, #tpu.memory_space<vmem>>, vector<1x1x128xf32>
    %215 = vector.shape_cast %214 : vector<1x1x128xf32> to vector<1x128xf32>
    %216 = vector.broadcast %215 : vector<1x128xf32> to vector<48x128xf32>
    %217 = arith.addf %213, %216 : vector<48x128xf32>
    %218 = arith.truncf %217 : vector<48x128xf32> to vector<48x128xbf16>
    %c0_81 = arith.constant 0 : index
    %c0_82 = arith.constant 0 : index
    %c0_83 = arith.constant 0 : index
    %219 = vector.load %arg11[%c0_81, %c0_82, %c0_83] : memref<1x128x512xbf16, #tpu.memory_space<vmem>>, vector<1x128x512xbf16>
    %220 = vector.shape_cast %219 : vector<1x128x512xbf16> to vector<128x512xbf16>
    %cst_84 = arith.constant dense<0.000000e+00> : vector<48x512xf32>
    %221 = tpu.matmul %218, %220, %cst_84 {dimension_numbers = #tpu.dot_dimension_numbers<[1], [0], [0], [1], [0, 0, 1, 1], [], []>} : vector<48x128xbf16>, vector<128x512xbf16>, vector<48x512xf32> -> vector<48x512xf32>
    %c0_85 = arith.constant 0 : index
    %c0_86 = arith.constant 0 : index
    %c0_87 = arith.constant 0 : index
    %222 = vector.load %arg12[%c0_85, %c0_86, %c0_87] : memref<1x1x512xf32, #tpu.memory_space<vmem>>, vector<1x1x512xf32>
    %223 = vector.shape_cast %222 : vector<1x1x512xf32> to vector<1x512xf32>
    %224 = vector.broadcast %223 : vector<1x512xf32> to vector<48x512xf32>
    %225 = arith.addf %221, %224 : vector<48x512xf32>
    %226 = arith.mulf %225, %225 : vector<48x512xf32>
    %227 = arith.mulf %225, %226 : vector<48x512xf32>
    %cst_88 = arith.constant 4.471500e-02 : f32
    %228 = vector.broadcast %cst_88 : f32 to vector<48x512xf32>
    %229 = arith.mulf %228, %227 : vector<48x512xf32>
    %230 = arith.addf %225, %229 : vector<48x512xf32>
    %cst_89 = arith.constant 0.797884583 : f32
    %231 = vector.broadcast %cst_89 : f32 to vector<48x512xf32>
    %232 = arith.mulf %231, %230 : vector<48x512xf32>
    %233 = math.tanh %232 : vector<48x512xf32>
    %cst_90 = arith.constant 1.000000e+00 : f32
    %234 = vector.broadcast %cst_90 : f32 to vector<48x512xf32>
    %235 = arith.addf %234, %233 : vector<48x512xf32>
    %cst_91 = arith.constant 5.000000e-01 : f32
    %236 = vector.broadcast %cst_91 : f32 to vector<48x512xf32>
    %237 = arith.mulf %236, %235 : vector<48x512xf32>
    %238 = arith.mulf %225, %237 : vector<48x512xf32>
    %239 = arith.truncf %238 : vector<48x512xf32> to vector<48x512xbf16>
    %c0_92 = arith.constant 0 : index
    %c0_93 = arith.constant 0 : index
    %c0_94 = arith.constant 0 : index
    %240 = vector.load %arg13[%c0_92, %c0_93, %c0_94] : memref<1x512x128xbf16, #tpu.memory_space<vmem>>, vector<1x512x128xbf16>
    %241 = vector.shape_cast %240 : vector<1x512x128xbf16> to vector<512x128xbf16>
    %cst_95 = arith.constant dense<0.000000e+00> : vector<48x128xf32>
    %242 = tpu.matmul %239, %241, %cst_95 {dimension_numbers = #tpu.dot_dimension_numbers<[1], [0], [0], [1], [0, 0, 1, 1], [], []>} : vector<48x512xbf16>, vector<512x128xbf16>, vector<48x128xf32> -> vector<48x128xf32>
    %c0_96 = arith.constant 0 : index
    %c0_97 = arith.constant 0 : index
    %c0_98 = arith.constant 0 : index
    %243 = vector.load %arg14[%c0_96, %c0_97, %c0_98] : memref<1x1x128xf32, #tpu.memory_space<vmem>>, vector<1x1x128xf32>
    %244 = vector.shape_cast %243 : vector<1x1x128xf32> to vector<1x128xf32>
    %245 = vector.broadcast %244 : vector<1x128xf32> to vector<48x128xf32>
    %246 = arith.addf %242, %245 : vector<48x128xf32>
    %247 = arith.addf %217, %246 : vector<48x128xf32>
    %cst_99 = arith.constant dense<0.000000e+00> : vector<48xf32>
    %248 = vector.multi_reduction <add>, %247, %cst_99 [1] : vector<48x128xf32> to vector<48xf32>
    %249 = vector.shape_cast %248 : vector<48xf32> to vector<48x1xf32>
    %cst_100 = arith.constant 1.280000e+02 : f32
    %250 = vector.broadcast %cst_100 : f32 to vector<48x1xf32>
    %251 = arith.divf %249, %250 : vector<48x1xf32>
    %252 = vector.broadcast %251 : vector<48x1xf32> to vector<48x128xf32>
    %253 = arith.subf %247, %252 : vector<48x128xf32>
    %254 = arith.mulf %253, %253 : vector<48x128xf32>
    %cst_101 = arith.constant dense<0.000000e+00> : vector<48xf32>
    %255 = vector.multi_reduction <add>, %254, %cst_101 [1] : vector<48x128xf32> to vector<48xf32>
    %256 = vector.shape_cast %255 : vector<48xf32> to vector<48x1xf32>
    %cst_102 = arith.constant 1.280000e+02 : f32
    %257 = vector.broadcast %cst_102 : f32 to vector<48x1xf32>
    %258 = arith.divf %256, %257 : vector<48x1xf32>
    %259 = vector.broadcast %251 : vector<48x1xf32> to vector<48x128xf32>
    %260 = arith.subf %247, %259 : vector<48x128xf32>
    %cst_103 = arith.constant 9.99999974E-6 : f32
    %261 = vector.broadcast %cst_103 : f32 to vector<48x1xf32>
    %262 = arith.addf %258, %261 : vector<48x1xf32>
    %263 = math.rsqrt %262 : vector<48x1xf32>
    %264 = vector.broadcast %263 : vector<48x1xf32> to vector<48x128xf32>
    %265 = arith.mulf %260, %264 : vector<48x128xf32>
    %c0_104 = arith.constant 0 : index
    %c0_105 = arith.constant 0 : index
    %c0_106 = arith.constant 0 : index
    %266 = vector.load %arg15[%c0_104, %c0_105, %c0_106] : memref<1x1x128xf32, #tpu.memory_space<vmem>>, vector<1x1x128xf32>
    %267 = vector.shape_cast %266 : vector<1x1x128xf32> to vector<1x128xf32>
    %268 = vector.broadcast %267 : vector<1x128xf32> to vector<48x128xf32>
    %269 = arith.mulf %265, %268 : vector<48x128xf32>
    %c0_107 = arith.constant 0 : index
    %c0_108 = arith.constant 0 : index
    %c0_109 = arith.constant 0 : index
    %270 = vector.load %arg16[%c0_107, %c0_108, %c0_109] : memref<1x1x128xf32, #tpu.memory_space<vmem>>, vector<1x1x128xf32>
    %271 = vector.shape_cast %270 : vector<1x1x128xf32> to vector<1x128xf32>
    %272 = vector.broadcast %271 : vector<1x128xf32> to vector<48x128xf32>
    %273 = arith.addf %269, %272 : vector<48x128xf32>
    %c0_110 = arith.constant 0 : index
    %c0_111 = arith.constant 0 : index
    %274 = vector.load %arg19[%c0_110, %c0_111] : memref<48x128xf32, #tpu.memory_space<vmem>>, vector<48x128xf32>
    tpu.vector_store %arg19[%c0_110, %c0_111], %273 {strides = array<i32>} : memref<48x128xf32, #tpu.memory_space<vmem>>, vector<48x128xf32>,
    %c1_i32 = arith.constant 1 : i32
    %275 = arith.cmpi eq, %arg1, %c1_i32 : i32
    %276 = arith.extui %275 : i1 to i32
    %c0_i32_112 = arith.constant 0 : i32
    %277 = arith.cmpi ne, %276, %c0_i32_112 : i32
    scf.if %277 {
      %278 = vector.extract_strided_slice %273 {offsets = [0, 0], sizes = [1, 128], strides = [1, 1]} : vector<48x128xf32> to vector<1x128xf32>
      %279 = arith.truncf %278 : vector<1x128xf32> to vector<1x128xbf16>
      %c0_113 = arith.constant 0 : index
      %c0_114 = arith.constant 0 : index
      %280 = vector.load %arg17[%c0_113, %c0_114] : memref<128x128xbf16, #tpu.memory_space<vmem>>, vector<128x128xbf16>
      %cst_115 = arith.constant dense<0.000000e+00> : vector<1x128xf32>
      %281 = tpu.matmul %279, %280, %cst_115 {dimension_numbers = #tpu.dot_dimension_numbers<[1], [0], [0], [1], [0, 0, 1, 1], [], []>} : vector<1x128xbf16>, vector<128x128xbf16>, vector<1x128xf32> -> vector<1x128xf32>
      %282 = arith.mulf %281, %281 : vector<1x128xf32>
      %cst_116 = arith.constant dense<0.000000e+00> : vector<1xf32>
      %283 = vector.multi_reduction <add>, %282, %cst_116 [1] : vector<1x128xf32> to vector<1xf32>
      %284 = vector.shape_cast %283 : vector<1xf32> to vector<1x1xf32>
      %cst_117 = arith.constant 9.99999996E-13 : f32
      %285 = vector.broadcast %cst_117 : f32 to vector<1x1xf32>
      %286 = arith.addf %284, %285 : vector<1x1xf32>
      %287 = math.rsqrt %286 : vector<1x1xf32>
      %288 = vector.broadcast %287 : vector<1x1xf32> to vector<1x128xf32>
      %289 = arith.mulf %281, %288 : vector<1x128xf32>
      %c0_118 = arith.constant 0 : index
      %c0_119 = arith.constant 0 : index
      %290 = vector.load %arg18[%c0_118, %c0_119] : memref<2x128xf32, #tpu.memory_space<vmem>>, vector<1x128xf32>
      tpu.vector_store %arg18[%c0_118, %c0_119], %289 {strides = array<i32>} : memref<2x128xf32, #tpu.memory_space<vmem>>, vector<1x128xf32>,
      %291 = vector.extract_strided_slice %273 {offsets = [24, 0], sizes = [1, 128], strides = [1, 1]} : vector<48x128xf32> to vector<1x128xf32>
      %292 = arith.truncf %291 : vector<1x128xf32> to vector<1x128xbf16>
      %c0_120 = arith.constant 0 : index
      %c0_121 = arith.constant 0 : index
      %293 = vector.load %arg17[%c0_120, %c0_121] : memref<128x128xbf16, #tpu.memory_space<vmem>>, vector<128x128xbf16>
      %cst_122 = arith.constant dense<0.000000e+00> : vector<1x128xf32>
      %294 = tpu.matmul %292, %293, %cst_122 {dimension_numbers = #tpu.dot_dimension_numbers<[1], [0], [0], [1], [0, 0, 1, 1], [], []>} : vector<1x128xbf16>, vector<128x128xbf16>, vector<1x128xf32> -> vector<1x128xf32>
      %295 = arith.mulf %294, %294 : vector<1x128xf32>
      %cst_123 = arith.constant dense<0.000000e+00> : vector<1xf32>
      %296 = vector.multi_reduction <add>, %295, %cst_123 [1] : vector<1x128xf32> to vector<1xf32>
      %297 = vector.shape_cast %296 : vector<1xf32> to vector<1x1xf32>
      %cst_124 = arith.constant 9.99999996E-13 : f32
      %298 = vector.broadcast %cst_124 : f32 to vector<1x1xf32>
      %299 = arith.addf %297, %298 : vector<1x1xf32>
      %300 = math.rsqrt %299 : vector<1x1xf32>
      %301 = vector.broadcast %300 : vector<1x1xf32> to vector<1x128xf32>
      %302 = arith.mulf %294, %301 : vector<1x128xf32>
      %c1 = arith.constant 1 : index
      %c0_125 = arith.constant 0 : index
      %303 = vector.load %arg18[%c1, %c0_125] : memref<2x128xf32, #tpu.memory_space<vmem>>, vector<1x128xf32>
      tpu.vector_store %arg18[%c1, %c0_125], %302 {strides = array<i32>} : memref<2x128xf32, #tpu.memory_space<vmem>>, vector<1x128xf32>,
    } else {
    }
    return
  }
  func.func @transform_0(%arg0: i32, %arg1: i32) -> (i32, i32, i32) {
    %c0_i32 = arith.constant 0 : i32
    %c0_i32_0 = arith.constant 0 : i32
    %c0_i32_1 = arith.constant 0 : i32
    return %arg0, %c0_i32, %c0_i32_0 : i32, i32, i32
  }
  func.func @transform_1(%arg0: i32, %arg1: i32) -> (i32, i32) {
    %c0_i32 = arith.constant 0 : i32
    %c0_i32_0 = arith.constant 0 : i32
    %c0_i32_1 = arith.constant 0 : i32
    return %c0_i32, %c0_i32_0 : i32, i32
  }
  func.func @transform_2(%arg0: i32, %arg1: i32) -> (i32, i32) {
    %c0_i32 = arith.constant 0 : i32
    %c0_i32_0 = arith.constant 0 : i32
    %c0_i32_1 = arith.constant 0 : i32
    return %c0_i32, %c0_i32_0 : i32, i32
  }
  func.func @transform_3(%arg0: i32, %arg1: i32) -> (i32, i32, i32) {
    %c0_i32 = arith.constant 0 : i32
    %c0_i32_0 = arith.constant 0 : i32
    %c0_i32_1 = arith.constant 0 : i32
    return %arg1, %c0_i32, %c0_i32_0 : i32, i32, i32
  }
  func.func @transform_4(%arg0: i32, %arg1: i32) -> (i32, i32, i32) {
    %c0_i32 = arith.constant 0 : i32
    %c0_i32_0 = arith.constant 0 : i32
    %c0_i32_1 = arith.constant 0 : i32
    return %arg1, %c0_i32, %c0_i32_0 : i32, i32, i32
  }
  func.func @transform_5(%arg0: i32, %arg1: i32) -> (i32, i32, i32) {
    %c0_i32 = arith.constant 0 : i32
    %c0_i32_0 = arith.constant 0 : i32
    %c0_i32_1 = arith.constant 0 : i32
    return %arg1, %c0_i32, %c0_i32_0 : i32, i32, i32
  }
  func.func @transform_6(%arg0: i32, %arg1: i32) -> (i32, i32, i32) {
    %c0_i32 = arith.constant 0 : i32
    %c0_i32_0 = arith.constant 0 : i32
    %c0_i32_1 = arith.constant 0 : i32
    return %arg1, %c0_i32, %c0_i32_0 : i32, i32, i32
  }
  func.func @transform_7(%arg0: i32, %arg1: i32) -> (i32, i32, i32) {
    %c0_i32 = arith.constant 0 : i32
    %c0_i32_0 = arith.constant 0 : i32
    %c0_i32_1 = arith.constant 0 : i32
    return %arg1, %c0_i32, %c0_i32_0 : i32, i32, i32
  }
  func.func @transform_8(%arg0: i32, %arg1: i32) -> (i32, i32, i32) {
    %c0_i32 = arith.constant 0 : i32
    %c0_i32_0 = arith.constant 0 : i32
    %c0_i32_1 = arith.constant 0 : i32
    return %arg1, %c0_i32, %c0_i32_0 : i32, i32, i32
  }
  func.func @transform_9(%arg0: i32, %arg1: i32) -> (i32, i32, i32) {
    %c0_i32 = arith.constant 0 : i32
    %c0_i32_0 = arith.constant 0 : i32
    %c0_i32_1 = arith.constant 0 : i32
    return %arg1, %c0_i32, %c0_i32_0 : i32, i32, i32
  }
  func.func @transform_10(%arg0: i32, %arg1: i32) -> (i32, i32, i32) {
    %c0_i32 = arith.constant 0 : i32
    %c0_i32_0 = arith.constant 0 : i32
    %c0_i32_1 = arith.constant 0 : i32
    return %arg1, %c0_i32, %c0_i32_0 : i32, i32, i32
  }
  func.func @transform_11(%arg0: i32, %arg1: i32) -> (i32, i32, i32) {
    %c0_i32 = arith.constant 0 : i32
    %c0_i32_0 = arith.constant 0 : i32
    %c0_i32_1 = arith.constant 0 : i32
    return %arg1, %c0_i32, %c0_i32_0 : i32, i32, i32
  }
  func.func @transform_12(%arg0: i32, %arg1: i32) -> (i32, i32, i32) {
    %c0_i32 = arith.constant 0 : i32
    %c0_i32_0 = arith.constant 0 : i32
    %c0_i32_1 = arith.constant 0 : i32
    return %arg1, %c0_i32, %c0_i32_0 : i32, i32, i32
  }
  func.func @transform_13(%arg0: i32, %arg1: i32) -> (i32, i32, i32) {
    %c0_i32 = arith.constant 0 : i32
    %c0_i32_0 = arith.constant 0 : i32
    %c0_i32_1 = arith.constant 0 : i32
    return %arg1, %c0_i32, %c0_i32_0 : i32, i32, i32
  }
  func.func @transform_14(%arg0: i32, %arg1: i32) -> (i32, i32, i32) {
    %c0_i32 = arith.constant 0 : i32
    %c0_i32_0 = arith.constant 0 : i32
    %c0_i32_1 = arith.constant 0 : i32
    return %arg1, %c0_i32, %c0_i32_0 : i32, i32, i32
  }
  func.func @transform_15(%arg0: i32, %arg1: i32) -> (i32, i32) {
    %c0_i32 = arith.constant 0 : i32
    %c0_i32_0 = arith.constant 0 : i32
    %c0_i32_1 = arith.constant 0 : i32
    return %c0_i32, %c0_i32_0 : i32, i32
  }
  func.func @transform_16(%arg0: i32, %arg1: i32) -> (i32, i32) {
    %c0_i32 = arith.constant 0 : i32
    %c0_i32_0 = arith.constant 0 : i32
    return %arg0, %c0_i32 : i32, i32
  }
}

</mosaic_0001>

<bundles_post_ra>
// kernel: image_encoder_forward.1
= control target key start
LH: loop header
LB: loop body
LE: loop exit
PB: predicated region body
PF: predicated region fallthrough
CT: control target
= control target key end

     0   :  { %s7545_s0 = inlined_call_operand.vmem [shape: bf16[2,24,64], index: 0, kind: input, shape index: {}]   ;;  %s7546_s1 = inlined_call_operand.vmem [shape: bf16[64,128], index: 1, kind: input, shape index: {}]   ;;  %s7547_s2 = inlined_call_operand.vmem [shape: f32[24,128], index: 2, kind: input, shape index: {}]   ;;  %s7548_s3 = inlined_call_operand.vmem [shape: bf16[2,128,384], index: 3, kind: input, shape index: {}]   ;;  %s7549_s4 = inlined_call_operand.hbm [shape: f32[2,1,384], index: 4, kind: input, shape index: {}]   ;;  %s7550_s5 = inlined_call_operand.hbm [shape: bf16[2,128,128], index: 5, kind: input, shape index: {}]   ;;  %s7551_s6 = inlined_call_operand.vmem [shape: f32[2,1,128], index: 6, kind: input, shape index: {}]   ;;  %s7552_s7 = inlined_call_operand.hbm [shape: f32[2,1,128], index: 7, kind: input, shape index: {}]   ;;  %s7553_s8 = inlined_call_operand.hbm [shape: f32[2,1,128], index: 8, kind: input, shape index: {}]   ;;  %s7554_s9 = inlined_call_operand.vmem [shape: bf16[2,128,512], index: 9, kind: input, shape index: {}]   ;;  %s7555_s10 = inlined_call_operand.vmem [shape: f32[2,1,512], index: 10, kind: input, shape index: {}]   ;;  %s7556_s11 = inlined_call_operand.vmem [shape: bf16[2,512,128], index: 11, kind: input, shape index: {}]   ;;  %s7557_s12 = inlined_call_operand.hbm [shape: f32[2,1,128], index: 12, kind: input, shape index: {}]   ;;  %s7558_s13 = inlined_call_operand.hbm [shape: f32[2,1,128], index: 13, kind: input, shape index: {}]   ;;  %s7559_s14 = inlined_call_operand.hbm [shape: f32[2,1,128], index: 14, kind: input, shape index: {}]   ;;  %s7560_s15 = inlined_call_operand.hbm [shape: bf16[128,128], index: 15, kind: input, shape index: {}]   ;;  %s7561_s16 = inlined_call_operand.hbm [shape: f32[2,128], index: 16, kind: output, shape index: {}]  }
   0x1   :  { %7580 = sst [smem:[#allocation29_spill]] %s7545_s0 }
   0x2   :  { %7581 = sst [smem:[#allocation30_spill]] %s7546_s1 }
   0x3   :  { %7582 = sst [smem:[#allocation31_spill]] %s7547_s2 }
   0x4   :  { %7583 = sst [smem:[#allocation32_spill]] %s7548_s3 }
   0x5   :  { %7584 = sst [smem:[#allocation33_spill]] %s7549_s4 }
   0x6   :  { %7585 = sst [smem:[#allocation34_spill]] %s7550_s5 }
   0x7   :  { %7586 = sst [smem:[#allocation35_spill]] %s7552_s7 }
   0x8   :  { %7587 = sst [smem:[#allocation36_spill]] %s7553_s8 }
   0x9   :  { %7588 = sst [smem:[#allocation37_spill]] %s7554_s9 }
   0xa   :  { %7589 = sst [smem:[#allocation38_spill]] %s7555_s10 }
   0xb   :  { %7590 = sst [smem:[#allocation39_spill]] %s7556_s11 }
   0xc   :  { %7591 = sst [smem:[#allocation40_spill]] %s7558_s13 }
   0xd   :  { %7592 = sst [smem:[#allocation41_spill]] %s7561_s16 }
   0xe   :  { %21 = vsyncpa [#allocation5], 0 }
   0xf   :  { %23 = vsyncpa [#allocation5 + $0x1], 0 }
  0x10   :  { %24 = vsyncpa [#allocation8], 0 }
  0x11   :  { %26 = vsyncpa [#allocation8 + $0x1], 0 }
  0x12   :  { %27 = vsyncpa [#allocation11], 0 }
  0x13   :  { %29 = vsyncpa [#allocation11 + $0x1], 0 }
  0x14   :  { %30 = vsyncpa [#allocation14], 0 }
  0x15   :  { %32 = vsyncpa [#allocation14 + $0x1], 0 }
  0x16   :  { %33 = vsyncpa [#allocation17], 0 }
  0x17   :  { %34 = vsyncpa [#allocation6], 0  ;;  %s6179_s21 = smov 0   ;;  %s6181_s22 = smov 0  }
  0x18   :  { %s6183_s23 = smov 0   ;;  %s6185_s24 = smov 0  }
  0x19   :  { %s6187_s25 = smov 0   ;;  %s6189_s26 = smov 0  }
  0x1a LB: > { %7593 = sst [smem:[#allocation25_spill]] %s6061_s23  ;;  %s49_s27 = sadd.s32 1, %s6069_s25  ;;  %s6073_s26 = sphi %s6189_s26, %s40_s26   ;;  %s6069_s25 = sphi %s6187_s25, %s7642_s25   ;;  %s6065_s24 = sphi %s6185_s24, %s7641_s24   ;;  %s6061_s23 = sphi %s6183_s23, %s7640_s23   ;;  %s6057_s22 = sphi %s6181_s22, %s7644_s22   ;;  %s6053_s21 = sphi %s6179_s21, %s7643_s21  }
  0x1b   : > { %7594 = sst [smem:[#allocation26_spill]] %s6069_s25  ;;  %s153_s28 = sadd.s32 1, %s6061_s23 }
  0x1c   : > { %p50_p0 = scmp.ge.s32.totalorder %s49_s27, 2  ;;  %p160_p1 = scmp.ne.s32.totalorder %s6061_s23, %s6057_s22 }
  0x1d   : > { %p161_p2 = scmp.eq.s32.totalorder %s6073_s26, 0  ;;  %p5349_p5 = scmp.lt.s32.totalorder %s6073_s26, 2 }
  0x1e   : > { %s7646_s27 = smov (%p50_p0, %s49_s27), 0  ;;  %s6220_s30 = sand.u32 1, %s6061_s23  }
  0x1f   : > { %7595 = sst [smem:[#allocation27_spill]] %s7646_s27  ;;  %p162_p3 = por %p161_p2, %p160_p1 }
  0x20   : > { %s150_s29 = ssub.s32 %s6069_s25, %s7646_s27  ;;  %s6223_s0 = sand.u32 1, %s6073_s26  }
  0x21   : > { %p151_p4 = scmp.eq.s32.totalorder %s150_s29, 0  ;;  %p6228_p6 = pnand %p5349_p5, %p162_p3 }
  0x22   : > { %s4645_s19 = sshll.u32 %s6220_s30, 6  ;;  %s4837_s20 = sshll.u32 %s6069_s25, 10 }
  0x23   : > { %s6226_s17 = scalar_select %p151_p4, %s6061_s23, %s153_s28  }
  0x24   : > { %s7597_s18 = scalar_select %p6228_p6, 1, 0 }
  0x25   : > { %7596 = sst [smem:[#allocation28_spill]] %s6226_s17  ;;  %s7598_s5 = sld [smem:[#allocation34_spill]] }
  0x26   : > { %s557_s27 = scalar_lea.vmem [#allocation7], %s4645_s19  ;;  %s6242_s28 = sshll.u32 %s6069_s25, 4 }
  0x27   : > { %s564_s1 = sshll.u32 %s557_s27, 4  ;;  %p6249_p8 = pneg %p6228_p6  ;;  %s6239_s1 = int_to_ptr.vmem [resolvable:$true] %s564_s1 }
  0x29   : > { %s7599_s11 = scalar_select %p6249_p8, 1, 0 }
  0x2b   : > { %s6237_s29 = scalar_lea.hbm %s7598_s5, %s4837_s20  ;;  %s5744_s27 = scalar_lea.hbm %s7598_s5, 2048 }
  0x2c   : > { %s5739_s23 = scalar_lea.hbm %s6237_s29, 1024  ;;  %p5745_p11 = scmp.lt.u32.totalorder %s6237_s29, %s7598_s5 }
  0x2d   : > { %p5740_p7 = scmp.ne.s32.totalorder %s6237_s29, %s5739_s23  ;;  %p5746_p12 = scmp.lt.u32.totalorder %s5744_s27, %s5739_s23 }
  0x2e   : > { %p5748_p0 = scmp.lt.u32.totalorder %s5739_s23, %s6237_s29 }
  0x2f   : > { %p5742_p9 = pnand %p6249_p8, %p5740_p7  ;;  %p5747_p13 = por %p5746_p12, %p5745_p11 }
  0x31   : > { %p5743_p10 = pneg %p5742_p9  ;;  %p5749_p1 = por %p5748_p0, %p5747_p13 }
  0x33   : > { %p5750_p2 = pnand %p5749_p1, %p5743_p10 }
  0x35   : > { %5753 = shalt.err (!%p5750_p2)
}
  0x36   : > { %s5754_s17 = scalar_lea.vmem %s6239_s1, 1024  ;;  %s6075_s2 = smov [#allocation7]  }
  0x37   : > { %p5755_p3 = scmp.ne.s32.totalorder %s6239_s1, %s5754_s17  ;;  %s5759_s16 = sshll.u32 %s6075_s2, 4  ;;  %s5760_s16 = int_to_ptr.vmem [resolvable:$false] %s5759_s16 }
  0x38   : > { %s5761_s19 = scalar_lea.vmem %s5760_s16, 2048  ;;  %p5762_p7 = scmp.lt.s32.totalorder %s6239_s1, %s5760_s16 }
  0x39   : > { %p5757_p4 = pnand %p5755_p3, %p6249_p8  ;;  %p5763_p9 = scmp.lt.s32.totalorder %s5761_s19, %s5754_s17 }
  0x3b   : > { %p5758_p5 = pneg %p5757_p4  ;;  %p5764_p11 = por %p5763_p9, %p5762_p7 }
  0x3d   : > { %p5765_p12 = pnand %p5764_p11, %p5758_p5 }
  0x3f   : > { %5768 = shalt.err (!%p5765_p12)
}
  0x40   : > { %s7568_s23 = smov 64   ;;  %s7573_s27 = smov 4  }
  0x41   : > { %s7600_s20 = scalar_lea.sflag [#allocation8], %s6223_s0  ;;  %s7601_s8 = sld [smem:[#allocation36_spill]] }
  0x42   : > { %5332 = dma.hbm_to_vmem [thread:$0]  (!%p6228_p6), %s6237_s29, 1024, %s6239_s1, %s7600_s20, %s7568_s23, %s7568_s23, %s7573_s27  }
  0x43   : > { %s600_s19 = scalar_lea.vmem [#allocation10], %s6220_s30  ;;  %s7571_s10 = scalar_lea.sflag [#allocation11], %s6223_s0 }
  0x44   : > { %s607_s5 = sshll.u32 %s600_s19, 4  ;;  %s608_s5 = int_to_ptr.vmem [resolvable:$true] %s607_s5 }
  0x47   : > { %s6281_s16 = scalar_lea.hbm %s7601_s8, %s6242_s28  ;;  %s5774_s29 = scalar_lea.hbm %s7601_s8, 32 }
  0x48   : > { %s5769_s9 = scalar_lea.hbm %s6281_s16, 16  ;;  %p5775_p1 = scmp.lt.u32.totalorder %s6281_s16, %s7601_s8 }
  0x49   : > { %p5770_p10 = scmp.ne.s32.totalorder %s6281_s16, %s5769_s9  ;;  %p5776_p2 = scmp.lt.u32.totalorder %s5774_s29, %s5769_s9 }
  0x4a   : > { %p5778_p4 = scmp.lt.u32.totalorder %s5769_s9, %s6281_s16 }
  0x4b   : > { %p5772_p13 = pnand %p5770_p10, %p6249_p8  ;;  %p5777_p3 = por %p5776_p2, %p5775_p1 }
  0x4d   : > { %p5773_p0 = pneg %p5772_p13  ;;  %p5779_p5 = por %p5778_p4, %p5777_p3 }
  0x4f   : > { %p5780_p7 = pnand %p5779_p5, %p5773_p0 }
  0x51   : > { %5783 = shalt.err (!%p5780_p7)
}
  0x52   : > { %s5784_s2 = scalar_lea.vmem %s608_s5, 16  ;;  %s6078_s19 = smov [#allocation10]  }
  0x53   : > { %p5785_p9 = scmp.ne.s32.totalorder %s608_s5, %s5784_s2  ;;  %s5789_s23 = sshll.u32 %s6078_s19, 4  ;;  %s5790_s23 = int_to_ptr.vmem [resolvable:$false] %s5789_s23 }
  0x54   : > { %s5791_s3 = scalar_lea.vmem %s5790_s23, 32  ;;  %p5792_p10 = scmp.lt.s32.totalorder %s608_s5, %s5790_s23 }
  0x55   : > { %p5787_p11 = pnand %p5785_p9, %p6249_p8  ;;  %p5793_p13 = scmp.lt.s32.totalorder %s5791_s3, %s5784_s2 }
  0x57   : > { %p5788_p12 = pneg %p5787_p11  ;;  %p5794_p6 = por %p5793_p13, %p5792_p10 }
  0x59   : > { %p5795_p1 = pnand %p5794_p6, %p5788_p12 }
  0x5b   : > { %5798 = shalt.err (!%p5795_p1)
}
  0x5c   : > { %p7602_p2 = scmp.ne.s32.totalorder %s7597_s18, 0  ;;  %s7603_s13 = sld [smem:[#allocation40_spill]] }
  0x5d   : > { %s657_s23 = scalar_lea.vmem [#allocation13], %s6220_s30  ;;  %s7572_s17 = scalar_lea.sflag [#allocation14], %s6223_s0 }
  0x5e   : > { %5338 = dma.hbm_to_vmem [thread:$0]  (!%p7602_p2), %s6281_s16, 16, %s608_s5, %s7571_s10  }
  0x5f   : > { %s664_s20 = sshll.u32 %s657_s23, 4  ;;  %s665_s20 = int_to_ptr.vmem [resolvable:$true] %s664_s20 }
  0x62   : > { %s6308_s29 = scalar_lea.hbm %s7603_s13, %s6242_s28  ;;  %s5804_s16 = scalar_lea.hbm %s7603_s13, 32 }
  0x63   : > { %s5799_s2 = scalar_lea.hbm %s6308_s29, 16  ;;  %p5805_p4 = scmp.lt.u32.totalorder %s6308_s29, %s7603_s13 }
  0x64   : > { %p5800_p6 = scmp.ne.s32.totalorder %s6308_s29, %s5799_s2  ;;  %p5806_p5 = scmp.lt.u32.totalorder %s5804_s16, %s5799_s2 }
  0x65   : > { %p5808_p9 = scmp.lt.u32.totalorder %s5799_s2, %s6308_s29 }
  0x66   : > { %p5802_p0 = pnand %p5800_p6, %p6249_p8  ;;  %p5807_p7 = por %p5806_p5, %p5805_p4 }
  0x68   : > { %p5803_p3 = pneg %p5802_p0  ;;  %p5809_p11 = por %p5808_p9, %p5807_p7 }
  0x6a   : > { %p5810_p12 = pnand %p5809_p11, %p5803_p3 }
  0x6c   : > { %5813 = shalt.err (!%p5810_p12)
}
  0x6d   : > { %s5814_s1 = scalar_lea.vmem %s665_s20, 16  ;;  %s6079_s23 = smov [#allocation13]  }
  0x6e   : > { %p5815_p10 = scmp.ne.s32.totalorder %s665_s20, %s5814_s1  ;;  %s5819_s10 = sshll.u32 %s6079_s23, 4  ;;  %s5820_s10 = int_to_ptr.vmem [resolvable:$false] %s5819_s10 }
  0x6f   : > { %s5821_s19 = scalar_lea.vmem %s5820_s10, 32  ;;  %p5822_p6 = scmp.lt.s32.totalorder %s665_s20, %s5820_s10 }
  0x70   : > { %p5817_p13 = pnand %p5815_p10, %p6249_p8  ;;  %p5823_p0 = scmp.lt.s32.totalorder %s5821_s19, %s5814_s1 }
  0x72   : > { %p5818_p1 = pneg %p5817_p13  ;;  %p5824_p2 = por %p5823_p0, %p5822_p6 }
  0x74   : > { %p5825_p4 = pnand %p5824_p2, %p5818_p1 }
  0x76   : > { %5828 = shalt.err (!%p5825_p4)
}
  0x77   : > { %p7604_p5 = scmp.ne.s32.totalorder %s7597_s18, 0  ;;  %s6332_s2 = sadd.s32 4294967295, %s6073_s26  }
  0x78   : > { %p166_p2 = scmp.ne.s32.totalorder %s6057_s22, %s6053_s21  ;;  %p7575_p3 = scmp.eq.s32.totalorder %s6332_s2, 0 }
  0x79   : > { %5344 = dma.hbm_to_vmem [thread:$0]  (!%p7604_p5), %s6308_s29, 16, %s665_s20, %s7572_s17  }
  0x7a   : > { %p4640_p7 = scmp.ge.s32.totalorder %s6073_s26, 1  ;;  %p484_p9 = scmp.lt.s32.totalorder %s6073_s26, 3 }
  0x7b   : > { %p6341_p11 = por %p7575_p3, %p166_p2  ;;  %s6080_s29 = smov [#allocation16]  }
  0x7c   : > { %p6345_p12 = pnand %p4640_p7, %p484_p9  ;;  %s512_s20 = sshll.u32 %s6080_s29, 4  ;;  %s6349_s20 = int_to_ptr.vmem [resolvable:$true] %s512_s20 }
  0x7d   : > { %s7605_s10 = scalar_select %p6341_p11, 1, 0 }
  0x7e   : > { %s7606_s5 = scalar_select %p6345_p12, 1, 0 }
  0x7f   : > { %p5322_p10 = pneg %p6345_p12  ;;  %s5296_s21 = smul.u32 3, %s6220_s30 }
  0x80   : > { %s5297_s16 = smul.u32 48, %s6069_s25  ;;  %s7608_s4 = sld [smem:[#allocation33_spill]] }
  0x81   : > { %p6357_p13 = pnand %p5322_p10, %p7575_p3  ;;  %s538_s19 = scalar_lea.vmem [#allocation4], %s5296_s21 }
  0x82   : > { %s546_s17 = sshll.u32 %s538_s19, 4  ;;  %s5829_s8 = scalar_lea.hbm %s7560_s15, 1024  ;;  %s6366_s17 = int_to_ptr.vmem [resolvable:$true] %s546_s17 }
  0x83   : > { %p5830_p1 = scmp.ne.s32.totalorder %s7560_s15, %s5829_s8  ;;  %p5831_p6 = pneg %p6357_p13 }
  0x84   : > { %p5836_p2 = scmp.lt.u32.totalorder %s5829_s8, %s7560_s15 }
  0x85   : > { %p5832_p0 = pnand %p5831_p6, %p5830_p1 }
  0x86   : > { %s6364_s23 = scalar_lea.hbm %s7608_s4, %s5297_s16 }
  0x87   : > { %p5833_p4 = pneg %p5832_p0 }
  0x89   : > { %p5838_p7 = pnand %p5836_p2, %p5833_p4 }
  0x8b   : > { %5841 = shalt.err (!%p5838_p7)
}
  0x8c   : > { %s5842_s21 = scalar_lea.vmem %s6349_s20, 1024  ;;  %p5850_p11 = scmp.lt.s32.totalorder %s6349_s20, %s6349_s20 }
  0x8d   : > { %p5843_p9 = scmp.ne.s32.totalorder %s6349_s20, %s5842_s21  ;;  %p5851_p12 = scmp.lt.s32.totalorder %s5842_s21, %s5842_s21 }
  0x8f   : > { %p5845_p10 = pnand %p5843_p9, %p5831_p6  ;;  %p5852_p5 = por %p5851_p12, %p5850_p11 }
  0x91   : > { %p5846_p3 = pneg %p5845_p10 }
  0x93   : > { %p5853_p8 = pnand %p5852_p5, %p5846_p3 }
  0x95   : > { %5856 = shalt.err (!%p5853_p8)
}
  0x96   : > { %s7609_s13 = smov 4   ;;  %s7610_s25 = smov 64  }
  0x97   : > { %5325 = dma.hbm_to_vmem [thread:$0]  (!%p6357_p13), %s7560_s15, 1024, %s6349_s20, [#allocation17], %s7610_s25, %s7610_s25, %s7609_s13  }
  0x98   : > { %s535_s16 = scalar_lea.sflag [#allocation5], %s6220_s30  ;;  %s5857_s19 = scalar_lea.hbm %s6364_s23, 48 }
  0x99   : > { %p5858_p5 = scmp.ne.s32.totalorder %s6364_s23, %s5857_s19  ;;  %p7611_p8 = scmp.ne.s32.totalorder %s7599_s11, 0 }
  0x9a   : > { %s5862_s9 = scalar_lea.hbm %s7608_s4, 96  ;;  %p5863_p12 = scmp.lt.u32.totalorder %s6364_s23, %s7608_s4 }
  0x9b   : > { %p5860_p3 = pnand %p5858_p5, %p7611_p8  ;;  %p5864_p1 = scmp.lt.u32.totalorder %s5862_s9, %s5857_s19 }
  0x9c   : > { %p5866_p0 = scmp.lt.u32.totalorder %s5857_s19, %s6364_s23 }
  0x9d   : > { %p5861_p11 = pneg %p5860_p3  ;;  %p5865_p6 = por %p5864_p1, %p5863_p12 }
  0x9f   : > { %p5867_p4 = por %p5866_p0, %p5865_p6 }
  0xa1   : > { %p5868_p2 = pnand %p5867_p4, %p5861_p11 }
  0xa3   : > { %5871 = shalt.err (!%p5868_p2)
}
  0xa4   : > { %s5872_s20 = scalar_lea.vmem %s6366_s17, 48  ;;  %s6081_s13 = smov [#allocation4]  }
  0xa5   : > { %p5873_p13 = scmp.ne.s32.totalorder %s6366_s17, %s5872_s20  ;;  %s5877_s25 = sshll.u32 %s6081_s13, 4  ;;  %s5878_s25 = int_to_ptr.vmem [resolvable:$false] %s5877_s25 }
  0xa6   : > { %s5879_s8 = scalar_lea.vmem %s5878_s25, 96  ;;  %p5880_p10 = scmp.lt.s32.totalorder %s6366_s17, %s5878_s25 }
  0xa7   : > { %p5875_p7 = pnand %p5873_p13, %p7611_p8  ;;  %p5881_p5 = scmp.lt.s32.totalorder %s5879_s8, %s5872_s20 }
  0xa9   : > { %p5876_p9 = pneg %p5875_p7  ;;  %p5882_p3 = por %p5881_p5, %p5880_p10 }
  0xab   : > { %p5883_p12 = pnand %p5882_p3, %p5876_p9 }
  0xad   : > { %5886 = shalt.err (!%p5883_p12)
}
  0xae   : > { %p7612_p11 = scmp.ne.s32.totalorder %s7597_s18, 0  ;;  %s7613_s7 = sld [smem:[#allocation35_spill]] }
  0xaf   : > { %s583_s29 = scalar_lea.vmem [#allocation9], %s6220_s30 }
  0xb0   : > { %5329 = dma.hbm_to_vmem [thread:$0]  (!%p7612_p11), %s6364_s23, 48, %s6366_s17, %s535_s16  }
  0xb1   : > { %s590_s9 = sshll.u32 %s583_s29, 4  ;;  %s591_s9 = int_to_ptr.vmem [resolvable:$true] %s590_s9 }
  0xb4   : > { %s6418_s3 = scalar_lea.hbm %s7613_s7, %s6242_s28  ;;  %s5892_s17 = scalar_lea.hbm %s7613_s7, 32 }
  0xb5   : > { %s5887_s1 = scalar_lea.hbm %s6418_s3, 16  ;;  %p5893_p4 = scmp.lt.u32.totalorder %s6418_s3, %s7613_s7 }
  0xb6   : > { %p5888_p1 = scmp.ne.s32.totalorder %s6418_s3, %s5887_s1  ;;  %p5894_p2 = scmp.lt.u32.totalorder %s5892_s17, %s5887_s1 }
  0xb7   : > { %p5896_p7 = scmp.lt.u32.totalorder %s5887_s1, %s6418_s3 }
  0xb8   : > { %p5890_p6 = pnand %p5888_p1, %p7611_p8  ;;  %p5895_p13 = por %p5894_p2, %p5893_p4 }
  0xba   : > { %p5891_p0 = pneg %p5890_p6  ;;  %p5897_p9 = por %p5896_p7, %p5895_p13 }
  0xbc   : > { %p5898_p10 = pnand %p5897_p9, %p5891_p0 }
  0xbe   : > { %5901 = shalt.err (!%p5898_p10)
}
  0xbf   : > { %s5902_s13 = scalar_lea.vmem %s591_s9, 16  ;;  %s6082_s25 = smov [#allocation9]  }
  0xc0   : > { %p5903_p5 = scmp.ne.s32.totalorder %s591_s9, %s5902_s13  ;;  %s5907_s8 = sshll.u32 %s6082_s25, 4  ;;  %s5908_s8 = int_to_ptr.vmem [resolvable:$false] %s5907_s8 }
  0xc1   : > { %s5909_s27 = scalar_lea.vmem %s5908_s8, 32  ;;  %p5910_p1 = scmp.lt.s32.totalorder %s591_s9, %s5908_s8 }
  0xc2   : > { %p5905_p3 = pnand %p5903_p5, %p7611_p8  ;;  %p5911_p6 = scmp.lt.s32.totalorder %s5909_s27, %s5902_s13 }
  0xc4   : > { %p5906_p12 = pneg %p5905_p3  ;;  %p5912_p11 = por %p5911_p6, %p5910_p1 }
  0xc6   : > { %p5913_p2 = pnand %p5912_p11, %p5906_p12 }
  0xc8   : > { %5916 = shalt.err (!%p5913_p2)
}
  0xc9   : > { %p7614_p4 = scmp.ne.s32.totalorder %s7597_s18, 0  ;;  %s7615_s19 = scalar_lea.sflag [#allocation8], %s6223_s0 }
  0xca   : > { %s6444_s21 = scalar_lea.hbm %s7557_s12, %s6242_s28  ;;  %s640_s20 = scalar_lea.vmem [#allocation12], %s6220_s30 }
  0xcb   : > { %5335 = dma.hbm_to_vmem [thread:$0]  (!%p7614_p4), %s6418_s3, 16, %s591_s9, %s7615_s19  }
  0xcc   : > { %s647_s17 = sshll.u32 %s640_s20, 4  ;;  %s5917_s23 = scalar_lea.hbm %s6444_s21, 16  ;;  %s648_s17 = int_to_ptr.vmem [resolvable:$true] %s647_s17 }
  0xcd   : > { %p5918_p11 = scmp.ne.s32.totalorder %s6444_s21, %s5917_s23  ;;  %s5922_s3 = scalar_lea.hbm %s7557_s12, 32 }
  0xce   : > { %p5923_p7 = scmp.lt.u32.totalorder %s6444_s21, %s7557_s12  ;;  %p5924_p9 = scmp.lt.u32.totalorder %s5922_s3, %s5917_s23 }
  0xcf   : > { %p5920_p0 = pnand %p5918_p11, %p7611_p8  ;;  %p5926_p5 = scmp.lt.u32.totalorder %s5917_s23, %s6444_s21 }
  0xd0   : > { %p5925_p10 = por %p5924_p9, %p5923_p7 }
  0xd1   : > { %p5921_p13 = pneg %p5920_p0 }
  0xd2   : > { %p5927_p3 = por %p5926_p5, %p5925_p10 }
  0xd4   : > { %p5928_p12 = pnand %p5927_p3, %p5921_p13 }
  0xd6   : > { %5931 = shalt.err (!%p5928_p12)
}
  0xd7   : > { %s5932_s8 = scalar_lea.vmem %s648_s17, 16  ;;  %s6083_s27 = smov [#allocation12]  }
  0xd8   : > { %p5933_p1 = scmp.ne.s32.totalorder %s648_s17, %s5932_s8  ;;  %s5937_s19 = sshll.u32 %s6083_s27, 4  ;;  %s5938_s19 = int_to_ptr.vmem [resolvable:$false] %s5937_s19 }
  0xd9   : > { %s5939_s29 = scalar_lea.vmem %s5938_s19, 32  ;;  %p5940_p11 = scmp.lt.s32.totalorder %s648_s17, %s5938_s19 }
  0xda   : > { %p5935_p6 = pnand %p5933_p1, %p7611_p8  ;;  %p5941_p0 = scmp.lt.s32.totalorder %s5939_s29, %s5932_s8 }
  0xdc   : > { %p5936_p2 = pneg %p5935_p6  ;;  %p5942_p4 = por %p5941_p0, %p5940_p11 }
  0xde   : > { %p5943_p7 = pnand %p5942_p4, %p5936_p2 }
  0xe0   : > { %5946 = shalt.err (!%p5943_p7)
}
  0xe1   : > { %p7616_p9 = scmp.ne.s32.totalorder %s7597_s18, 0  ;;  %s7617_s1 = scalar_lea.sflag [#allocation11], %s6223_s0 }
  0xe2   : > { %s6470_s16 = scalar_lea.hbm %s7559_s14, %s6242_s28  ;;  %s674_s13 = scalar_lea.vmem [#allocation15], %s6220_s30 }
  0xe3   : > { %5341 = dma.hbm_to_vmem [thread:$0]  (!%p7616_p9), %s6444_s21, 16, %s648_s17, %s7617_s1  }
  0xe4   : > { %s681_s3 = sshll.u32 %s674_s13, 4  ;;  %s5947_s9 = scalar_lea.hbm %s6470_s16, 16  ;;  %s682_s3 = int_to_ptr.vmem [resolvable:$true] %s681_s3 }
  0xe5   : > { %p5948_p4 = scmp.ne.s32.totalorder %s6470_s16, %s5947_s9  ;;  %s5952_s21 = scalar_lea.hbm %s7559_s14, 32 }
  0xe6   : > { %p5953_p5 = scmp.lt.u32.totalorder %s6470_s16, %s7559_s14  ;;  %p5954_p3 = scmp.lt.u32.totalorder %s5952_s21, %s5947_s9 }
  0xe7   : > { %p5950_p13 = pnand %p5948_p4, %p7611_p8  ;;  %p5956_p1 = scmp.lt.u32.totalorder %s5947_s9, %s6470_s16 }
  0xe8   : > { %p5955_p12 = por %p5954_p3, %p5953_p5 }
  0xe9   : > { %p5951_p10 = pneg %p5950_p13 }
  0xea   : > { %p5957_p6 = por %p5956_p1, %p5955_p12 }
  0xec   : > { %p5958_p2 = pnand %p5957_p6, %p5951_p10 }
  0xee   : > { %5961 = shalt.err (!%p5958_p2)
}
  0xef   : > { %s5962_s30 = scalar_lea.vmem %s682_s3, 16  ;;  %s6084_s28 = smov [#allocation15]  }
  0xf0   : > { %p5963_p11 = scmp.ne.s32.totalorder %s682_s3, %s5962_s30  ;;  %s5967_s19 = sshll.u32 %s6084_s28, 4  ;;  %s5968_s19 = int_to_ptr.vmem [resolvable:$false] %s5967_s19 }
  0xf1   : > { %s5969_s29 = scalar_lea.vmem %s5968_s19, 32  ;;  %p5970_p4 = scmp.lt.s32.totalorder %s682_s3, %s5968_s19 }
  0xf2   : > { %p5965_p0 = pnand %p5963_p11, %p7611_p8  ;;  %p5971_p13 = scmp.lt.s32.totalorder %s5969_s29, %s5962_s30 }
  0xf4   : > { %p5966_p7 = pneg %p5965_p0  ;;  %p5972_p9 = por %p5971_p13, %p5970_p4 }
  0xf6   : > { %p5973_p3 = pnand %p5972_p9, %p5966_p7 }
  0xf8   : > { %5976 = shalt.err (!%p5973_p3)
}
  0xf9   : > { %p7618_p5 = scmp.ne.s32.totalorder %s7597_s18, 0  ;;  %s7619_s1 = scalar_lea.sflag [#allocation14], %s6223_s0 }
  0xfa   : > { %p7620_p10 = scmp.ne.s32.totalorder %s7606_s5, 0 }
  0xfb   : > { %5347 = dma.hbm_to_vmem [thread:$0]  (!%p7618_p5), %s6470_s16, 16, %s682_s3, %s7619_s1  }
  0xfc   : > { %690 = sbr.rel (%p7620_p10) target bundleno = 7264 (0x1c60), region = 84  ;;  %s6495_s11 = sand.u32 (!%p7620_p10), 1, %s6057_s22  }
  0xfd   : > { %s5298_s20 = smul.u32 (!%p7620_p10), 3, %s6495_s11  ;;  %s693_s23 = scalar_lea.sflag (!%p7620_p10), [#allocation5], %s6495_s11 }
  0xfe   : > { %p7621_p8 = scmp.ne.s32.totalorder (!%p7620_p10), %s7605_s10, 0 }
  0xff   : > { %s6499_s13 = scalar_lea.vmem (!%p7620_p10), [#allocation4], %s5298_s20 }
 0x103   : > { %6028 = dma.done.wait (%p7621_p8), %s693_s23, 48  }
 0x104   : > { %6030 = vsyncadd (%p7621_p8), %s693_s23, 4294967248  ;;  %s701_s0 = sand.u32 1, %s6332_s2   ;;  %s4654_s18 = sshll.u32 %s6495_s11, 6 }
 0x105   : > { %s702_s5 = scalar_lea.sflag [#allocation8], %s701_s0  ;;  %s6507_s16 = scalar_lea.vmem [#allocation7], %s4654_s18 }
 0x106   : > { %6032 = dma.done.wait (%p7621_p8), %s702_s5, 1040  }
 0x107   : > { %6034 = vsyncadd (%p7621_p8), %s702_s5, 4294966256  ;;  %s719_s9 = scalar_lea.sflag [#allocation11], %s701_s0 }
 0x108   : > { %6036 = dma.done.wait (%p7621_p8), %s719_s9, 32  }
 0x109   : > { %6038 = vsyncadd (%p7621_p8), %s719_s9, 4294967264  ;;  %s735_s21 = scalar_lea.sflag [#allocation14], %s701_s0 }
 0x10a   : > { %6040 = dma.done.wait (%p7621_p8), %s735_s21, 32  }
 0x10b   : > { %6042 = vsyncadd (%p7621_p8), %s735_s21, 4294967264  ;;  %p7622_p9 = scmp.eq.s32.totalorder %s6332_s2, 0 }
 0x10d   : > { %6044 = dma.done.wait (%p7622_p9), [#allocation17], 1024   ;;  %p7623_p12 = pmov %p7622_p9 }
 0x10e   : > { %p853_p1 = scmp.lt.s32.totalorder %s6065_s24, 1  ;;  %s7624_s18 = sld [smem:[#allocation32_spill]] }
 0x10f   : > { %6046 = vsyncadd (%p7623_p12), [#allocation17], 4294966272  ;;  %s7625_s27 = sld [smem:[#allocation37_spill]]  ;;  %s7626_s3 = sld [smem:[#allocation38_spill]] }
 0x110   : > { %s6532_s30 = scalar_select %p853_p1, %s6065_s24, 1 }
 0x111   : > { %s7627_s19 = sld [smem:[#allocation39_spill]]  ;;  %p4662_p6 = scmp.ne.s32.totalorder %s6065_s24, 0 }
 0x112   : > { %s5299_s28 = smul.u32 192, %s6532_s30  ;;  %s4838_s1 = sshll.u32 %s6532_s30, 8  ;;  %vm926_vm0 = vcmask (!%p4662_p6), 523264  }
 0x113   : > { %s4659_s20 = sshll.u32 %s6532_s30, 2  ;;  %879 = sbr.rel (%p4662_p6) target bundleno = 518 (0x206), region = 120 }
 0x114   : > { %s6544_s5 = scalar_lea.vmem %s7624_s18, %s5299_s28  ;;  %s7628_s0 = sld [smem:[#allocation30_spill]] (!%p4662_p6) }
 0x115   : > { %s6549_s17 = scalar_lea.vmem %s7625_s27, %s4838_s1  ;;  %s6554_s4 = scalar_lea.vmem %s7626_s3, %s4659_s20 }
 0x116   : > { %s7629_s25 = sld [smem:[#allocation29_spill]] (!%p4662_p6)  ;;  %s7631_s28 = sld [smem:[#allocation31_spill]] (!%p4662_p6) }
 0x117   : > { %s6559_s29 = scalar_lea.vmem %s7627_s19, %s4838_s1 }
 0x11a   : > { %v5413_v0 = vld [vmem:[%s7628_s0] sm:$0xff]   ;;  %v5415_v2 = vld [vmem:[%s7628_s0 + $0x8] sm:$0xff]   ;;  %v5417_v4 = vld [vmem:[%s7628_s0 + $0x10] sm:$0xff]  }
 0x11b   : > { %v5414_v1 = vld [vmem:[%s7628_s0] sm:$0xff]   ;;  %5024 = vmatprep.subr.bf16.mxu0 %v5413_v0  ;;  %v5416_v3 = vld [vmem:[%s7628_s0 + $0x8] sm:$0xff]   ;;  %v5418_v5 = vld [vmem:[%s7628_s0 + $0x10] sm:$0xff]  }
 0x11c   : > { %5036 = vmatprep.subr.bf16.mxu1 %v5414_v1  ;;  %5025 = vmatpush3.bf16.msra.mxu0 %v5413_v0  ;;  %v5419_v6 = vld [vmem:[%s7628_s0 + $0x18] sm:$0xff]   ;;  %s7630_s3 = smov %s7629_s25  ;;  %v5421_v8 = vld [vmem:[%s7629_s25] sm:$0xff]   ;;  %v893_v12 = vld [vmem:[%s7631_s28 + $0x10] sm:$0xff] }
 0x11d   : > { %5037 = vmatpush3.bf16.msra.mxu1 %v5414_v1  ;;  %5026 = vmatprep.subr.bf16.mxu0 %v5415_v2  ;;  %v5420_v7 = vld [vmem:[%s7628_s0 + $0x18] sm:$0xff]   ;;  %v5422_v9 = vld [vmem:[%s7630_s3 + $0xc] sm:$0xff]   ;;  %v5423_v10 = vld [vmem:[%s7630_s3 + $0x8] ss:$0 sps:$4 sm:$0xff]  }
 0x11e   : > { %5038 = vmatprep.subr.bf16.mxu1 %v5416_v3  ;;  %5032 = vmatprep.mubr.msk.bf16.mxu0 %vm926_vm0, %v5421_v8  ;;  %v5424_v11 = vld [vmem:[%s7630_s3 + $0x14] ss:$0 sps:$4 sm:$0xff]   ;;  %v891_v13 = vld [vmem:[%s7631_s28] sm:$0xff]  ;;  %v892_v18 = vld [vmem:[%s7631_s28 + $0x8] sm:$0xff] }
 0x11f   : > { %5044 = vmatprep.mubr.msk.bf16.mxu1 %vm926_vm0, %v5422_v9 }
 0x120   : > { %5027 = vmatpush3.bf16.msra.mxu0 %v5415_v2 }
 0x121   : > { %5039 = vmatpush3.bf16.msra.mxu1 %v5416_v3  ;;  %5028 = vmatprep.subr.bf16.mxu0 %v5417_v4 }
 0x122   : > { %5040 = vmatprep.subr.bf16.mxu1 %v5418_v5 }
 0x124   : > { %5029 = vmatpush3.bf16.msra.mxu0 %v5417_v4 }
 0x125   : > { %5041 = vmatpush3.bf16.msra.mxu1 %v5418_v5  ;;  %5030 = vmatprep.subr.bf16.mxu0 %v5419_v6 }
 0x126   : > { %5042 = vmatprep.subr.bf16.mxu1 %v5420_v7 }
 0x128   : > { %5031 = vmatpush3.bf16.msra.mxu0 %v5419_v6 }
 0x129   : > { %5043 = vmatpush3.bf16.msra.mxu1 %v5420_v7 }
 0x12b   : > { %5033 = vmatmul.mubr.msk.bf16.vlgmr.msra.gmra.mrb[0].mxu0 %vm926_vm0, %v5423_v10 }
 0x12c   : > { %5045 = vmatmul.mubr.msk.bf16.vlgmr.msra.gmra.mrb[0].mxu1 %vm926_vm0, %v5424_v11 }
 0x1fe   : > { %v5034_v14 = vpop.f32.mrb[0].mxu0 }
 0x1ff   : > { %v976_v15 = vadd.f32 %v5034_v14, %v893_v12  ;;  %v5046_v16 = vpop.f32.mrb[0].mxu1  ;;  %v967_v17 = vpop.f32.mrb[1].mxu0 }
 0x200   : > { %v1080_v19 = vadd.f32 %v5046_v16, %v893_v12  ;;  %v968_v20 = vadd.f32 %v967_v17, %v891_v13  ;;  %v1071_v21 = vpop.f32.mrb[1].mxu1  ;;  %v5035_v22 = vpop.f32.mrb[2].mxu0 }
 0x201   : > { %983 = vst [vmem:[#allocation2 + $0x10] sm:$0xff] %v976_v15  ;;  %v1072_v23 = vadd.f32 %v1071_v21, %v891_v13  ;;  %v5047_v24 = vpop.f32.mrb[2].mxu1  ;;  %v970_v25 = vpop.f32.mrb[3].mxu0 }
 0x202   : > { %1087 = vst [vmem:[#allocation2 + $0x28] sm:$0xff] %v1080_v19  ;;  %981 = vst [vmem:[#allocation2] sm:$0xff] %v968_v20  ;;  %v971_v26 = vadd.f32 %v970_v25, %v892_v18  ;;  %v1074_v27 = vpop.f32.mrb[3].mxu1 }
 0x203   : > { %1085 = vst [vmem:[#allocation2 + $0x18] sm:$0xff] %v1072_v23  ;;  %v1075_v28 = vadd.f32 %v1074_v27, %v892_v18 }
 0x204   : > { %982 = vst [vmem:[#allocation2 + $0x8] sm:$0xff] %v971_v26 }
 0x205   : > { %1086 = vst [vmem:[#allocation2 + $0x20] sm:$0xff] %v1075_v28 }
 0x206 PF: > { %v5425_v29 = vld [vmem:[%s6544_s5 + $0x4] ss:$12 sps:$4 sm:$0xff]   ;;  %v5427_v30 = vld [vmem:[%s6544_s5] ss:$12 sps:$4 sm:$0xff]   ;;  %v6085_v31 = vmov 0   ;;  %v1131_v55 = vlaneseq  ;;  %vm1412_vm1 = vcmask 261120   ;;  %s7632_s1 = scalar_lea.vmem %s7551_s6, %s6532_s30 }
 0x207   : > { %1306 = vmatprep.mubr.bf16.mxu0 %v6085_v31  ;;  %1274 = vmatprep.subr.bf16.mxu0 %v5425_v29  ;;  %v5428_v32 = vld [vmem:[%s6544_s5 + $0x1c] ss:$12 sps:$4 sm:$0xff]   ;;  %v5430_v33 = vld [vmem:[%s6544_s5 + $0x18] ss:$12 sps:$4 sm:$0xff]   ;;  %v5431_v34 = vld [vmem:[%s6544_s5 + $0x34] ss:$12 sps:$4 sm:$0xff]  }
 0x208   : > { %1275 = vmatpush1.bf16.msra.mxu0 %v5427_v30  ;;  %v5433_v35 = vld [vmem:[%s6544_s5 + $0x30] ss:$12 sps:$4 sm:$0xff]   ;;  %v5434_v36 = vld [vmem:[%s6544_s5 + $0x4c] ss:$12 sps:$4 sm:$0xff]   ;;  %v5436_v37 = vld [vmem:[%s6544_s5 + $0x48] ss:$12 sps:$4 sm:$0xff]  }
 0x209   : > { %1276 = vmatprep.subr.bf16.mxu0 %v5428_v32  ;;  %v5437_v38 = vld [vmem:[%s6544_s5 + $0x64] ss:$12 sps:$4 sm:$0xff]   ;;  %v5439_v39 = vld [vmem:[%s6544_s5 + $0x60] ss:$12 sps:$4 sm:$0xff]   ;;  %v5440_v40 = vld [vmem:[%s6544_s5 + $0x7c] ss:$12 sps:$4 sm:$0xff]  }
 0x20a   : > { %v5442_v41 = vld [vmem:[%s6544_s5 + $0x78] ss:$12 sps:$4 sm:$0xff]   ;;  %v5443_v42 = vld [vmem:[%s6544_s5 + $0x94] ss:$12 sps:$4 sm:$0xff]   ;;  %v5445_v43 = vld [vmem:[%s6544_s5 + $0x90] ss:$12 sps:$4 sm:$0xff]  }
 0x20b   : > { %v5446_v44 = vld [vmem:[%s6544_s5 + $0xac] ss:$12 sps:$4 sm:$0xff]   ;;  %v5448_v45 = vld [vmem:[%s6544_s5 + $0xa8] ss:$12 sps:$4 sm:$0xff]   ;;  %v1088_v46 = vld [vmem:[#allocation2] sm:$0xff]  ;;  %v6640_v56 = vshrl.u32 %v1131_v55, 7 }
 0x20c   : > { %1277 = vmatpush1.bf16.msra.mxu0 %v5430_v33  ;;  %v1089_v47 = vld [vmem:[#allocation2 + $0x8] sm:$0xff]  ;;  %v1090_v49 = vld [vmem:[#allocation2 + $0x10] sm:$0xff]  ;;  %v1091_v50 = vld [vmem:[#allocation2 + $0x18] sm:$0xff]  ;;  %vm6087_vm2 = vmmov 0   ;;  %vm1476_vm4 = vcmask 195584   ;;  %vm1518_vm5 = vcmask 1043456  }
 0x20d   : > { %1278 = vmatprep.subr.bf16.mxu0 %v5431_v34  ;;  %v6628_v48 = vpack.c.bf16 %v1089_v47, %v1088_v46  ;;  %v6632_v51 = vpack.c.bf16 %v1091_v50, %v1090_v49  ;;  %v1092_v52 = vld [vmem:[#allocation2 + $0x20] sm:$0xff]  ;;  %v1093_v53 = vld [vmem:[#allocation2 + $0x28] sm:$0xff]  ;;  %v1133_v57 = vsub.s32 0, %v6640_v56  ;;  %v1137_v59 = vsub.s32 1, %v6640_v56  ;;  %s6090_s7 = smov 32   ;;  %s7634_s30 = scalar_lea.vmem [#allocation10], %s6495_s11 }
 0x20e   : > { %v6636_v54 = vpack.c.bf16 %v1093_v53, %v1092_v52  ;;  %v6644_v58 = vld [vmem:[%s6499_s13] sm:$0x7]  ;;  %v6711_v46 = vand.u32 127, %v1131_v55  ;;  %s6088_s13 = smov 96   ;;  %vm1573_vm6 = vcmask 257024   ;;  %vm2305_vm7 = vcmask 261124  }
 0x20f   : > { %v1134_v60 = vrot.slane %v6644_v58, %v1133_v57  ;;  %v1138_v62 = vrot.slane %v6644_v58, %v1137_v59  ;;  %vm1759_vm8 = vcmask 523520   ;;  %vm1941_vm9 = vcmask 785920   ;;  %s7637_s20 = scalar_lea.vmem [#allocation15], %s6495_s11  ;;  %p4816_p2 = scmp.ne.s32.totalorder %s6065_s24, 1 }
 0x210   : > { %1279 = vmatpush1.bf16.msra.mxu0 %v5433_v35  ;;  %vm1411_vm3 = vcmp.lt.s32.totalorder %v6711_v46, 17  ;;  %vm2489_vm10 = vcmask 523524   ;;  %vm2123_vm11 = vcmask 1048320   ;;  %vm1761_vm12 = vcmask 519424  }
 0x211   : > { %1280 = vmatprep.subr.bf16.mxu0 %v5434_v36  ;;  %vm2673_vm13 = vcmask 785924   ;;  %vm1943_vm14 = vcmask 781824   ;;  %vm2125_vm15 = vcmask 1044224   ;;  %vm2857_vm0 = vcmask 1048324  }
 0x214   : > { %1281 = vmatpush1.bf16.msra.mxu0 %v5436_v37  ;;  %v5449_v37 = vld [vmem:[%s6544_s5 + $0x8] ss:$12 sps:$4 sm:$0xff]  }
 0x215   : > { %1282 = vmatprep.subr.bf16.mxu0 %v5437_v38  ;;  %v6086_v38 = vmov 0.0  }
 0x216   : > { %5048 = vmatprep.subr.bf16.mxu1 %v6086_v38  ;;  %5064 = vmatprep.mubr.msk.bf16.mxu1 %vm6087_vm2, %v6086_v38 }
 0x217   : > { %5049 = vmatpush3.bf16.msra.mxu1 %v5449_v37 }
 0x218   : > { %1283 = vmatpush1.bf16.msra.mxu0 %v5439_v39  ;;  %v5450_v39 = vld [vmem:[%s6544_s5 + $0x20] ss:$12 sps:$4 sm:$0xff]   ;;  %5050 = vmatprep.subr.bf16.mxu1 %v6086_v38 }
 0x219   : > { %1284 = vmatprep.subr.bf16.mxu0 %v5440_v40  ;;  %v5451_v40 = vld [vmem:[%s6544_s5 + $0x38] ss:$12 sps:$4 sm:$0xff]  }
 0x21b   : > { %5051 = vmatpush3.bf16.msra.mxu1 %v5450_v39 }
 0x21c   : > { %1285 = vmatpush1.bf16.msra.mxu0 %v5442_v41  ;;  %5052 = vmatprep.subr.bf16.mxu1 %v6086_v38  ;;  %v5452_v41 = vld [vmem:[%s6544_s5 + $0x50] ss:$12 sps:$4 sm:$0xff]  }
 0x21d   : > { %1286 = vmatprep.subr.bf16.mxu0 %v5443_v42  ;;  %v5453_v42 = vld [vmem:[%s6544_s5 + $0x68] ss:$12 sps:$4 sm:$0xff]  }
 0x21f   : > { %5053 = vmatpush3.bf16.msra.mxu1 %v5451_v40 }
 0x220   : > { %1287 = vmatpush1.bf16.msra.mxu0 %v5445_v43  ;;  %5054 = vmatprep.subr.bf16.mxu1 %v6086_v38  ;;  %v5454_v43 = vld [vmem:[%s6544_s5 + $0x80] ss:$12 sps:$4 sm:$0xff]  }
 0x221   : > { %1288 = vmatprep.subr.bf16.mxu0 %v5446_v44  ;;  %v5455_v44 = vld [vmem:[%s6544_s5 + $0x98] ss:$12 sps:$4 sm:$0xff]  }
 0x223   : > { %5055 = vmatpush3.bf16.msra.mxu1 %v5452_v41 }
 0x224   : > { %1289 = vmatpush1.bf16.msra.mxu0 %v5448_v45  ;;  %5056 = vmatprep.subr.bf16.mxu1 %v6086_v38  ;;  %v5456_v45 = vld [vmem:[%s6544_s5 + $0xb0] ss:$12 sps:$4 sm:$0xff]   ;;  %s6089_s5 = smov 64  }
 0x227   : > { %1307 = vmatmul.mubr.bf16.vlgmr.msra.gmra.mrb[0].mxu0 %v6628_v48  ;;  %5057 = vmatpush3.bf16.msra.mxu1 %v5453_v42 }
 0x228   : > { %1316 = vmatprep.mubr.bf16.mxu0 %v6085_v31  ;;  %5058 = vmatprep.subr.bf16.mxu1 %v6086_v38 }
 0x22b   : > { %5059 = vmatpush3.bf16.msra.mxu1 %v5454_v43 }
 0x22c   : > { %5060 = vmatprep.subr.bf16.mxu1 %v6086_v38 }
 0x22f   : > { %1317 = vmatmul.mubr.bf16.gmra.mrb[4].mxu0 %v6632_v51  ;;  %5061 = vmatpush3.bf16.msra.mxu1 %v5455_v44 }
 0x230   : > { %1326 = vmatprep.mubr.bf16.mxu0 %v6085_v31  ;;  %5062 = vmatprep.subr.bf16.mxu1 %v6086_v38 }
 0x233   : > { %5063 = vmatpush3.bf16.msra.mxu1 %v5456_v45 }
 0x236   : > { %5065 = vmatmul.mubr.bf16.vlgmr.msra.gmra.mrb[0].mxu1 %v6628_v48 }
 0x237   : > { %1327 = vmatmul.mubr.bf16.gmra.mrb[8].mxu0 %v6636_v54  ;;  %5068 = vmatprep.mubr.msk.bf16.mxu1 %vm6087_vm2, %v6086_v38 }
 0x23e   : > { %5069 = vmatmul.mubr.bf16.gmra.mrb[4].mxu1 %v6632_v51 }
 0x23f   : > { %5072 = vmatprep.mubr.msk.bf16.mxu1 %vm6087_vm2, %v6086_v38 }
 0x246   : > { %5073 = vmatmul.mubr.bf16.gmra.mrb[8].mxu1 %v6636_v54 }
 0x2fa   : > { %v1308_v61 = vpop.f32.mrb[0].mxu0 }
 0x2fb   : > { %v1309_v63 = vadd.f32 %v1308_v61, %v1134_v60  ;;  %v1310_v0 = vpop.f32.mrb[1].mxu0  ;;  %v1141_v61 = vsub.s32 2, %v6640_v56 }
 0x2fc   : > { %v1312_v1 = vpop.f32.mrb[2].mxu0  ;;  %v1311_v4 = vadd.f32 %v1310_v0, %v1138_v62 }
 0x2fd   : > { %v1313_v2 = vadd.f32 %v1312_v1, %v1134_v60  ;;  %v1314_v3 = vpop.f32.mrb[3].mxu0  ;;  %v1394_v6 = vmul.f32 0.17677669, %v1309_v63 }
 0x2fe   : > { %v1315_v5 = vadd.f32 %v1314_v3, %v1138_v62 }
 0x2ff   : > { %v1395_v7 = vmul.f32 0.17677669, %v1313_v2 }
 0x300   : > { %v6653_v8 = vpack.c.bf16 %v1315_v5, %v1311_v4 }
 0x301   : > { %v6655_v9 = vpack.c.bf16 %v1395_v7, %v1394_v6 }
 0x302   : > { %v1318_v10 = vpop.f32.mrb[4].mxu0  ;;  %5272 = vmatprep.subr.msk.bf16.mxu0 %vm1412_vm1, %v6653_v8  ;;  %v1420_v11 = vsel %vm1412_vm1, %v6653_v8, 0 }
 0x303   : > { %v1319_v12 = vadd.f32 %v1318_v10, %v1134_v60  ;;  %v1320_v13 = vpop.f32.mrb[5].mxu0  ;;  %5077 = vmatpush3.bf16.xpose.msra.mxu0 %v1420_v11  ;;  %5080 = vmatprep.mubr.msk.bf16.mxu0 %vm1412_vm1, %v6655_v9 }
 0x304   : > { %v1322_v14 = vpop.f32.mrb[6].mxu0  ;;  %v1321_v17 = vadd.f32 %v1320_v13, %v1138_v62 }
 0x305   : > { %v1323_v15 = vadd.f32 %v1322_v14, %v1134_v60  ;;  %v1324_v16 = vpop.f32.mrb[7].mxu0  ;;  %v1396_v19 = vmul.f32 0.17677669, %v1319_v12 }
 0x306   : > { %v1325_v18 = vadd.f32 %v1324_v16, %v1138_v62 }
 0x307   : > { %v1397_v20 = vmul.f32 0.17677669, %v1323_v15 }
 0x308   : > { %v6663_v21 = vpack.c.bf16 %v1325_v18, %v1321_v17 }
 0x309   : > { %v6665_v22 = vpack.c.bf16 %v1397_v20, %v1396_v19  ;;  %v1371_v63 = vpop.f32.mrb[0].mxu1 }
 0x30a   : > { %v1328_v23 = vpop.f32.mrb[8].mxu0  ;;  %5273 = vmatprep.subr.msk.bf16.mxu0 %vm1412_vm1, %v6663_v21  ;;  %v1423_v24 = vsel %vm1412_vm1, %v6663_v21, 0  ;;  %v5066_v1 = vpop.f32.mrb[1].mxu1 }
 0x30b   : > { %v1329_v25 = vadd.f32 %v1328_v23, %v1134_v60  ;;  %v1330_v26 = vpop.f32.mrb[9].mxu0  ;;  %5079 = vmatpush3.bf16.xpose.msra.mxu0 %v1423_v24  ;;  %v1374_v2 = vpop.f32.mrb[2].mxu1 }
 0x30c   : > { %v6671_v27 = vadd.f32 %v1330_v26, %v1138_v62  ;;  %v1332_v28 = vpop.f32.mrb[10].mxu0  ;;  %v5067_v4 = vpop.f32.mrb[3].mxu1 }
 0x30d   : > { %v6673_v29 = vmul.f32 0.17677669, %v1329_v25  ;;  %v1333_v30 = vadd.f32 %v1332_v28, %v1134_v60  ;;  %v1334_v32 = vpop.f32.mrb[11].mxu0 }
 0x30e   : > { %v6675_v33 = vadd.f32 %v1334_v32, %v1138_v62  ;;  %v1142_v62 = vrot.slane %v6644_v58, %v1141_v61 }
 0x30f   : > { %v6677_v34 = vmul.f32 0.17677669, %v1333_v30 }
 0x310   : > { %v1405_v35 = vpack.c.bf16 %v6675_v33, %v6671_v27  ;;  %v1372_v0 = vadd.f32 %v1371_v63, %v1142_v62  ;;  %v1375_v3 = vadd.f32 %v1374_v2, %v1142_v62 }
 0x311   : > { %v1402_v36 = vpack.c.bf16 %v6677_v34, %v6673_v29  ;;  %v1379_v6 = vpop.f32.mrb[4].mxu1 }
 0x312   : > { %5081 = vmatmul.mubr.msk.bf16.vlgmr.msra.gmra.mrb[12].mxu0 %vm1412_vm1, %v6665_v22  ;;  %v6727_v5 = vpack.c.bf16 %v1375_v3, %v1372_v0  ;;  %v1380_v7 = vadd.f32 %v1379_v6, %v1142_v62  ;;  %v5070_v10 = vpop.f32.mrb[5].mxu1 }
 0x313   : > { %v1382_v11 = vpop.f32.mrb[6].mxu1 }
 0x314   : > { %5084 = vmatprep.subr.bf16.mxu0 %v6727_v5  ;;  %v1383_v12 = vadd.f32 %v1382_v11, %v1142_v62  ;;  %v5071_v13 = vpop.f32.mrb[7].mxu1 }
 0x315   : > { %5085 = vmatpush3.bf16.msra.mxu0 %v6727_v5 }
 0x316   : > { %v6731_v14 = vpack.c.bf16 %v1383_v12, %v1380_v7 }
 0x318   : > { %5274 = vmatprep.subr.msk.bf16.mxu0 %vm1518_vm5, %v6731_v14 }
 0x319   : > { %v1387_v39 = vpop.f32.mrb[8].mxu1 }
 0x31a   : > { %v6738_v40 = vadd.f32 %v1387_v39, %v1142_v62  ;;  %v5074_v41 = vpop.f32.mrb[9].mxu1 }
 0x31b   : > { %v1390_v42 = vpop.f32.mrb[10].mxu1 }
 0x31c   : > { %v6740_v43 = vadd.f32 %v1390_v42, %v1142_v62  ;;  %v5075_v44 = vpop.f32.mrb[11].mxu1 }
 0x31e   : > { %v1408_v45 = vpack.c.bf16 %v6740_v43, %v6738_v40 }
 0x3e5   : > { %v5082_v47 = vpop.f32.mrb[12].mxu0 }
 0x3e6   : > { %v1475_v48 = vsel %vm1411_vm3, %v5082_v47, -1e+30  ;;  %v1459_v49 = vpop.f32.mrb[13].mxu0  ;;  %v1520_v47 = vsel %vm1518_vm5, %v6731_v14, 0 }
 0x3e7   : > { %v1473_v50 = vsel %vm1411_vm3, %v1459_v49, -1e+30  ;;  %v5083_v51 = vpop.f32.mrb[14].mxu0  ;;  %v1483_v52 = vsel %vm1476_vm4, %v1475_v48, -inf  ;;  %5087 = vmatpush3.bf16.msra.mxu0 %v1520_v47 }
 0x3e8   : > { %1484 = vmax.xlane.f32.xlu1 %v1483_v52  ;;  %v1462_v53 = vpop.f32.mrb[15].mxu0  ;;  %v1477_v54 = vsel %vm1476_vm4, %v1473_v50, -inf }
 0x3e9   : > { %v1474_v55 = vsel %vm1411_vm3, %v1462_v53, -1e+30  ;;  %1478 = vmax.xlane.f32.xlu0 %v1477_v54 }
 0x3ea   : > { %v1480_v60 = vsel %vm1476_vm4, %v1474_v55, -inf }
 0x3ed   : > { %1481 = vmax.xlane.f32.xlu0 %v1480_v60 }
 0x475   : > { %v1485_v58 = vpop.xlane.xlu1 %1484 }
 0x476   : > { %v1488_v15 = vsub.f32 %v1475_v48, %v1485_v58  ;;  %v1479_v16 = vpop.xlane.xlu0 %1478 }
 0x477   : > { %v1486_v17 = vsub.f32 %v1473_v50, %v1479_v16 }
 0x478   : > { %v1493_v18 = vmul.f32 1.442695, %v1488_v15 }
 0x479   : > { %v1489_v19 = vmul.f32 1.442695, %v1486_v17 }
 0x47a   : > { %v1482_v20 = vpop.xlane.xlu0 %1481 }
 0x47b   : > { %5545 = vpow2.f32 %v1489_v19  ;;  %v1487_v23 = vsub.f32 %v1474_v55, %v1482_v20 }
 0x47c   : > { %5547 = vpow2.f32 %v1493_v18 }
 0x47d   : > { %v1491_v24 = vmul.f32 1.442695, %v1487_v23 }
 0x47f   : > { %5549 = vpow2.f32 %v1491_v24 }
 0x485   : > { %v5546_v25 = vpop.eup %5545 }
 0x486   : > { %v1495_v26 = vsel %vm1476_vm4, %v5546_v25, 0.0  ;;  %v5548_v28 = vpop.eup %5547 }
 0x487   : > { %1496 = vadd.xlane.f32.xlu1 %v1495_v26  ;;  %v1501_v32 = vsel %vm1476_vm4, %v5548_v28, 0.0 }
 0x489   : > { %v5550_v30 = vpop.eup %5549 }
 0x48a   : > { %v1498_v37 = vsel %vm1476_vm4, %v5550_v30, 0.0 }
 0x48b   : > { %1502 = vadd.xlane.f32.xlu1 %v1501_v32  ;;  %1499 = vadd.xlane.f32.xlu0 %v1498_v37 }
 0x49c   : > { %1585 = vrot.lane.b32.xlu1 %v6663_v21, %s6088_s13 }
 0x4a0   : > { %1577 = vrot.lane.b32.xlu1 %v6655_v9, %s6088_s13 }
 0x4a1   : > { %1583 = vrot.lane.b32.xlu0 %v6653_v8, %s6088_s13 }
 0x4a4   : > { %1579 = vrot.lane.b32.xlu1 %v6665_v22, %s6088_s13 }
 0x514   : > { %v1497_v48 = vpop.xlane.xlu1 %1496 }
 0x515   : > { %5551 = vrcp.f32 %v1497_v48 }
 0x518   : > { %v1503_v49 = vpop.xlane.xlu1 %1502  ;;  %v1500_v50 = vpop.xlane.xlu0 %1499 }
 0x519   : > { %5553 = vrcp.f32 %v1503_v49 }
 0x51a   : > { %5555 = vrcp.f32 %v1500_v50 }
 0x51c   : > { %v1584_v51 = vpop.permute.xlu0 %1583  ;;  %v1586_v55 = vpop.permute.xlu1 %1585 }
 0x51d   : > { %5275 = vmatprep.subr.msk.bf16.mxu0 %vm1412_vm1, %v1584_v51  ;;  %v1594_v3 = vsel %vm1412_vm1, %v1584_v51, 0  ;;  %v1597_v4 = vsel %vm1412_vm1, %v1586_v55, 0 }
 0x51f   : > { %v5552_v52 = vpop.eup %5551 }
 0x520   : > { %v1507_v62 = vmul.f32 %v5552_v52, %v5546_v25  ;;  %v1578_v2 = vpop.permute.xlu1 %1577 }
 0x523   : > { %v5554_v53 = vpop.eup %5553 }
 0x524   : > { %v5556_v54 = vpop.eup %5555  ;;  %v1509_v60 = vmul.f32 %v5554_v53, %v5548_v28  ;;  %v1580_v6 = vpop.permute.xlu1 %1579 }
 0x525   : > { %v1508_v63 = vmul.f32 %v5556_v54, %v5550_v30 }
 0x526   : > { %v1511_v0 = vpack.c.bf16 %v1509_v60, %v1509_v60 }
 0x527   : > { %v1510_v1 = vpack.c.bf16 %v1508_v63, %v1507_v62 }
 0x529   : > { %5088 = vmatprep.mubr.msk.bf16.mxu0 %vm1476_vm4, %v1510_v1 }
 0x52a   : > { %5089 = vmatmul.mubr.msk.bf16.vlgmr.msra.gmra.mrb[16].mxu0 %vm1476_vm4, %v1511_v0 }
 0x52b   : > { %5093 = vmatpush3.bf16.xpose.msra.mxu0 %v1594_v3  ;;  %5096 = vmatprep.mubr.msk.bf16.mxu0 %vm1412_vm1, %v1578_v2 }
 0x52c   : > { %5276 = vmatprep.subr.msk.bf16.mxu0 %vm1412_vm1, %v1586_v55 }
 0x533   : > { %5095 = vmatpush3.bf16.xpose.msra.mxu0 %v1597_v4 }
 0x53a   : > { %5097 = vmatmul.mubr.msk.bf16.vlgmr.msra.gmra.mrb[20].mxu0 %vm1412_vm1, %v1580_v6 }
 0x5fd   : > { %v5090_v7 = vpop.f32.mrb[16].mxu0 }
 0x5fe   : > { %v1571_v10 = vpack.c.bf16 %v5090_v7, %v5090_v7  ;;  %v1556_v11 = vpop.f32.mrb[17].mxu0 }
 0x5ff   : > { %v5091_v12 = vpop.f32.mrb[18].mxu0 }
 0x600   : > { %1574 = vst.msk [vmem:[#allocation3 + $0x8] sm:$0xf] %vm1573_vm6, %v1571_v10  ;;  %v1559_v13 = vpop.f32.mrb[19].mxu0 }
 0x601   : > { %v1570_v58 = vpack.c.bf16 %v1559_v13, %v1556_v11 }
 0x603   : > { %1572 = vst.msk [vmem:[#allocation3] sm:$0xff] %vm1412_vm1, %v1570_v58 }
 0x60d   : > { %v5098_v15 = vpop.f32.mrb[20].mxu0 }
 0x60e   : > { %v1633_v16 = vpop.f32.mrb[21].mxu0  ;;  %v1649_v23 = vsel %vm1411_vm3, %v5098_v15, -1e+30 }
 0x60f   : > { %v1647_v17 = vsel %vm1411_vm3, %v1633_v16, -1e+30  ;;  %v5099_v18 = vpop.f32.mrb[22].mxu0  ;;  %v1656_v26 = vsel %vm1476_vm4, %v1649_v23, -inf }
 0x610   : > { %v1636_v19 = vpop.f32.mrb[23].mxu0  ;;  %v1650_v20 = vsel %vm1476_vm4, %v1647_v17, -inf }
 0x611   : > { %v1648_v24 = vsel %vm1411_vm3, %v1636_v19, -1e+30  ;;  %1651 = vmax.xlane.f32.xlu0 %v1650_v20 }
 0x612   : > { %v1653_v25 = vsel %vm1476_vm4, %v1648_v24, -inf }
 0x613   : > { %1654 = vmax.xlane.f32.xlu1 %v1653_v25 }
 0x615   : > { %1657 = vmax.xlane.f32.xlu0 %v1656_v26 }
 0x69e   : > { %v1652_v28 = vpop.xlane.xlu0 %1651 }
 0x69f   : > { %v1659_v30 = vsub.f32 %v1647_v17, %v1652_v28 }
 0x6a0   : > { %v1655_v32 = vpop.xlane.xlu1 %1654 }
 0x6a1   : > { %v1662_v37 = vmul.f32 1.442695, %v1659_v30  ;;  %v1660_v39 = vsub.f32 %v1648_v24, %v1655_v32 }
 0x6a2   : > { %v1658_v41 = vpop.xlane.xlu0 %1657 }
 0x6a3   : > { %5557 = vpow2.f32 %v1662_v37  ;;  %v1664_v42 = vmul.f32 1.442695, %v1660_v39  ;;  %v1661_v44 = vsub.f32 %v1649_v23, %v1658_v41 }
 0x6a5   : > { %5559 = vpow2.f32 %v1664_v42  ;;  %v1666_v47 = vmul.f32 1.442695, %v1661_v44 }
 0x6a7   : > { %5561 = vpow2.f32 %v1666_v47 }
 0x6ad   : > { %v5558_v48 = vpop.eup %5557 }
 0x6ae   : > { %v1668_v49 = vsel %vm1476_vm4, %v5558_v48, 0.0 }
 0x6af   : > { %v5560_v50 = vpop.eup %5559  ;;  %1669 = vadd.xlane.f32.xlu0 %v1668_v49 }
 0x6b0   : > { %v1671_v53 = vsel %vm1476_vm4, %v5560_v50, 0.0 }
 0x6b1   : > { %v5562_v51 = vpop.eup %5561 }
 0x6b2   : > { %v1674_v52 = vsel %vm1476_vm4, %v5562_v51, 0.0 }
 0x6b3   : > { %1675 = vadd.xlane.f32.xlu1 %v1674_v52  ;;  %1672 = vadd.xlane.f32.xlu0 %v1671_v53 }
 0x6c4   : > { %1689 = vrot.lane.b32.xlu1 %v6731_v14, %s6088_s13 }
 0x6c8   : > { %1767 = vrot.lane.b32.xlu1 %v6653_v8, %s6089_s5 }
 0x6c9   : > { %1687 = vrot.lane.b32.xlu0 %v6727_v5, %s6088_s13 }
 0x6cc   : > { %1769 = vrot.lane.b32.xlu1 %v6663_v21, %s6089_s5 }
 0x6cd   : > { %1763 = vrot.lane.b32.xlu0 %v6655_v9, %s6089_s5 }
 0x6d0   : > { %1765 = vrot.lane.b32.xlu1 %v6665_v22, %s6089_s5 }
 0x73c   : > { %v1670_v54 = vpop.xlane.xlu0 %1669 }
 0x73d   : > { %5563 = vrcp.f32 %v1670_v54 }
 0x740   : > { %v1673_v55 = vpop.xlane.xlu0 %1672  ;;  %v1676_v60 = vpop.xlane.xlu1 %1675 }
 0x741   : > { %5565 = vrcp.f32 %v1673_v55 }
 0x742   : > { %5567 = vrcp.f32 %v1676_v60 }
 0x744   : > { %v1688_v62 = vpop.permute.xlu0 %1687  ;;  %v1690_v63 = vpop.permute.xlu1 %1689 }
 0x745   : > { %5100 = vmatprep.subr.bf16.mxu1 %v1688_v62  ;;  %v1699_v1 = vsel %vm1518_vm5, %v1690_v63, 0 }
 0x746   : > { %5101 = vmatpush3.bf16.msra.mxu1 %v1688_v62 }
 0x747   : > { %5277 = vmatprep.subr.msk.bf16.mxu1 %vm1518_vm5, %v1690_v63  ;;  %v5564_v0 = vpop.eup %5563 }
 0x748   : > { %v1768_v2 = vpop.permute.xlu1 %1767  ;;  %v1680_v6 = vmul.f32 %v5564_v0, %v5558_v48  ;;  %v1764_v13 = vpop.permute.xlu0 %1763 }
 0x749   : > { %v1778_v58 = vsel %vm1412_vm1, %v1768_v2, 0 }
 0x74a   : > { %5103 = vmatpush3.bf16.msra.mxu1 %v1699_v1 }
 0x74b   : > { %v5566_v3 = vpop.eup %5565  ;;  %5278 = vmatprep.subr.msk.bf16.mxu1 %vm1412_vm1, %v1768_v2 }
 0x74c   : > { %v5568_v4 = vpop.eup %5567  ;;  %v1681_v7 = vmul.f32 %v5566_v3, %v5560_v50  ;;  %v1770_v15 = vpop.permute.xlu1 %1769 }
 0x74d   : > { %v1682_v10 = vmul.f32 %v5568_v4, %v5562_v51  ;;  %v1781_v16 = vsel %vm1412_vm1, %v1770_v15, 0 }
 0x74e   : > { %v1683_v11 = vpack.c.bf16 %v1681_v7, %v1680_v6 }
 0x74f   : > { %v1684_v12 = vpack.c.bf16 %v1682_v10, %v1682_v10 }
 0x750   : > { %5104 = vmatprep.mubr.msk.bf16.mxu1 %vm1476_vm4, %v1683_v11  ;;  %v1766_v17 = vpop.permute.xlu1 %1765 }
 0x751   : > { %5105 = vmatmul.mubr.msk.bf16.vlgmr.msra.gmra.mrb[12].mxu1 %vm1476_vm4, %v1684_v12 }
 0x752   : > { %5112 = vmatprep.mubr.msk.bf16.mxu1 %vm1412_vm1, %v1764_v13 }
 0x753   : > { %5109 = vmatpush3.bf16.xpose.msra.mxu1 %v1778_v58 }
 0x754   : > { %5279 = vmatprep.subr.msk.bf16.mxu1 %vm1412_vm1, %v1770_v15 }
 0x75b   : > { %5111 = vmatpush3.bf16.xpose.msra.mxu1 %v1781_v16 }
 0x762   : > { %5113 = vmatmul.mubr.msk.bf16.vlgmr.msra.gmra.mrb[16].mxu1 %vm1412_vm1, %v1766_v17 }
 0x824   : > { %v6797_v18 = vpop.f32.mrb[12].mxu1 }
 0x825   : > { %v6799_v19 = vpop.f32.mrb[13].mxu1 }
 0x826   : > { %v5107_v20 = vpop.f32.mrb[14].mxu1 }
 0x827   : > { %v6801_v23 = vpop.f32.mrb[15].mxu1 }
 0x828   : > { %v1749_v24 = vpack.c.bf16 %v6801_v23, %v6799_v19 }
 0x835   : > { %v5114_v25 = vpop.f32.mrb[16].mxu1 }
 0x836   : > { %v1817_v26 = vpop.f32.mrb[17].mxu1  ;;  %v1833_v39 = vsel %vm1411_vm3, %v5114_v25, -1e+30 }
 0x837   : > { %v1831_v28 = vsel %vm1411_vm3, %v1817_v26, -1e+30  ;;  %v5115_v30 = vpop.f32.mrb[18].mxu1  ;;  %v1840_v44 = vsel %vm1476_vm4, %v1833_v39, -inf }
 0x838   : > { %v1820_v32 = vpop.f32.mrb[19].mxu1  ;;  %v1834_v37 = vsel %vm1476_vm4, %v1831_v28, -inf  ;;  %v6840_v30 = vrot.slane %v1408_v45, 4 }
 0x839   : > { %v1832_v41 = vsel %vm1411_vm3, %v1820_v32, -1e+30  ;;  %1835 = vmax.xlane.f32.xlu0 %v1834_v37  ;;  %v2235_v32 = vrot.slane %v6731_v14, 4 }
 0x83a   : > { %v1837_v42 = vsel %vm1476_vm4, %v1832_v41, -inf  ;;  %v2246_v40 = vsel %vm1518_vm5, %v6840_v30, 0 }
 0x83b   : > { %1838 = vmax.xlane.f32.xlu1 %v1837_v42 }
 0x83d   : > { %1841 = vmax.xlane.f32.xlu0 %v1840_v44 }
 0x8c6   : > { %v1836_v47 = vpop.xlane.xlu0 %1835 }
 0x8c7   : > { %v1843_v48 = vsub.f32 %v1831_v28, %v1836_v47 }
 0x8c8   : > { %v1839_v49 = vpop.xlane.xlu1 %1838 }
 0x8c9   : > { %v1846_v50 = vmul.f32 1.442695, %v1843_v48  ;;  %v1844_v51 = vsub.f32 %v1832_v41, %v1839_v49 }
 0x8ca   : > { %v1842_v52 = vpop.xlane.xlu0 %1841 }
 0x8cb   : > { %5569 = vpow2.f32 %v1846_v50  ;;  %v1848_v53 = vmul.f32 1.442695, %v1844_v51  ;;  %v1845_v54 = vsub.f32 %v1833_v39, %v1842_v52  ;;  %v6846_v39 = vsel %vm1518_vm5, %v2235_v32, %v6840_v30 }
 0x8cd   : > { %5571 = vpow2.f32 %v1848_v53  ;;  %v1850_v55 = vmul.f32 1.442695, %v1845_v54 }
 0x8cf   : > { %5573 = vpow2.f32 %v1850_v55 }
 0x8d5   : > { %v5570_v60 = vpop.eup %5569 }
 0x8d6   : > { %v1852_v62 = vsel %vm1476_vm4, %v5570_v60, 0.0 }
 0x8d7   : > { %v5572_v63 = vpop.eup %5571  ;;  %1853 = vadd.xlane.f32.xlu0 %v1852_v62 }
 0x8d8   : > { %v1855_v2 = vsel %vm1476_vm4, %v5572_v63, 0.0 }
 0x8d9   : > { %v5574_v0 = vpop.eup %5573 }
 0x8da   : > { %v1858_v1 = vsel %vm1476_vm4, %v5574_v0, 0.0 }
 0x8db   : > { %1859 = vadd.xlane.f32.xlu1 %v1858_v1  ;;  %1856 = vadd.xlane.f32.xlu0 %v1855_v2 }
 0x8ec   : > { %1871 = vrot.lane.b32.xlu1 %v6731_v14, %s6089_s5 }
 0x8f0   : > { %1949 = vrot.lane.b32.xlu1 %v6653_v8, %s6090_s7 }
 0x8f1   : > { %1869 = vrot.lane.b32.xlu0 %v6727_v5, %s6089_s5 }
 0x8f4   : > { %1951 = vrot.lane.b32.xlu1 %v6663_v21, %s6090_s7 }
 0x8f5   : > { %1945 = vrot.lane.b32.xlu0 %v6655_v9, %s6090_s7 }
 0x8f8   : > { %1947 = vrot.lane.b32.xlu1 %v6665_v22, %s6090_s7 }
 0x964   : > { %v1854_v3 = vpop.xlane.xlu0 %1853 }
 0x965   : > { %5575 = vrcp.f32 %v1854_v3 }
 0x968   : > { %v1857_v4 = vpop.xlane.xlu0 %1856  ;;  %v1860_v6 = vpop.xlane.xlu1 %1859 }
 0x969   : > { %5577 = vrcp.f32 %v1857_v4 }
 0x96a   : > { %5579 = vrcp.f32 %v1860_v6 }
 0x96c   : > { %v1870_v7 = vpop.permute.xlu0 %1869  ;;  %v1872_v8 = vpop.permute.xlu1 %1871 }
 0x96d   : > { %5116 = vmatprep.subr.bf16.mxu0 %v1870_v7  ;;  %v1881_v11 = vsel %vm1518_vm5, %v1872_v8, 0 }
 0x96e   : > { %5117 = vmatpush3.bf16.msra.mxu0 %v1870_v7 }
 0x96f   : > { %5280 = vmatprep.subr.msk.bf16.mxu0 %vm1518_vm5, %v1872_v8  ;;  %v5576_v10 = vpop.eup %5575 }
 0x970   : > { %v1950_v12 = vpop.permute.xlu1 %1949  ;;  %v1864_v58 = vmul.f32 %v5576_v10, %v5570_v60  ;;  %v1946_v25 = vpop.permute.xlu0 %1945 }
 0x971   : > { %v1960_v26 = vsel %vm1412_vm1, %v1950_v12, 0 }
 0x972   : > { %5119 = vmatpush3.bf16.msra.mxu0 %v1881_v11 }
 0x973   : > { %v5578_v9 = vpop.eup %5577  ;;  %5281 = vmatprep.subr.msk.bf16.mxu0 %vm1412_vm1, %v1950_v12 }
 0x974   : > { %v5580_v13 = vpop.eup %5579  ;;  %v1865_v15 = vmul.f32 %v5578_v9, %v5572_v63  ;;  %v1952_v28 = vpop.permute.xlu1 %1951 }
 0x975   : > { %v1866_v16 = vmul.f32 %v5580_v13, %v5574_v0  ;;  %v1963_v37 = vsel %vm1412_vm1, %v1952_v28, 0 }
 0x976   : > { %v1867_v17 = vpack.c.bf16 %v1865_v15, %v1864_v58 }
 0x977   : > { %v1868_v20 = vpack.c.bf16 %v1866_v16, %v1866_v16 }
 0x978   : > { %5120 = vmatprep.mubr.msk.bf16.mxu0 %vm1476_vm4, %v1867_v17  ;;  %v1948_v41 = vpop.permute.xlu1 %1947 }
 0x979   : > { %5121 = vmatmul.mubr.msk.bf16.vlgmr.msra.gmra.mrb[24].mxu0 %vm1476_vm4, %v1868_v20 }
 0x97a   : > { %5128 = vmatprep.mubr.msk.bf16.mxu0 %vm1412_vm1, %v1946_v25  ;;  %v6882_v25 = vrot.slane %v1405_v35, 4 }
 0x97b   : > { %5125 = vmatpush3.bf16.xpose.msra.mxu0 %v1960_v26 }
 0x97c   : > { %5282 = vmatprep.subr.msk.bf16.mxu0 %vm1412_vm1, %v1952_v28 }
 0x983   : > { %5127 = vmatpush3.bf16.xpose.msra.mxu0 %v1963_v37 }
 0x984   : > { %5148 = vmatprep.subr.bf16.mxu0 %v6846_v39 }
 0x98a   : > { %5129 = vmatmul.mubr.msk.bf16.vlgmr.msra.gmra.mrb[28].mxu0 %vm1412_vm1, %v1948_v41  ;;  %v6896_v41 = vrot.slane %v1402_v36, 4 }
 0x98b   : > { %5149 = vmatpush3.bf16.msra.mxu0 %v6846_v39 }
 0x98c   : > { %5286 = vmatprep.subr.msk.bf16.mxu0 %vm1518_vm5, %v6840_v30 }
 0x98f   : > { %5151 = vmatpush3.bf16.msra.mxu0 %v2246_v40 }
 0xa4c   : > { %v6855_v43 = vpop.f32.mrb[24].mxu0 }
 0xa4d   : > { %v6857_v45 = vpop.f32.mrb[25].mxu0  ;;  %v1932_v19 = vpack.c.bf16 %v6855_v43, %v6855_v43 }
 0xa4e   : > { %v5123_v42 = vpop.f32.mrb[26].mxu0 }
 0xa4f   : > { %v6859_v44 = vpop.f32.mrb[27].mxu0 }
 0xa50   : > { %v1931_v47 = vpack.c.bf16 %v6859_v44, %v6857_v45 }
 0xa5d   : > { %v5130_v48 = vpop.f32.mrb[28].mxu0 }
 0xa5e   : > { %v1999_v49 = vpop.f32.mrb[29].mxu0  ;;  %v2015_v54 = vsel %vm1411_vm3, %v5130_v48, -1e+30  ;;  %v2129_v48 = vrot.slane %v6665_v22, 4  ;;  %v2146_v22 = vsel %vm1412_vm1, %v6882_v25, 0 }
 0xa5f   : > { %v2013_v50 = vsel %vm1411_vm3, %v1999_v49, -1e+30  ;;  %v5131_v51 = vpop.f32.mrb[30].mxu0  ;;  %v2022_v62 = vsel %vm1476_vm4, %v2015_v54, -inf }
 0xa60   : > { %v2002_v52 = vpop.f32.mrb[31].mxu0  ;;  %v2016_v53 = vsel %vm1476_vm4, %v2013_v50, -inf  ;;  %v6903_v49 = vsel %vm1518_vm5, %v2129_v48, %v6896_v41 }
 0xa61   : > { %v2014_v55 = vsel %vm1411_vm3, %v2002_v52, -1e+30  ;;  %2017 = vmax.xlane.f32.xlu0 %v2016_v53 }
 0xa62   : > { %v2019_v60 = vsel %vm1476_vm4, %v2014_v55, -inf }
 0xa63   : > { %2020 = vmax.xlane.f32.xlu1 %v2019_v60 }
 0xa65   : > { %2023 = vmax.xlane.f32.xlu0 %v2022_v62 }
 0xaee   : > { %v2018_v63 = vpop.xlane.xlu0 %2017 }
 0xaef   : > { %v2025_v0 = vsub.f32 %v2013_v50, %v2018_v63 }
 0xaf0   : > { %v2021_v1 = vpop.xlane.xlu1 %2020 }
 0xaf1   : > { %v2028_v2 = vmul.f32 1.442695, %v2025_v0  ;;  %v2026_v3 = vsub.f32 %v2014_v55, %v2021_v1 }
 0xaf2   : > { %v2024_v4 = vpop.xlane.xlu0 %2023 }
 0xaf3   : > { %5581 = vpow2.f32 %v2028_v2  ;;  %v2030_v6 = vmul.f32 1.442695, %v2026_v3  ;;  %v2027_v7 = vsub.f32 %v2015_v54, %v2024_v4 }
 0xaf5   : > { %5583 = vpow2.f32 %v2030_v6  ;;  %v2032_v8 = vmul.f32 1.442695, %v2027_v7 }
 0xaf7   : > { %5585 = vpow2.f32 %v2032_v8 }
 0xafd   : > { %v5582_v10 = vpop.eup %5581 }
 0xafe   : > { %v2034_v11 = vsel %vm1476_vm4, %v5582_v10, 0.0 }
 0xaff   : > { %v5584_v12 = vpop.eup %5583  ;;  %2035 = vadd.xlane.f32.xlu0 %v2034_v11 }
 0xb00   : > { %v2037_v58 = vsel %vm1476_vm4, %v5584_v12, 0.0 }
 0xb01   : > { %v5586_v9 = vpop.eup %5585 }
 0xb02   : > { %v2040_v13 = vsel %vm1476_vm4, %v5586_v9, 0.0 }
 0xb03   : > { %2041 = vadd.xlane.f32.xlu1 %v2040_v13  ;;  %2038 = vadd.xlane.f32.xlu0 %v2037_v58 }
 0xb14   : > { %2053 = vrot.lane.b32.xlu1 %v6731_v14, %s6090_s7  ;;  %v2133_v14 = vrot.slane %v6663_v21, 4 }
 0xb16   : > { %v6889_v32 = vsel %vm1518_vm5, %v2133_v14, %v6882_v25 }
 0xb17   : > { %v2143_v29 = vsel %vm1412_vm1, %v6889_v32, 0 }
 0xb19   : > { %2051 = vrot.lane.b32.xlu0 %v6727_v5, %s6090_s7 }
 0xb8c   : > { %v2036_v15 = vpop.xlane.xlu0 %2035 }
 0xb8d   : > { %5587 = vrcp.f32 %v2036_v15 }
 0xb90   : > { %v2039_v16 = vpop.xlane.xlu0 %2038  ;;  %v2042_v17 = vpop.xlane.xlu1 %2041 }
 0xb91   : > { %5589 = vrcp.f32 %v2039_v16 }
 0xb92   : > { %5591 = vrcp.f32 %v2042_v17 }
 0xb94   : > { %v2052_v20 = vpop.permute.xlu0 %2051  ;;  %v2054_v26 = vpop.permute.xlu1 %2053 }
 0xb95   : > { %5132 = vmatprep.subr.bf16.mxu1 %v2052_v20  ;;  %v2063_v28 = vsel %vm1518_vm5, %v2054_v26, 0 }
 0xb96   : > { %5133 = vmatpush3.bf16.msra.mxu1 %v2052_v20 }
 0xb97   : > { %5283 = vmatprep.subr.msk.bf16.mxu1 %vm1518_vm5, %v2054_v26  ;;  %v5588_v5 = vpop.eup %5587 }
 0xb98   : > { %v2046_v33 = vmul.f32 %v5588_v5, %v5582_v10 }
 0xb9a   : > { %5135 = vmatpush3.bf16.msra.mxu1 %v2063_v28 }
 0xb9b   : > { %v5590_v37 = vpop.eup %5589  ;;  %5284 = vmatprep.subr.msk.bf16.mxu1 %vm1412_vm1, %v6889_v32 }
 0xb9c   : > { %v5592_v27 = vpop.eup %5591  ;;  %v2047_v35 = vmul.f32 %v5590_v37, %v5584_v12 }
 0xb9d   : > { %v2048_v21 = vmul.f32 %v5592_v27, %v5586_v9 }
 0xb9e   : > { %v2049_v40 = vpack.c.bf16 %v2047_v35, %v2046_v33 }
 0xb9f   : > { %v2050_v42 = vpack.c.bf16 %v2048_v21, %v2048_v21 }
 0xba0   : > { %5136 = vmatprep.mubr.msk.bf16.mxu1 %vm1476_vm4, %v2049_v40 }
 0xba1   : > { %5137 = vmatmul.mubr.msk.bf16.vlgmr.msra.gmra.mrb[20].mxu1 %vm1476_vm4, %v2050_v42 }
 0xba2   : > { %5144 = vmatprep.mubr.msk.bf16.mxu1 %vm1412_vm1, %v6903_v49 }
 0xba3   : > { %5141 = vmatpush3.bf16.xpose.msra.mxu1 %v2143_v29 }
 0xba4   : > { %5285 = vmatprep.subr.msk.bf16.mxu1 %vm1412_vm1, %v6882_v25 }
 0xbab   : > { %5143 = vmatpush3.bf16.xpose.msra.mxu1 %v2146_v22 }
 0xbb2   : > { %5145 = vmatmul.mubr.msk.bf16.vlgmr.msra.gmra.mrb[24].mxu1 %vm1412_vm1, %v6896_v41 }
 0xc74   : > { %v6915_v34 = vpop.f32.mrb[20].mxu1 }
 0xc75   : > { %v6917_v36 = vpop.f32.mrb[21].mxu1 }
 0xc76   : > { %v5139_v50 = vpop.f32.mrb[22].mxu1 }
 0xc77   : > { %v6919_v51 = vpop.f32.mrb[23].mxu1 }
 0xc78   : > { %v2113_v52 = vpack.c.bf16 %v6919_v51, %v6917_v36 }
 0xc85   : > { %v5146_v53 = vpop.f32.mrb[24].mxu1 }
 0xc86   : > { %v2182_v54 = vpop.f32.mrb[25].mxu1  ;;  %v2198_v2 = vsel %vm1411_vm3, %v5146_v53, -1e+30 }
 0xc87   : > { %v2196_v55 = vsel %vm1411_vm3, %v2182_v54, -1e+30  ;;  %v5147_v60 = vpop.f32.mrb[26].mxu1  ;;  %v2205_v3 = vsel %vm1476_vm4, %v2198_v2, -inf }
 0xc88   : > { %v2185_v62 = vpop.f32.mrb[27].mxu1  ;;  %v2199_v63 = vsel %vm1476_vm4, %v2196_v55, -inf }
 0xc89   : > { %v2197_v0 = vsel %vm1411_vm3, %v2185_v62, -1e+30  ;;  %2200 = vmax.xlane.f32.xlu1 %v2199_v63 }
 0xc8a   : > { %v2202_v1 = vsel %vm1476_vm4, %v2197_v0, -inf }
 0xc8b   : > { %2203 = vmax.xlane.f32.xlu0 %v2202_v1 }
 0xc8f   : > { %2206 = vmax.xlane.f32.xlu0 %v2205_v3 }
 0xd16   : > { %v2201_v4 = vpop.xlane.xlu1 %2200 }
 0xd17   : > { %v2208_v6 = vsub.f32 %v2196_v55, %v2201_v4 }
 0xd18   : > { %v2204_v7 = vpop.xlane.xlu0 %2203 }
 0xd19   : > { %v2211_v8 = vmul.f32 1.442695, %v2208_v6  ;;  %v2209_v10 = vsub.f32 %v2197_v0, %v2204_v7 }
 0xd1b   : > { %5593 = vpow2.f32 %v2211_v8  ;;  %v2213_v11 = vmul.f32 1.442695, %v2209_v10 }
 0xd1c   : > { %v2207_v12 = vpop.xlane.xlu0 %2206 }
 0xd1d   : > { %5595 = vpow2.f32 %v2213_v11  ;;  %v2210_v9 = vsub.f32 %v2198_v2, %v2207_v12 }
 0xd1f   : > { %v2215_v13 = vmul.f32 1.442695, %v2210_v9 }
 0xd21   : > { %5597 = vpow2.f32 %v2215_v13 }
 0xd25   : > { %v5594_v58 = vpop.eup %5593 }
 0xd26   : > { %v2217_v15 = vsel %vm1476_vm4, %v5594_v58, 0.0 }
 0xd27   : > { %v5596_v16 = vpop.eup %5595  ;;  %2218 = vadd.xlane.f32.xlu1 %v2217_v15 }
 0xd28   : > { %v2220_v17 = vsel %vm1476_vm4, %v5596_v16, 0.0 }
 0xd29   : > { %2221 = vadd.xlane.f32.xlu0 %v2220_v17 }
 0xd2b   : > { %v5598_v20 = vpop.eup %5597 }
 0xd2c   : > { %v2223_v26 = vsel %vm1476_vm4, %v5598_v20, 0.0 }
 0xd2d   : > { %2224 = vadd.xlane.f32.xlu1 %v2223_v26 }
 0xd3e   : > { %2314 = vrot.lane.b32.xlu1 %v6882_v25, %s6088_s13 }
 0xd3f   : > { %2312 = vrot.lane.b32.xlu0 %v6889_v32, %s6088_s13 }
 0xd42   : > { %2308 = vrot.lane.b32.xlu1 %v6903_v49, %s6088_s13 }
 0xd46   : > { %2310 = vrot.lane.b32.xlu1 %v6896_v41, %s6088_s13 }
 0xdb4   : > { %v2219_v14 = vpop.xlane.xlu1 %2218 }
 0xdb5   : > { %5599 = vrcp.f32 %v2219_v14 }
 0xdb6   : > { %v2222_v5 = vpop.xlane.xlu0 %2221 }
 0xdb7   : > { %5601 = vrcp.f32 %v2222_v5 }
 0xdba   : > { %v2225_v28 = vpop.xlane.xlu1 %2224  ;;  %v2313_v37 = vpop.permute.xlu0 %2312 }
 0xdbb   : > { %5603 = vrcp.f32 %v2225_v28  ;;  %5287 = vmatprep.subr.msk.bf16.mxu0 %vm1412_vm1, %v2313_v37  ;;  %v2323_v50 = vsel %vm1412_vm1, %v2313_v37, 0 }
 0xdbe   : > { %v2315_v40 = vpop.permute.xlu1 %2314 }
 0xdbf   : > { %v5600_v27 = vpop.eup %5599  ;;  %v2326_v54 = vsel %vm1412_vm1, %v2315_v40, 0 }
 0xdc0   : > { %v2229_v35 = vmul.f32 %v5600_v27, %v5594_v58 }
 0xdc1   : > { %v5602_v33 = vpop.eup %5601 }
 0xdc2   : > { %v2230_v21 = vmul.f32 %v5602_v33, %v5596_v16  ;;  %v2309_v53 = vpop.permute.xlu1 %2308 }
 0xdc4   : > { %v2232_v42 = vpack.c.bf16 %v2230_v21, %v2229_v35 }
 0xdc5   : > { %v5604_v48 = vpop.eup %5603 }
 0xdc6   : > { %v2231_v29 = vmul.f32 %v5604_v48, %v5598_v20  ;;  %5152 = vmatprep.mubr.msk.bf16.mxu0 %vm1476_vm4, %v2232_v42  ;;  %v2311_v55 = vpop.permute.xlu1 %2310 }
 0xdc8   : > { %v2233_v22 = vpack.c.bf16 %v2231_v29, %v2231_v29 }
 0xdca   : > { %5153 = vmatmul.mubr.msk.bf16.vlgmr.msra.gmra.mrb[32].mxu0 %vm1476_vm4, %v2233_v22 }
 0xdcb   : > { %5157 = vmatpush3.bf16.xpose.msra.mxu0 %v2323_v50  ;;  %5160 = vmatprep.mubr.msk.bf16.mxu0 %vm1412_vm1, %v2309_v53 }
 0xdcc   : > { %5288 = vmatprep.subr.msk.bf16.mxu0 %vm1412_vm1, %v2315_v40 }
 0xdd3   : > { %5159 = vmatpush3.bf16.xpose.msra.mxu0 %v2326_v54 }
 0xdda   : > { %5161 = vmatmul.mubr.msk.bf16.vlgmr.msra.gmra.mrb[36].mxu0 %vm1412_vm1, %v2311_v55 }
 0xe9d   : > { %v5154_v60 = vpop.f32.mrb[32].mxu0 }
 0xe9e   : > { %v2282_v62 = vpop.f32.mrb[33].mxu0  ;;  %v2297_v63 = vpack.c.bf16 %v5154_v60, %v5154_v60 }
 0xe9f   : > { %v5155_v0 = vpop.f32.mrb[34].mxu0 }
 0xea0   : > { %v2285_v1 = vpop.f32.mrb[35].mxu0  ;;  %v2301_v3 = vrot.slane %v2297_v63, 4 }
 0xea1   : > { %v2296_v2 = vpack.c.bf16 %v2285_v1, %v2282_v62 }
 0xea3   : > { %v2300_v4 = vrot.slane %v2296_v2, 4 }
 0xea5   : > { %2306 = vst.msk [vmem:[#allocation3 + $0x8] sm:$0xf0] %vm2305_vm7, %v2300_v4  ;;  %v2302_v6 = vsel %vm1518_vm5, %v2300_v4, %v2301_v3 }
 0xea6   : > { %2307 = vst.msk [vmem:[#allocation3 + $0x10] sm:$0xff] %vm1412_vm1, %v2302_v6 }
 0xead   : > { %v5162_v7 = vpop.f32.mrb[36].mxu0 }
 0xeae   : > { %v2362_v8 = vpop.f32.mrb[37].mxu0  ;;  %v2378_v13 = vsel %vm1411_vm3, %v5162_v7, -1e+30 }
 0xeaf   : > { %v2376_v10 = vsel %vm1411_vm3, %v2362_v8, -1e+30  ;;  %v5163_v11 = vpop.f32.mrb[38].mxu0  ;;  %v2385_v16 = vsel %vm1476_vm4, %v2378_v13, -inf }
 0xeb0   : > { %v2365_v12 = vpop.f32.mrb[39].mxu0  ;;  %v2379_v9 = vsel %vm1476_vm4, %v2376_v10, -inf }
 0xeb1   : > { %v2377_v58 = vsel %vm1411_vm3, %v2365_v12, -1e+30  ;;  %2380 = vmax.xlane.f32.xlu0 %v2379_v9 }
 0xeb2   : > { %v2382_v15 = vsel %vm1476_vm4, %v2377_v58, -inf }
 0xeb3   : > { %2383 = vmax.xlane.f32.xlu1 %v2382_v15 }
 0xeb5   : > { %2386 = vmax.xlane.f32.xlu0 %v2385_v16 }
 0xf3e   : > { %v2381_v17 = vpop.xlane.xlu0 %2380 }
 0xf3f   : > { %v2388_v20 = vsub.f32 %v2376_v10, %v2381_v17 }
 0xf40   : > { %v2384_v26 = vpop.xlane.xlu1 %2383 }
 0xf41   : > { %v2391_v14 = vmul.f32 1.442695, %v2388_v20  ;;  %v2389_v5 = vsub.f32 %v2377_v58, %v2384_v26 }
 0xf42   : > { %v2387_v28 = vpop.xlane.xlu0 %2386 }
 0xf43   : > { %5605 = vpow2.f32 %v2391_v14  ;;  %v2393_v37 = vmul.f32 1.442695, %v2389_v5  ;;  %v2390_v27 = vsub.f32 %v2378_v13, %v2387_v28 }
 0xf45   : > { %5607 = vpow2.f32 %v2393_v37  ;;  %v2395_v33 = vmul.f32 1.442695, %v2390_v27 }
 0xf47   : > { %5609 = vpow2.f32 %v2395_v33 }
 0xf4d   : > { %v5606_v35 = vpop.eup %5605 }
 0xf4e   : > { %v2397_v21 = vsel %vm1476_vm4, %v5606_v35, 0.0 }
 0xf4f   : > { %v5608_v40 = vpop.eup %5607  ;;  %2398 = vadd.xlane.f32.xlu0 %v2397_v21 }
 0xf50   : > { %v2400_v29 = vsel %vm1476_vm4, %v5608_v40, 0.0 }
 0xf51   : > { %v5610_v42 = vpop.eup %5609 }
 0xf52   : > { %v2403_v48 = vsel %vm1476_vm4, %v5610_v42, 0.0 }
 0xf53   : > { %2404 = vadd.xlane.f32.xlu1 %v2403_v48  ;;  %2401 = vadd.xlane.f32.xlu0 %v2400_v29 }
 0xf64   : > { %2416 = vrot.lane.b32.xlu1 %v6840_v30, %s6088_s13 }
 0xf68   : > { %2496 = vrot.lane.b32.xlu1 %v6889_v32, %s6089_s5 }
 0xf69   : > { %2414 = vrot.lane.b32.xlu0 %v6846_v39, %s6088_s13 }
 0xf6c   : > { %2498 = vrot.lane.b32.xlu1 %v6882_v25, %s6089_s5 }
 0xf6d   : > { %2492 = vrot.lane.b32.xlu0 %v6903_v49, %s6089_s5 }
 0xf70   : > { %2494 = vrot.lane.b32.xlu1 %v6896_v41, %s6089_s5 }
 0xfdc   : > { %v2399_v22 = vpop.xlane.xlu0 %2398 }
 0xfdd   : > { %5611 = vrcp.f32 %v2399_v22 }
 0xfe0   : > { %v2402_v50 = vpop.xlane.xlu0 %2401  ;;  %v2405_v53 = vpop.xlane.xlu1 %2404 }
 0xfe1   : > { %5613 = vrcp.f32 %v2402_v50 }
 0xfe2   : > { %5615 = vrcp.f32 %v2405_v53 }
 0xfe4   : > { %v2415_v54 = vpop.permute.xlu0 %2414  ;;  %v2417_v55 = vpop.permute.xlu1 %2416 }
 0xfe5   : > { %5164 = vmatprep.subr.bf16.mxu1 %v2415_v54  ;;  %v2426_v62 = vsel %vm1518_vm5, %v2417_v55, 0 }
 0xfe6   : > { %5165 = vmatpush3.bf16.msra.mxu1 %v2415_v54 }
 0xfe7   : > { %5289 = vmatprep.subr.msk.bf16.mxu1 %vm1518_vm5, %v2417_v55  ;;  %v5612_v60 = vpop.eup %5611 }
 0xfe8   : > { %v2497_v63 = vpop.permute.xlu1 %2496  ;;  %v2409_v2 = vmul.f32 %v5612_v60, %v5606_v35  ;;  %v2493_v8 = vpop.permute.xlu0 %2492 }
 0xfe9   : > { %v2507_v10 = vsel %vm1412_vm1, %v2497_v63, 0 }
 0xfea   : > { %5167 = vmatpush3.bf16.msra.mxu1 %v2426_v62 }
 0xfeb   : > { %v5614_v0 = vpop.eup %5613  ;;  %5290 = vmatprep.subr.msk.bf16.mxu1 %vm1412_vm1, %v2497_v63 }
 0xfec   : > { %v5616_v1 = vpop.eup %5615  ;;  %v2410_v3 = vmul.f32 %v5614_v0, %v5608_v40  ;;  %v2499_v11 = vpop.permute.xlu1 %2498 }
 0xfed   : > { %v2411_v4 = vmul.f32 %v5616_v1, %v5610_v42  ;;  %v2510_v12 = vsel %vm1412_vm1, %v2499_v11, 0 }
 0xfee   : > { %v2412_v6 = vpack.c.bf16 %v2410_v3, %v2409_v2 }
 0xfef   : > { %v2413_v7 = vpack.c.bf16 %v2411_v4, %v2411_v4 }
 0xff0   : > { %5168 = vmatprep.mubr.msk.bf16.mxu1 %vm1476_vm4, %v2412_v6  ;;  %v2495_v9 = vpop.permute.xlu1 %2494 }
 0xff1   : > { %5169 = vmatmul.mubr.msk.bf16.vlgmr.msra.gmra.mrb[28].mxu1 %vm1476_vm4, %v2413_v7 }
 0xff2   : > { %5176 = vmatprep.mubr.msk.bf16.mxu1 %vm1412_vm1, %v2493_v8 }
 0xff3   : > { %5173 = vmatpush3.bf16.xpose.msra.mxu1 %v2507_v10 }
 0xff4   : > { %5291 = vmatprep.subr.msk.bf16.mxu1 %vm1412_vm1, %v2499_v11 }
 0xffb   : > { %5175 = vmatpush3.bf16.xpose.msra.mxu1 %v2510_v12 }
0x1002   : > { %5177 = vmatmul.mubr.msk.bf16.vlgmr.msra.gmra.mrb[32].mxu1 %vm1412_vm1, %v2495_v9 }
0x10c4   : > { %v5170_v13 = vpop.f32.mrb[28].mxu1 }
0x10c5   : > { %v2462_v58 = vpop.f32.mrb[29].mxu1  ;;  %v2477_v15 = vpack.c.bf16 %v5170_v13, %v5170_v13 }
0x10c6   : > { %v5171_v16 = vpop.f32.mrb[30].mxu1 }
0x10c7   : > { %v2465_v17 = vpop.f32.mrb[31].mxu1  ;;  %v2481_v26 = vrot.slane %v2477_v15, 4 }
0x10c8   : > { %v2476_v20 = vpack.c.bf16 %v2465_v17, %v2462_v58 }
0x10ca   : > { %v6987_v14 = vrot.slane %v2476_v20, 4 }
0x10cc   : > { %v6991_v5 = vsel %vm1518_vm5, %v6987_v14, %v2481_v26 }
0x10d5   : > { %v5178_v28 = vpop.f32.mrb[32].mxu1 }
0x10d6   : > { %v2546_v37 = vpop.f32.mrb[33].mxu1  ;;  %v2562_v40 = vsel %vm1411_vm3, %v5178_v28, -1e+30 }
0x10d7   : > { %v2560_v27 = vsel %vm1411_vm3, %v2546_v37, -1e+30  ;;  %v5179_v33 = vpop.f32.mrb[34].mxu1  ;;  %v2569_v29 = vsel %vm1476_vm4, %v2562_v40, -inf }
0x10d8   : > { %v2549_v35 = vpop.f32.mrb[35].mxu1  ;;  %v2563_v21 = vsel %vm1476_vm4, %v2560_v27, -inf }
0x10d9   : > { %v2561_v42 = vsel %vm1411_vm3, %v2549_v35, -1e+30  ;;  %2564 = vmax.xlane.f32.xlu0 %v2563_v21 }
0x10da   : > { %v2566_v48 = vsel %vm1476_vm4, %v2561_v42, -inf }
0x10db   : > { %2567 = vmax.xlane.f32.xlu1 %v2566_v48 }
0x10dd   : > { %2570 = vmax.xlane.f32.xlu0 %v2569_v29 }
0x1166   : > { %v2565_v22 = vpop.xlane.xlu0 %2564 }
0x1167   : > { %v2572_v50 = vsub.f32 %v2560_v27, %v2565_v22 }
0x1168   : > { %v2568_v53 = vpop.xlane.xlu1 %2567 }
0x1169   : > { %v2575_v54 = vmul.f32 1.442695, %v2572_v50  ;;  %v2573_v55 = vsub.f32 %v2561_v42, %v2568_v53 }
0x116a   : > { %v2571_v60 = vpop.xlane.xlu0 %2570 }
0x116b   : > { %5617 = vpow2.f32 %v2575_v54  ;;  %v2577_v62 = vmul.f32 1.442695, %v2573_v55  ;;  %v2574_v63 = vsub.f32 %v2562_v40, %v2571_v60 }
0x116d   : > { %5619 = vpow2.f32 %v2577_v62  ;;  %v2579_v0 = vmul.f32 1.442695, %v2574_v63 }
0x116f   : > { %5621 = vpow2.f32 %v2579_v0 }
0x1175   : > { %v5618_v1 = vpop.eup %5617 }
0x1176   : > { %v2581_v2 = vsel %vm1476_vm4, %v5618_v1, 0.0 }
0x1177   : > { %v5620_v3 = vpop.eup %5619  ;;  %2582 = vadd.xlane.f32.xlu0 %v2581_v2 }
0x1178   : > { %v2584_v7 = vsel %vm1476_vm4, %v5620_v3, 0.0 }
0x1179   : > { %v5622_v4 = vpop.eup %5621 }
0x117a   : > { %v2587_v6 = vsel %vm1476_vm4, %v5622_v4, 0.0 }
0x117b   : > { %2588 = vadd.xlane.f32.xlu1 %v2587_v6  ;;  %2585 = vadd.xlane.f32.xlu0 %v2584_v7 }
0x118c   : > { %2600 = vrot.lane.b32.xlu1 %v6840_v30, %s6089_s5 }
0x1190   : > { %2680 = vrot.lane.b32.xlu1 %v6889_v32, %s6090_s7 }
0x1191   : > { %2598 = vrot.lane.b32.xlu0 %v6846_v39, %s6089_s5 }
0x1194   : > { %2682 = vrot.lane.b32.xlu1 %v6882_v25, %s6090_s7 }
0x1195   : > { %2676 = vrot.lane.b32.xlu0 %v6903_v49, %s6090_s7 }
0x1198   : > { %2678 = vrot.lane.b32.xlu1 %v6896_v41, %s6090_s7 }
0x1204   : > { %v2583_v8 = vpop.xlane.xlu0 %2582 }
0x1205   : > { %5623 = vrcp.f32 %v2583_v8 }
0x1208   : > { %v2586_v10 = vpop.xlane.xlu0 %2585  ;;  %v2589_v11 = vpop.xlane.xlu1 %2588 }
0x1209   : > { %5625 = vrcp.f32 %v2586_v10 }
0x120a   : > { %5627 = vrcp.f32 %v2589_v11 }
0x120c   : > { %v2599_v12 = vpop.permute.xlu0 %2598  ;;  %v2601_v32 = vpop.permute.xlu1 %2600 }
0x120d   : > { %5180 = vmatprep.subr.bf16.mxu0 %v2599_v12  ;;  %v2610_v25 = vsel %vm1518_vm5, %v2601_v32, 0 }
0x120e   : > { %5181 = vmatpush3.bf16.msra.mxu0 %v2599_v12 }
0x120f   : > { %5292 = vmatprep.subr.msk.bf16.mxu0 %vm1518_vm5, %v2601_v32  ;;  %v5624_v9 = vpop.eup %5623 }
0x1210   : > { %v2681_v13 = vpop.permute.xlu1 %2680  ;;  %v2593_v58 = vmul.f32 %v5624_v9, %v5618_v1  ;;  %v2677_v26 = vpop.permute.xlu0 %2676 }
0x1211   : > { %v2691_v28 = vsel %vm1412_vm1, %v2681_v13, 0 }
0x1212   : > { %5183 = vmatpush3.bf16.msra.mxu0 %v2610_v25 }
0x1213   : > { %v5626_v49 = vpop.eup %5625  ;;  %5293 = vmatprep.subr.msk.bf16.mxu0 %vm1412_vm1, %v2681_v13 }
0x1214   : > { %v5628_v41 = vpop.eup %5627  ;;  %v2594_v15 = vmul.f32 %v5626_v49, %v5620_v3  ;;  %v2683_v37 = vpop.permute.xlu1 %2682 }
0x1215   : > { %v2595_v16 = vmul.f32 %v5628_v41, %v5622_v4  ;;  %v2694_v27 = vsel %vm1412_vm1, %v2683_v37, 0 }
0x1216   : > { %v2596_v17 = vpack.c.bf16 %v2594_v15, %v2593_v58 }
0x1217   : > { %v2597_v20 = vpack.c.bf16 %v2595_v16, %v2595_v16 }
0x1218   : > { %5184 = vmatprep.mubr.msk.bf16.mxu0 %vm1476_vm4, %v2596_v17  ;;  %v2679_v33 = vpop.permute.xlu1 %2678  ;;  %v5457_v17 = vld [vmem:[%s6507_s16] sm:$0xff]  }
0x1219   : > { %5185 = vmatmul.mubr.msk.bf16.vlgmr.msra.gmra.mrb[40].mxu0 %vm1476_vm4, %v2597_v20 }
0x121a   : > { %5192 = vmatprep.mubr.msk.bf16.mxu0 %vm1412_vm1, %v2677_v26 }
0x121b   : > { %5189 = vmatpush3.bf16.xpose.msra.mxu0 %v2691_v28 }
0x121c   : > { %5294 = vmatprep.subr.msk.bf16.mxu0 %vm1412_vm1, %v2683_v37  ;;  %v5458_v37 = vld [vmem:[%s6507_s16 + $0x8] sm:$0xff]  }
0x1223   : > { %5191 = vmatpush3.bf16.xpose.msra.mxu0 %v2694_v27 }
0x122a   : > { %5193 = vmatmul.mubr.msk.bf16.vlgmr.msra.gmra.mrb[44].mxu0 %vm1412_vm1, %v2679_v33  ;;  %v5459_v33 = vld [vmem:[%s6507_s16 + $0x10] sm:$0xff]   ;;  %vm6092_vm1 = vmmov (!%p4816_p2), 0  }
0x122b   : > { %3339 = vmatprep.mubr.bf16.mxu0 %v6085_v31 }
0x12ec   : > { %v7028_v35 = vpop.f32.mrb[40].mxu0 }
0x12ed   : > { %v2646_v21 = vpop.f32.mrb[41].mxu0 }
0x12ee   : > { %v5187_v40 = vpop.f32.mrb[42].mxu0 }
0x12ef   : > { %v2649_v42 = vpop.f32.mrb[43].mxu0  ;;  %v5460_v40 = vld [vmem:[%s6507_s16 + $0x18] sm:$0xff]  }
0x12f0   : > { %v2660_v48 = vpack.c.bf16 %v2649_v42, %v2646_v21 }
0x12f2   : > { %v7065_v23 = vrot.slane %v2660_v48, 4  ;;  %v5461_v48 = vld [vmem:[%s6507_s16 + $0x20] sm:$0xff]  }
0x12fd   : > { %v5194_v29 = vpop.f32.mrb[44].mxu0 }
0x12fe   : > { %v2730_v22 = vpop.f32.mrb[45].mxu0  ;;  %v2746_v60 = vsel %vm1411_vm3, %v5194_v29, -1e+30  ;;  %v5462_v29 = vld [vmem:[%s6507_s16 + $0x28] sm:$0xff]  }
0x12ff   : > { %v2744_v50 = vsel %vm1411_vm3, %v2730_v22, -1e+30  ;;  %v5195_v53 = vpop.f32.mrb[46].mxu0  ;;  %v2753_v0 = vsel %vm1476_vm4, %v2746_v60, -inf  ;;  %v5463_v22 = vld [vmem:[%s6507_s16 + $0x30] sm:$0xff]  }
0x1300   : > { %v2733_v54 = vpop.f32.mrb[47].mxu0  ;;  %v2747_v55 = vsel %vm1476_vm4, %v2744_v50, -inf }
0x1301   : > { %v2745_v62 = vsel %vm1411_vm3, %v2733_v54, -1e+30  ;;  %2748 = vmax.xlane.f32.xlu0 %v2747_v55 }
0x1302   : > { %v2750_v63 = vsel %vm1476_vm4, %v2745_v62, -inf }
0x1303   : > { %2751 = vmax.xlane.f32.xlu1 %v2750_v63 }
0x1305   : > { %2754 = vmax.xlane.f32.xlu0 %v2753_v0 }
0x138e   : > { %v2749_v1 = vpop.xlane.xlu0 %2748 }
0x138f   : > { %v2756_v2 = vsub.f32 %v2744_v50, %v2749_v1  ;;  %v5464_v50 = vld [vmem:[%s6507_s16 + $0x38] sm:$0xff]   ;;  %v2661_v1 = vpack.c.bf16 %v7028_v35, %v7028_v35  ;;  %v4738_v35 = vld [vmem:[%s7632_s1] ss:$0 sm:$0xff] }
0x1390   : > { %v2752_v3 = vpop.xlane.xlu1 %2751 }
0x1391   : > { %v2759_v4 = vmul.f32 1.442695, %v2756_v2  ;;  %v2757_v6 = vsub.f32 %v2745_v62, %v2752_v3 }
0x1392   : > { %v2755_v7 = vpop.xlane.xlu0 %2754 }
0x1393   : > { %5629 = vpow2.f32 %v2759_v4  ;;  %v2761_v8 = vmul.f32 1.442695, %v2757_v6  ;;  %v2758_v10 = vsub.f32 %v2746_v60, %v2755_v7  ;;  %v2665_v6 = vrot.slane %v2661_v1, 4  ;;  %v5482_v1 = vld [vmem:[%s6549_s17 + $0x4c] ss:$16 sps:$4 sm:$0xff]  }
0x1395   : > { %5631 = vpow2.f32 %v2761_v8  ;;  %v2763_v11 = vmul.f32 1.442695, %v2758_v10  ;;  %v2666_v7 = vsel %vm1518_vm5, %v7065_v23, %v2665_v6  ;;  %v5488_v6 = vld [vmem:[%s6549_s17 + $0x6c] ss:$16 sps:$4 sm:$0xff]  }
0x1397   : > { %5633 = vpow2.f32 %v2763_v11 }
0x139d   : > { %v5630_v46 = vpop.eup %5629 }
0x139e   : > { %v2765_v12 = vsel %vm1476_vm4, %v5630_v46, 0.0 }
0x139f   : > { %v5632_v32 = vpop.eup %5631  ;;  %2766 = vadd.xlane.f32.xlu0 %v2765_v12 }
0x13a0   : > { %v2768_v13 = vsel %vm1476_vm4, %v5632_v32, 0.0 }
0x13a1   : > { %v5634_v9 = vpop.eup %5633 }
0x13a2   : > { %v2771_v25 = vsel %vm1476_vm4, %v5634_v9, 0.0 }
0x13a3   : > { %2772 = vadd.xlane.f32.xlu1 %v2771_v25  ;;  %2769 = vadd.xlane.f32.xlu0 %v2768_v13  ;;  %v5714_v13 = vld [vmem:[#allocation2 + $0x8] sm:$0xff] }
0x13b4   : > { %2784 = vrot.lane.b32.xlu1 %v6840_v30, %s6090_s7  ;;  %v1750_v30 = vpack.c.bf16 %v6797_v18, %v6797_v18 }
0x13b8   : > { %1753 = vrot.lane.b32.xlu1 %v1749_v24, %s6090_s7  ;;  %v2114_v24 = vpack.c.bf16 %v6915_v34, %v6915_v34 }
0x13b9   : > { %2782 = vrot.lane.b32.xlu0 %v6846_v39, %s6090_s7 }
0x13bc   : > { %1935 = vrot.lane.b32.xlu1 %v1931_v47, %s6089_s5 }
0x13bd   : > { %2117 = vrot.lane.b32.xlu0 %v2113_v52, %s6088_s13 }
0x13c0   : > { %1755 = vrot.lane.b32.xlu1 %v1750_v30, %s6090_s7 }
0x13c1   : > { %2483 = vrot.lane.b32.xlu0 %v6987_v14, %s6090_s7 }
0x13c4   : > { %1937 = vrot.lane.b32.xlu1 %v1932_v19, %s6089_s5 }
0x13c5   : > { %2667 = vrot.lane.b32.xlu0 %v7065_v23, %s6089_s5 }
0x13c8   : > { %2119 = vrot.lane.b32.xlu1 %v2114_v24, %s6088_s13 }
0x13cc   : > { %2485 = vrot.lane.b32.xlu1 %v6991_v5, %s6090_s7 }
0x142c   : > { %v2767_v18 = vpop.xlane.xlu0 %2766 }
0x142d   : > { %5635 = vrcp.f32 %v2767_v18 }
0x1430   : > { %v2770_v39 = vpop.xlane.xlu0 %2769  ;;  %v2773_v45 = vpop.xlane.xlu1 %2772 }
0x1431   : > { %5637 = vrcp.f32 %v2770_v39 }
0x1432   : > { %5639 = vrcp.f32 %v2773_v45 }
0x1434   : > { %v2783_v43 = vpop.permute.xlu0 %2782  ;;  %v2785_v44 = vpop.permute.xlu1 %2784 }
0x1435   : > { %5196 = vmatprep.subr.bf16.mxu1 %v2783_v43  ;;  %v2794_v51 = vsel %vm1518_vm5, %v2785_v44, 0 }
0x1436   : > { %5197 = vmatpush3.bf16.msra.mxu1 %v2783_v43 }
0x1437   : > { %5295 = vmatprep.subr.msk.bf16.mxu1 %vm1518_vm5, %v2785_v44  ;;  %v5636_v36 = vpop.eup %5635 }
0x1438   : > { %v1754_v47 = vpop.permute.xlu1 %1753  ;;  %v2118_v34 = vpop.permute.xlu0 %2117  ;;  %v2777_v41 = vmul.f32 %v5636_v36, %v5630_v46 }
0x1439   : > { %1760 = vst.msk [vmem:[#allocation3] sm:$0xff] %vm1759_vm8, %v1754_v47 }
0x143a   : > { %5199 = vmatpush3.bf16.msra.mxu1 %v2794_v51  ;;  %v5715_v51 = vld [vmem:[#allocation2 + $0x10] sm:$0xff] }
0x143b   : > { %v5638_v52 = vpop.eup %5637  ;;  %5204 = vmatprep.subr.bf16.mxu1 %v6086_v38 }
0x143c   : > { %v5640_v14 = vpop.eup %5639  ;;  %v1936_v5 = vpop.permute.xlu1 %1935  ;;  %v2778_v58 = vmul.f32 %v5638_v52, %v5632_v32 }
0x143d   : > { %v2484_v49 = vpop.permute.xlu0 %2483  ;;  %v2779_v15 = vmul.f32 %v5640_v14, %v5634_v9  ;;  %1942 = vst.msk [vmem:[#allocation3] sm:$0xff] %vm1941_vm9, %v1936_v5  ;;  %v5713_v9 = vld [vmem:[#allocation2] sm:$0xff] }
0x143e   : > { %2490 = vst.msk [vmem:[#allocation3 + $0x8] sm:$0xf0] %vm2489_vm10, %v2484_v49  ;;  %v2780_v16 = vpack.c.bf16 %v2778_v58, %v2777_v41  ;;  %v5716_v41 = vld [vmem:[#allocation2 + $0x18] sm:$0xff] }
0x143f   : > { %2124 = vst.msk [vmem:[#allocation3] sm:$0xff] %vm2123_vm11, %v2118_v34  ;;  %v2781_v20 = vpack.c.bf16 %v2779_v15, %v2779_v15 }
0x1440   : > { %5200 = vmatprep.mubr.msk.bf16.mxu1 %vm1476_vm4, %v2780_v16  ;;  %v1756_v26 = vpop.permute.xlu1 %1755 }
0x1441   : > { %v2668_v28 = vpop.permute.xlu0 %2667  ;;  %1762 = vst.msk [vmem:[#allocation3 + $0x8] sm:$0xf] %vm1761_vm12, %v1756_v26  ;;  %5201 = vmatmul.mubr.msk.bf16.vlgmr.msra.gmra.mrb[36].mxu1 %vm1476_vm4, %v2781_v20 }
0x1442   : > { %2674 = vst.msk [vmem:[#allocation3 + $0x8] sm:$0xf0] %vm2673_vm13, %v2668_v28  ;;  %5205 = vmatpush3.bf16.msra.mxu1 %v5457_v17  ;;  %5220 = vmatprep.mubr.msk.bf16.mxu1 %vm6087_vm2, %v6086_v38  ;;  %v5717_v28 = vld [vmem:[#allocation2 + $0x20] sm:$0xff] }
0x1443   : > { %5206 = vmatprep.subr.bf16.mxu1 %v6086_v38 }
0x1444   : > { %v1938_v27 = vpop.permute.xlu1 %1937 }
0x1445   : > { %1944 = vst.msk [vmem:[#allocation3 + $0x8] sm:$0xf] %vm1943_vm14, %v1938_v27 }
0x1446   : > { %5207 = vmatpush3.bf16.msra.mxu1 %v5458_v37  ;;  %v2860_v53 = vld [vmem:[#allocation3] sm:$0xff] }
0x1447   : > { %5208 = vmatprep.subr.bf16.mxu1 %v6086_v38 }
0x1448   : > { %v2120_v21 = vpop.permute.xlu1 %2119 }
0x1449   : > { %2126 = vst.msk [vmem:[#allocation3 + $0x8] sm:$0xf] %vm2125_vm15, %v2120_v21 }
0x144a   : > { %5209 = vmatpush3.bf16.msra.mxu1 %v5459_v33 }
0x144b   : > { %5210 = vmatprep.subr.bf16.mxu1 %v6086_v38 }
0x144c   : > { %v2486_v42 = vpop.permute.xlu1 %2485 }
0x144d   : > { %2491 = vst.msk [vmem:[#allocation3 + $0x10] sm:$0xff] %vm1759_vm8, %v2486_v42 }
0x144e   : > { %5211 = vmatpush3.bf16.msra.mxu1 %v5460_v40  ;;  %v5718_v40 = vld [vmem:[#allocation2 + $0x28] sm:$0xff] }
0x144f   : > { %5212 = vmatprep.subr.bf16.mxu1 %v6086_v38 }
0x1452   : > { %5213 = vmatpush3.bf16.msra.mxu1 %v5461_v48 }
0x1453   : > { %5214 = vmatprep.subr.bf16.mxu1 %v6086_v38 }
0x1456   : > { %5215 = vmatpush3.bf16.msra.mxu1 %v5462_v29 }
0x1457   : > { %5216 = vmatprep.subr.bf16.mxu1 %v6086_v38 }
0x145a   : > { %5217 = vmatpush3.bf16.msra.mxu1 %v5463_v22  ;;  %v5467_v22 = vld [vmem:[%s6549_s17 + $0x4] ss:$16 sps:$4 sm:$0xff]  }
0x145b   : > { %5218 = vmatprep.subr.bf16.mxu1 %v6086_v38  ;;  %3307 = vmatprep.subr.bf16.mxu0 %v5467_v22 }
0x145e   : > { %5219 = vmatpush3.bf16.msra.mxu1 %v5464_v50  ;;  %v5470_v50 = vld [vmem:[%s6549_s17 + $0xc] ss:$16 sps:$4 sm:$0xff]  }
0x145f   : > { %3370 = vmatprep.subr.bf16.mxu1 %v5470_v50 }
0x1461   : > { %5221 = vmatmul.mubr.bf16.vlgmr.msra.gmra.mrb[40].mxu1 %v2860_v53  ;;  %v5465_v53 = vld [vmem:[%s6549_s17] ss:$16 sps:$4 sm:$0xff]  }
0x1462   : > { %5224 = vmatprep.mubr.msk.bf16.mxu1 %vm6087_vm2, %v6086_v38  ;;  %3308 = vmatpush1.bf16.msra.mxu0 %v5465_v53 }
0x1514   : > { %v5202_v54 = vpop.f32.mrb[36].mxu1 }
0x1515   : > { %v2830_v55 = vpop.f32.mrb[37].mxu1  ;;  %v2845_v60 = vpack.c.bf16 %v5202_v54, %v5202_v54  ;;  %v5468_v54 = vld [vmem:[%s6549_s17 + $0x8] ss:$16 sps:$4 sm:$0xff]  }
0x1516   : > { %v5203_v62 = vpop.f32.mrb[38].mxu1  ;;  %3371 = vmatpush1.bf16.msra.mxu1 %v5468_v54  ;;  %v7202_v54 = vld [vmem:[%s7634_s30] ss:$0 sm:$0xff] }
0x1517   : > { %v2833_v63 = vpop.f32.mrb[39].mxu1  ;;  %v2849_v2 = vrot.slane %v2845_v60, 4  ;;  %v5476_v60 = vld [vmem:[%s6549_s17 + $0x2c] ss:$16 sps:$4 sm:$0xff]   ;;  %v5471_v62 = vld [vmem:[%s6549_s17 + $0x20] ss:$16 sps:$4 sm:$0xff]  }
0x1518   : > { %v2844_v0 = vpack.c.bf16 %v2833_v63, %v2830_v55  ;;  %v5473_v55 = vld [vmem:[%s6549_s17 + $0x24] ss:$16 sps:$4 sm:$0xff]   ;;  %v5474_v63 = vld [vmem:[%s6549_s17 + $0x28] ss:$16 sps:$4 sm:$0xff]   ;;  %3372 = vmatprep.subr.bf16.mxu1 %v5476_v60 }
0x1519   : > { %3309 = vmatprep.subr.bf16.mxu0 %v5473_v55 }
0x151a   : > { %v2848_v3 = vrot.slane %v2844_v0, 4  ;;  %3310 = vmatpush1.bf16.msra.mxu0 %v5471_v62  ;;  %3373 = vmatpush1.bf16.msra.mxu1 %v5474_v63  ;;  %v5479_v0 = vld [vmem:[%s6549_s17 + $0x44] ss:$16 sps:$4 sm:$0xff]  }
0x151b   : > { %3311 = vmatprep.subr.bf16.mxu0 %v5479_v0  ;;  %3374 = vmatprep.subr.bf16.mxu1 %v5482_v1  ;;  %v5514_v63 = vld [vmem:[%s6559_s29 + $0xc0] sm:$0xff]  }
0x151c   : > { %2851 = vrot.lane.b32.xlu0 %v2848_v3, %s6088_s13  ;;  %v2850_v4 = vsel %vm1518_vm5, %v2848_v3, %v2849_v2  ;;  %v5477_v2 = vld [vmem:[%s6549_s17 + $0x40] ss:$16 sps:$4 sm:$0xff]   ;;  %v5480_v3 = vld [vmem:[%s6549_s17 + $0x48] ss:$16 sps:$4 sm:$0xff]  }
0x151d   : > { %2853 = vrot.lane.b32.xlu1 %v2850_v4, %s6088_s13  ;;  %v5485_v4 = vld [vmem:[%s6549_s17 + $0x64] ss:$16 sps:$4 sm:$0xff]  }
0x151e   : > { %3312 = vmatpush1.bf16.msra.mxu0 %v5477_v2  ;;  %3375 = vmatpush1.bf16.msra.mxu1 %v5480_v3  ;;  %v5515_v0 = vld [vmem:[%s6559_s29] sm:$0xff]   ;;  %v5517_v2 = vld [vmem:[%s6559_s29 + $0x48] sm:$0xff]  }
0x151f   : > { %3313 = vmatprep.subr.bf16.mxu0 %v5485_v4  ;;  %3376 = vmatprep.subr.bf16.mxu1 %v5488_v6  ;;  %v5516_v1 = vld [vmem:[%s6559_s29 + $0x80] sm:$0xff]   ;;  %v5518_v3 = vld [vmem:[%s6559_s29 + $0xc8] sm:$0xff]  }
0x1520   : > { %2669 = vrot.lane.b32.xlu0 %v2666_v7, %s6089_s5  ;;  %v5483_v7 = vld [vmem:[%s6549_s17 + $0x60] ss:$16 sps:$4 sm:$0xff]   ;;  %v5519_v4 = vld [vmem:[%s6559_s29 + $0x8] sm:$0xff]  }
0x1521   : > { %v5520_v6 = vld [vmem:[%s6559_s29 + $0x88] sm:$0xff]  }
0x1522   : > { %3314 = vmatpush1.bf16.msra.mxu0 %v5483_v7  ;;  %v5521_v7 = vld [vmem:[%s6559_s29 + $0x50] sm:$0xff]  }
0x1534   : > { %v2968_v8 = vpop.f32.mrb[40].mxu1 }
0x1535   : > { %v5222_v10 = vpop.f32.mrb[41].mxu1  ;;  %v2969_v12 = vadd.f32 %v4738_v35, %v2968_v8  ;;  %v5486_v8 = vld [vmem:[%s6549_s17 + $0x68] ss:$16 sps:$4 sm:$0xff]  }
0x1536   : > { %v2971_v11 = vpop.f32.mrb[42].mxu1  ;;  %3377 = vmatpush1.bf16.msra.mxu1 %v5486_v8  ;;  %v5491_v10 = vld [vmem:[%s6549_s17 + $0x84] ss:$16 sps:$4 sm:$0xff]  }
0x1537   : > { %v5223_v46 = vpop.f32.mrb[43].mxu1  ;;  %v2972_v32 = vadd.f32 %v4738_v35, %v2971_v11  ;;  %v2991_v25 = vadd.f32 %v5713_v9, %v2969_v12  ;;  %v5489_v11 = vld [vmem:[%s6549_s17 + $0x80] ss:$16 sps:$4 sm:$0xff]   ;;  %3315 = vmatprep.subr.bf16.mxu0 %v5491_v10  ;;  %v5497_v12 = vld [vmem:[%s6549_s17 + $0xa4] ss:$16 sps:$4 sm:$0xff]  }
0x1538   : > { %v5492_v46 = vld [vmem:[%s6549_s17 + $0x88] ss:$16 sps:$4 sm:$0xff]   ;;  %3316 = vmatpush1.bf16.msra.mxu0 %v5489_v11  ;;  %v5495_v9 = vld [vmem:[%s6549_s17 + $0xa0] ss:$16 sps:$4 sm:$0xff]  }
0x1539   : > { %v2992_v30 = vadd.f32 %v5714_v13, %v2972_v32  ;;  %v5500_v32 = vld [vmem:[%s6549_s17 + $0xac] ss:$16 sps:$4 sm:$0xff]   ;;  %3317 = vmatprep.subr.bf16.mxu0 %v5497_v12  ;;  %v5503_v13 = vld [vmem:[%s6549_s17 + $0xc4] ss:$16 sps:$4 sm:$0xff]  }
0x153a   : > { %v5522_v8 = vld [vmem:[%s6559_s29 + $0xd0] sm:$0xff]   ;;  %v5525_v11 = vld [vmem:[%s6559_s29 + $0x58] sm:$0xff]  }
0x153b   : > { %v5523_v10 = vld [vmem:[%s6559_s29 + $0x10] sm:$0xff]   ;;  %v5527_v12 = vld [vmem:[%s6559_s29 + $0x18] sm:$0xff]  }
0x153c   : > { %3318 = vmatpush1.bf16.msra.mxu0 %v5495_v9  ;;  %v5529_v9 = vld [vmem:[%s6559_s29 + $0x60] sm:$0xff]  }
0x153d   : > { %3319 = vmatprep.subr.bf16.mxu0 %v5503_v13  ;;  %v5531_v13 = vld [vmem:[%s6559_s29 + $0x20] sm:$0xff]  }
0x153f   : > { %2997 = vadd.xlane.f32.xlu0 %v2991_v25 }
0x1541   : > { %2999 = vadd.xlane.f32.xlu1 %v2992_v30 }
0x158e   : > { %v2852_v19 = vpop.permute.xlu0 %2851 }
0x158f   : > { %2858 = vst.msk [vmem:[#allocation3 + $0x8] sm:$0xf0] %vm2857_vm0, %v2852_v19  ;;  %v2854_v24 = vpop.permute.xlu1 %2853  ;;  %v5501_v19 = vld [vmem:[%s6549_s17 + $0xc0] ss:$16 sps:$4 sm:$0xff]  }
0x1590   : > { %3320 = vmatpush1.bf16.msra.mxu0 %v5501_v19  ;;  %v5533_v19 = vld [vmem:[%s6559_s29 + $0x68] sm:$0xff]  }
0x1592   : > { %v2670_v23 = vpop.permute.xlu0 %2669 }
0x1593   : > { %2675 = vst.msk [vmem:[#allocation3 + $0x10] sm:$0xff] %vm1941_vm9, %v2670_v23  ;;  %v5504_v23 = vld [vmem:[%s6549_s17 + $0xc8] ss:$16 sps:$4 sm:$0xff]  }
0x1594   : > { %2859 = vst.msk [vmem:[#allocation3 + $0x10] sm:$0xff] %vm2123_vm11, %v2854_v24  ;;  %v5509_v24 = vld [vmem:[%s6549_s17 + $0xe4] ss:$16 sps:$4 sm:$0xff]  }
0x1595   : > { %3321 = vmatprep.subr.bf16.mxu0 %v5509_v24 }
0x1596   : > { %v2861_v18 = vld [vmem:[#allocation3 + $0x8] sm:$0xff] }
0x1597   : > { %5225 = vmatmul.mubr.bf16.gmra.mrb[44].mxu1 %v2861_v18  ;;  %v5512_v18 = vld [vmem:[%s6549_s17 + $0xec] ss:$16 sps:$4 sm:$0xff]  }
0x1598   : > { %5228 = vmatprep.mubr.msk.bf16.mxu1 %vm6087_vm2, %v6086_v38  ;;  %vm4252_vm2 = vcmask (!%p4816_p2), 1040384  }
0x159b   : > { %v2862_v39 = vld [vmem:[#allocation3 + $0x10] sm:$0xff] }
0x159f   : > { %5229 = vmatmul.mubr.bf16.gmra.mrb[48].mxu1 %v2862_v39  ;;  %v5507_v39 = vld [vmem:[%s6549_s17 + $0xe0] ss:$16 sps:$4 sm:$0xff]  }
0x15a0   : > { %3402 = vmatprep.mubr.bf16.mxu1 %v6085_v31  ;;  %3322 = vmatpush1.bf16.msra.mxu0 %v5507_v39  ;;  %v5536_v39 = vld [vmem:[%s6559_s29 + $0xa8] sm:$0xff]  }
0x15cc   : > { %v2998_v14 = vpop.xlane.xlu0 %2997 }
0x15cd   : > { %v3010_v49 = vmul.f32 0.0078125, %v2998_v14 }
0x15ce   : > { %v3000_v5 = vpop.xlane.xlu1 %2999 }
0x15cf   : > { %v3011_v15 = vmul.f32 0.0078125, %v3000_v5  ;;  %v7127_v26 = vsub.f32 %v2991_v25, %v3010_v49  ;;  %v5498_v25 = vld [vmem:[%s6549_s17 + $0xa8] ss:$16 sps:$4 sm:$0xff]  }
0x15d1   : > { %v7131_v21 = vsub.f32 %v2992_v30, %v3011_v15  ;;  %v3022_v48 = vmul.f32 %v7127_v26, %v7127_v26  ;;  %v5506_v30 = vld [vmem:[%s6549_s17 + $0xcc] ss:$16 sps:$4 sm:$0xff]  }
0x15d3   : > { %v3023_v29 = vmul.f32 %v7131_v21, %v7131_v21 }
0x166a   : > { %v2976_v45 = vpop.f32.mrb[44].mxu1 }
0x166b   : > { %v2977_v43 = vadd.f32 %v4738_v35, %v2976_v45  ;;  %v5226_v44 = vpop.f32.mrb[45].mxu1  ;;  %v5510_v45 = vld [vmem:[%s6549_s17 + $0xe8] ss:$16 sps:$4 sm:$0xff]  }
0x166c   : > { %v2979_v47 = vpop.f32.mrb[46].mxu1 }
0x166d   : > { %v2980_v34 = vadd.f32 %v4738_v35, %v2979_v47  ;;  %v5227_v36 = vpop.f32.mrb[47].mxu1  ;;  %v7121_v52 = vadd.f32 %v5715_v51, %v2977_v43 }
0x166f   : > { %3001 = vadd.xlane.f32.xlu0 %v7121_v52  ;;  %v7124_v38 = vadd.f32 %v5716_v41, %v2980_v34 }
0x1672   : > { %v2984_v58 = vpop.f32.mrb[48].mxu1 }
0x1673   : > { %v2985_v16 = vadd.f32 %v4738_v35, %v2984_v58  ;;  %3003 = vadd.xlane.f32.xlu0 %v7124_v38  ;;  %v5230_v17 = vpop.f32.mrb[49].mxu1 }
0x1674   : > { %v2987_v20 = vpop.f32.mrb[50].mxu1 }
0x1675   : > { %v7129_v37 = vadd.f32 %v5717_v28, %v2985_v16  ;;  %v2988_v27 = vadd.f32 %v4738_v35, %v2987_v20  ;;  %v5231_v33 = vpop.f32.mrb[51].mxu1  ;;  %v5494_v35 = vld [vmem:[%s6549_s17 + $0x8c] ss:$16 sps:$4 sm:$0xff]   ;;  %s7633_s17 = scalar_lea.vmem [#allocation9], %s6495_s11 }
0x1676   : > { %3378 = vmatprep.subr.bf16.mxu1 %v5494_v35  ;;  %v5524_v35 = vld [vmem:[%s6559_s29 + $0x90] sm:$0xff]  }
0x1677   : > { %v7133_v42 = vadd.f32 %v5718_v40, %v2988_v27  ;;  %3005 = vadd.xlane.f32.xlu0 %v7129_v37  ;;  %3379 = vmatpush1.bf16.msra.mxu1 %v5492_v46  ;;  %v5526_v46 = vld [vmem:[%s6559_s29 + $0xd8] sm:$0xff]  }
0x1678   : > { %3380 = vmatprep.subr.bf16.mxu1 %v5500_v32  ;;  %v5528_v32 = vld [vmem:[%s6559_s29 + $0x98] sm:$0xff]  }
0x1679   : > { %3007 = vadd.xlane.f32.xlu1 %v7133_v42 }
0x167b   : > { %3028 = vadd.xlane.f32.xlu0 %v3022_v48  ;;  %3381 = vmatpush1.bf16.msra.mxu1 %v5498_v25  ;;  %v5530_v25 = vld [vmem:[%s6559_s29 + $0xe0] sm:$0xff]  }
0x167c   : > { %3382 = vmatprep.subr.bf16.mxu1 %v5506_v30  ;;  %v5532_v30 = vld [vmem:[%s6559_s29 + $0xa0] sm:$0xff]  }
0x167d   : > { %3030 = vadd.xlane.f32.xlu1 %v3023_v29 }
0x167f   : > { %3383 = vmatpush1.bf16.msra.mxu1 %v5504_v23  ;;  %v5534_v23 = vld [vmem:[%s6559_s29 + $0xe8] sm:$0xff]  }
0x1680   : > { %3384 = vmatprep.subr.bf16.mxu1 %v5512_v18  ;;  %v5535_v18 = vld [vmem:[%s6559_s29 + $0x28] sm:$0xff]  }
0x1683   : > { %3385 = vmatpush1.bf16.msra.mxu1 %v5510_v45 }
0x1684   : > { %4972 = vmatprep.subr.bf16.mxu1 %v5514_v63 }
0x16fc   : > { %v3002_v43 = vpop.xlane.xlu0 %3001 }
0x16fd   : > { %v3012_v44 = vmul.f32 0.0078125, %v3002_v43 }
0x16ff   : > { %v7174_v47 = vsub.f32 %v7121_v52, %v3012_v44  ;;  %v5537_v44 = vld [vmem:[%s6559_s29 + $0x70] sm:$0xff]  }
0x1700   : > { %v3004_v34 = vpop.xlane.xlu0 %3003 }
0x1701   : > { %v3013_v36 = vmul.f32 0.0078125, %v3004_v34  ;;  %v3024_v51 = vmul.f32 %v7174_v47, %v7174_v47  ;;  %v5538_v34 = vld [vmem:[%s6559_s29 + $0xf0] sm:$0xff]  }
0x1703   : > { %v7179_v14 = vsub.f32 %v7124_v38, %v3013_v36  ;;  %3032 = vadd.xlane.f32.xlu0 %v3024_v51  ;;  %v5539_v51 = vld [vmem:[%s6559_s29 + $0x30] sm:$0xff]  }
0x1704   : > { %v3006_v5 = vpop.xlane.xlu0 %3005 }
0x1705   : > { %v3014_v49 = vmul.f32 0.0078125, %v3006_v5  ;;  %v3025_v41 = vmul.f32 %v7179_v14, %v7179_v14  ;;  %v5540_v5 = vld [vmem:[%s6559_s29 + $0xb0] sm:$0xff]  }
0x1706   : > { %v3008_v58 = vpop.xlane.xlu1 %3007 }
0x1707   : > { %v7184_v15 = vsub.f32 %v7129_v37, %v3014_v49  ;;  %v3015_v52 = vmul.f32 0.0078125, %v3008_v58  ;;  %3034 = vadd.xlane.f32.xlu1 %v3025_v41  ;;  %v5541_v58 = vld [vmem:[%s6559_s29 + $0x78] sm:$0xff]  }
0x1708   : > { %v3029_v16 = vpop.xlane.xlu0 %3028 }
0x1709   : > { %v7187_v17 = vsub.f32 %v7133_v42, %v3015_v52  ;;  %v3040_v20 = vmul.f32 0.0078125, %v3029_v16  ;;  %v3026_v38 = vmul.f32 %v7184_v15, %v7184_v15  ;;  %v7195_v42 = vld [vmem:[%s7633_s17] ss:$0 sm:$0xff]  ;;  %v5542_v52 = vld [vmem:[%s6559_s29 + $0xf8] sm:$0xff]  }
0x170a   : > { %v3031_v28 = vpop.xlane.xlu1 %3030 }
0x170b   : > { %v3046_v27 = vadd.f32 1e-05, %v3040_v20  ;;  %v3041_v33 = vmul.f32 0.0078125, %v3031_v28  ;;  %3036 = vadd.xlane.f32.xlu0 %v3026_v38  ;;  %v3027_v37 = vmul.f32 %v7187_v17, %v7187_v17  ;;  %v5543_v20 = vld [vmem:[%s6559_s29 + $0x38] sm:$0xff]  }
0x170c   : > { %v5544_v38 = vld [vmem:[%s6559_s29 + $0xb8] sm:$0xff]  }
0x170d   : > { %5641 = vrsqrt.f32 %v3046_v27  ;;  %v3047_v40 = vadd.f32 1e-05, %v3041_v33  ;;  %3038 = vadd.xlane.f32.xlu1 %v3027_v37 }
0x170f   : > { %5643 = vrsqrt.f32 %v3047_v40 }
0x1717   : > { %v5642_v48 = vpop.eup %5641 }
0x1718   : > { %v3058_v29 = vmul.f32 %v5642_v48, %v7127_v26 }
0x1719   : > { %v5644_v22 = vpop.eup %5643 }
0x171a   : > { %v3059_v50 = vmul.f32 %v5644_v22, %v7131_v21  ;;  %v3071_v53 = vmul.f32 %v7195_v42, %v3058_v29  ;;  %v5513_v21 = vld [vmem:[%s6559_s29 + $0x40] sm:$0xff]   ;;  %s7636_s29 = scalar_lea.vmem [#allocation13], %s6495_s11 }
0x171b   : > { %4938 = vmatprep.subr.bf16.mxu0 %v5513_v21 }
0x171c   : > { %v3072_v55 = vmul.f32 %v7195_v42, %v3059_v50  ;;  %v7206_v60 = vadd.f32 %v7202_v54, %v3071_v53 }
0x171e   : > { %v7209_v62 = vadd.f32 %v7202_v54, %v3072_v55 }
0x1720   : > { %v3090_v26 = vpack.c.bf16 %v7209_v62, %v7206_v60 }
0x1722   : > { %3340 = vmatmul.mubr.bf16.vlgmr.msra.gmra.mrb[48].mxu0 %v3090_v26  ;;  %3403 = vmatmul.mubr.bf16.vlgmr.msra.gmra.mrb[52].mxu1 %v3090_v26 }
0x1723   : > { %3349 = vmatprep.mubr.bf16.mxu0 %v6085_v31  ;;  %3412 = vmatprep.mubr.bf16.mxu1 %v6085_v31 }
0x1724   : > { %4939 = vmatpush3.bf16.msra.mxu0 %v5515_v0  ;;  %4973 = vmatpush3.bf16.msra.mxu1 %v5516_v1 }
0x1725   : > { %4940 = vmatprep.subr.bf16.mxu0 %v5517_v2  ;;  %4974 = vmatprep.subr.bf16.mxu1 %v5518_v3 }
0x1728   : > { %4941 = vmatpush3.bf16.msra.mxu0 %v5519_v4  ;;  %4975 = vmatpush3.bf16.msra.mxu1 %v5520_v6 }
0x1729   : > { %4942 = vmatprep.subr.bf16.mxu0 %v5521_v7  ;;  %4976 = vmatprep.subr.bf16.mxu1 %v5522_v8  ;;  %v3141_v7 = vsub.s32 3, %v6640_v56 }
0x172c   : > { %4943 = vmatpush3.bf16.msra.mxu0 %v5523_v10  ;;  %4977 = vmatpush3.bf16.msra.mxu1 %v5524_v35 }
0x172d   : > { %4944 = vmatprep.subr.bf16.mxu0 %v5525_v11  ;;  %4978 = vmatprep.subr.bf16.mxu1 %v5526_v46 }
0x1730   : > { %4945 = vmatpush3.bf16.msra.mxu0 %v5527_v12  ;;  %4979 = vmatpush3.bf16.msra.mxu1 %v5528_v32 }
0x1731   : > { %4946 = vmatprep.subr.bf16.mxu0 %v5529_v9  ;;  %4980 = vmatprep.subr.bf16.mxu1 %v5530_v25 }
0x1734   : > { %4947 = vmatpush3.bf16.msra.mxu0 %v5531_v13  ;;  %4981 = vmatpush3.bf16.msra.mxu1 %v5532_v30 }
0x1735   : > { %4948 = vmatprep.subr.bf16.mxu0 %v5533_v19  ;;  %4982 = vmatprep.subr.bf16.mxu1 %v5534_v23 }
0x1738   : > { %4949 = vmatpush3.bf16.msra.mxu0 %v5535_v18  ;;  %4983 = vmatpush3.bf16.msra.mxu1 %v5536_v39 }
0x1739   : > { %4950 = vmatprep.subr.bf16.mxu0 %v5537_v44  ;;  %4984 = vmatprep.subr.bf16.mxu1 %v5538_v34 }
0x173c   : > { %4951 = vmatpush3.bf16.msra.mxu0 %v5539_v51  ;;  %4985 = vmatpush3.bf16.msra.mxu1 %v5540_v5 }
0x173d   : > { %4952 = vmatprep.subr.bf16.mxu0 %v5541_v58  ;;  %4986 = vmatprep.subr.bf16.mxu1 %v5542_v52 }
0x1740   : > { %4953 = vmatpush3.bf16.msra.mxu0 %v5543_v20  ;;  %4987 = vmatpush3.bf16.msra.mxu1 %v5544_v38 }
0x1790   : > { %v3033_v24 = vpop.xlane.xlu0 %3032 }
0x1791   : > { %v3042_v45 = vmul.f32 0.0078125, %v3033_v24 }
0x1793   : > { %v3048_v43 = vadd.f32 1e-05, %v3042_v45 }
0x1794   : > { %v3035_v36 = vpop.xlane.xlu1 %3034 }
0x1795   : > { %5645 = vrsqrt.f32 %v3048_v43  ;;  %v3043_v49 = vmul.f32 0.0078125, %v3035_v36 }
0x1797   : > { %v3049_v41 = vadd.f32 1e-05, %v3043_v49 }
0x1798   : > { %v3037_v16 = vpop.xlane.xlu0 %3036 }
0x1799   : > { %5647 = vrsqrt.f32 %v3049_v41  ;;  %v3044_v28 = vmul.f32 0.0078125, %v3037_v16 }
0x179a   : > { %v3039_v27 = vpop.xlane.xlu1 %3038 }
0x179b   : > { %v3050_v33 = vadd.f32 1e-05, %v3044_v28  ;;  %v3045_v37 = vmul.f32 0.0078125, %v3039_v27 }
0x179d   : > { %5649 = vrsqrt.f32 %v3050_v33  ;;  %v3051_v40 = vadd.f32 1e-05, %v3045_v37 }
0x179f   : > { %v5646_v48 = vpop.eup %5645  ;;  %5651 = vrsqrt.f32 %v3051_v40 }
0x17a0   : > { %v3060_v29 = vmul.f32 %v5646_v48, %v7174_v47 }
0x17a2   : > { %v3073_v53 = vmul.f32 %v7195_v42, %v3060_v29 }
0x17a3   : > { %v5648_v22 = vpop.eup %5647 }
0x17a4   : > { %v3061_v50 = vmul.f32 %v5648_v22, %v7179_v14  ;;  %v7252_v21 = vadd.f32 %v7202_v54, %v3073_v53 }
0x17a6   : > { %v3074_v55 = vmul.f32 %v7195_v42, %v3061_v50 }
0x17a7   : > { %v5650_v26 = vpop.eup %5649 }
0x17a8   : > { %v7255_v63 = vadd.f32 %v7202_v54, %v3074_v55  ;;  %v3062_v0 = vmul.f32 %v5650_v26, %v7184_v15 }
0x17a9   : > { %v5652_v1 = vpop.eup %5651 }
0x17aa   : > { %v3091_v47 = vpack.c.bf16 %v7255_v63, %v7252_v21  ;;  %v3063_v14 = vmul.f32 %v5652_v1, %v7187_v17  ;;  %v3075_v2 = vmul.f32 %v7195_v42, %v3062_v0  ;;  %v3125_v17 = vld [vmem:[%s6554_s4] sm:$0xf]  ;;  %s7635_s4 = scalar_lea.vmem [#allocation12], %s6495_s11 }
0x17ab   : > { %v7287_v8 = vrot.slane %v3125_v17, %v3141_v7 }
0x17ac   : > { %3350 = vmatmul.mubr.bf16.gmra.mrb[52].mxu0 %v3091_v47  ;;  %3413 = vmatmul.mubr.bf16.gmra.mrb[56].mxu1 %v3091_v47  ;;  %v3076_v3 = vmul.f32 %v7195_v42, %v3063_v14  ;;  %v7269_v15 = vadd.f32 %v7202_v54, %v3075_v2  ;;  %v7277_v42 = vrot.slane %v3125_v17, %v1133_v57 }
0x17ad   : > { %3359 = vmatprep.mubr.bf16.mxu0 %v6085_v31  ;;  %3422 = vmatprep.mubr.bf16.mxu1 %v6085_v31  ;;  %v7281_v31 = vrot.slane %v3125_v17, %v1141_v61 }
0x17ae   : > { %v7266_v4 = vadd.f32 %v7202_v54, %v3076_v3  ;;  %v7285_v54 = vrot.slane %v3125_v17, %v1137_v59 }
0x17b0   : > { %v3092_v6 = vpack.c.bf16 %v7266_v4, %v7269_v15 }
0x17b4   : > { %3360 = vmatmul.mubr.bf16.gmra.mrb[56].mxu0 %v3092_v6  ;;  %3423 = vmatmul.mubr.bf16.gmra.mrb[60].mxu1 %v3092_v6 }
0x17f5   : > { %v3341_v10 = vpop.f32.mrb[48].mxu0  ;;  %v3404_v35 = vpop.f32.mrb[52].mxu1 }
0x17f6   : > { %v7290_v11 = vadd.f32 %v3341_v10, %v7277_v42  ;;  %v7293_v46 = vadd.f32 %v3404_v35, %v7281_v31  ;;  %v3343_v57 = vpop.f32.mrb[49].mxu0  ;;  %v3406_v12 = vpop.f32.mrb[53].mxu1 }
0x17f7   : > { %v7296_v32 = vadd.f32 %v3343_v57, %v7285_v54  ;;  %v7299_v61 = vadd.f32 %v3406_v12, %v7287_v8  ;;  %v3345_v56 = vpop.f32.mrb[50].mxu0  ;;  %v3408_v59 = vpop.f32.mrb[54].mxu1 }
0x17f8   : > { %v3433_v9 = vmul.f32 %v7290_v11, %v7290_v11  ;;  %v3435_v25 = vmul.f32 %v7293_v46, %v7293_v46  ;;  %v7306_v13 = vadd.f32 %v3345_v56, %v7277_v42  ;;  %v7309_v30 = vadd.f32 %v3408_v59, %v7281_v31  ;;  %v3347_v19 = vpop.f32.mrb[51].mxu0  ;;  %v3410_v23 = vpop.f32.mrb[55].mxu1 }
0x17f9   : > { %v3434_v24 = vmul.f32 %v7296_v32, %v7296_v32  ;;  %v3436_v18 = vmul.f32 %v7299_v61, %v7299_v61  ;;  %v7316_v39 = vadd.f32 %v3347_v19, %v7285_v54  ;;  %v7319_v45 = vadd.f32 %v3410_v23, %v7287_v8 }
0x17fa   : > { %v3457_v43 = vmul.f32 %v3433_v9, %v7290_v11  ;;  %v3459_v44 = vmul.f32 %v3435_v25, %v7293_v46  ;;  %v3437_v34 = vmul.f32 %v7306_v13, %v7306_v13  ;;  %v3439_v36 = vmul.f32 %v7309_v30, %v7309_v30 }
0x17fb   : > { %v3458_v51 = vmul.f32 %v3434_v24, %v7296_v32  ;;  %v3460_v5 = vmul.f32 %v3436_v18, %v7299_v61  ;;  %v3438_v49 = vmul.f32 %v7316_v39, %v7316_v39  ;;  %v3440_v41 = vmul.f32 %v7319_v45, %v7319_v45 }
0x17fc   : > { %v3481_v58 = vmul.f32 0.044715, %v3457_v43  ;;  %v3483_v52 = vmul.f32 0.044715, %v3459_v44  ;;  %v3461_v16 = vmul.f32 %v3437_v34, %v7306_v13  ;;  %v3463_v20 = vmul.f32 %v3439_v36, %v7309_v30 }
0x17fd   : > { %v3482_v38 = vmul.f32 0.044715, %v3458_v51  ;;  %v3484_v28 = vmul.f32 0.044715, %v3460_v5  ;;  %v3462_v27 = vmul.f32 %v3438_v49, %v7316_v39  ;;  %v3464_v33 = vmul.f32 %v3440_v41, %v7319_v45 }
0x17fe   : > { %v3505_v37 = vadd.f32 %v3481_v58, %v7290_v11  ;;  %v3507_v40 = vadd.f32 %v3483_v52, %v7293_v46  ;;  %v3485_v48 = vmul.f32 0.044715, %v3461_v16  ;;  %v3487_v29 = vmul.f32 0.044715, %v3463_v20 }
0x17ff   : > { %v3506_v22 = vadd.f32 %v3482_v38, %v7296_v32  ;;  %v3508_v50 = vadd.f32 %v3484_v28, %v7299_v61  ;;  %v3486_v53 = vmul.f32 0.044715, %v3462_v27  ;;  %v3488_v55 = vmul.f32 0.044715, %v3464_v33 }
0x1800   : > { %v3529_v26 = vmul.f32 0.7978846, %v3505_v37  ;;  %v3531_v0 = vmul.f32 0.7978846, %v3507_v40  ;;  %v3509_v1 = vadd.f32 %v3485_v48, %v7306_v13  ;;  %v3511_v47 = vadd.f32 %v3487_v29, %v7309_v30 }
0x1801   : > { %v3530_v14 = vmul.f32 0.7978846, %v3506_v22  ;;  %v3532_v2 = vmul.f32 0.7978846, %v3508_v50  ;;  %v3510_v3 = vadd.f32 %v3486_v53, %v7316_v39  ;;  %v3512_v6 = vadd.f32 %v3488_v55, %v7319_v45 }
0x1802   : > { %5653 = vtanh.f32 %v3529_v26  ;;  %v3533_v17 = vmul.f32 0.7978846, %v3509_v1  ;;  %v3535_v7 = vmul.f32 0.7978846, %v3511_v47 }
0x1803   : > { %5655 = vtanh.f32 %v3531_v0  ;;  %v3534_v10 = vmul.f32 0.7978846, %v3510_v3  ;;  %v3536_v35 = vmul.f32 0.7978846, %v3512_v6 }
0x1804   : > { %5657 = vtanh.f32 %v3530_v14 }
0x1805   : > { %5659 = vtanh.f32 %v3532_v2 }
0x1806   : > { %5661 = vtanh.f32 %v3533_v17 }
0x1807   : > { %5663 = vtanh.f32 %v3535_v7 }
0x1808   : > { %5665 = vtanh.f32 %v3534_v10 }
0x1809   : > { %5667 = vtanh.f32 %v3536_v35 }
0x180c   : > { %v5654_v57 = vpop.eup %5653 }
0x180d   : > { %v5656_v12 = vpop.eup %5655  ;;  %v3577_v56 = vadd.f32 1.0, %v5654_v57 }
0x180e   : > { %v5658_v59 = vpop.eup %5657  ;;  %v3579_v9 = vadd.f32 1.0, %v5656_v12 }
0x180f   : > { %v5660_v25 = vpop.eup %5659  ;;  %v3578_v19 = vadd.f32 1.0, %v5658_v59  ;;  %v3601_v43 = vmul.f32 0.5, %v3577_v56 }
0x1810   : > { %v5662_v23 = vpop.eup %5661  ;;  %v3580_v24 = vadd.f32 1.0, %v5660_v25  ;;  %v3603_v36 = vmul.f32 0.5, %v3579_v9 }
0x1811   : > { %v5664_v18 = vpop.eup %5663  ;;  %v3581_v44 = vadd.f32 1.0, %v5662_v23  ;;  %v3602_v58 = vmul.f32 0.5, %v3578_v19  ;;  %v3625_v38 = vmul.f32 %v3601_v43, %v7290_v11 }
0x1812   : > { %v5666_v34 = vpop.eup %5665  ;;  %v3583_v51 = vadd.f32 1.0, %v5664_v18  ;;  %v3604_v20 = vmul.f32 0.5, %v3580_v24  ;;  %v3627_v33 = vmul.f32 %v3603_v36, %v7293_v46 }
0x1813   : > { %v5668_v5 = vpop.eup %5667  ;;  %v3605_v49 = vmul.f32 0.5, %v3581_v44  ;;  %v3582_v41 = vadd.f32 1.0, %v5666_v34  ;;  %v3626_v29 = vmul.f32 %v3602_v58, %v7296_v32 }
0x1814   : > { %v3607_v52 = vmul.f32 0.5, %v3583_v51  ;;  %v3584_v16 = vadd.f32 1.0, %v5668_v5  ;;  %v3628_v53 = vmul.f32 %v3604_v20, %v7299_v61 }
0x1815   : > { %v3629_v28 = vmul.f32 %v3605_v49, %v7306_v13  ;;  %v3606_v27 = vmul.f32 0.5, %v3582_v41 }
0x1816   : > { %v3631_v37 = vmul.f32 %v3607_v52, %v7309_v30  ;;  %v3608_v40 = vmul.f32 0.5, %v3584_v16 }
0x1817   : > { %v3649_v48 = vpack.c.bf16 %v3629_v28, %v3625_v38  ;;  %v3630_v22 = vmul.f32 %v3606_v27, %v7316_v39 }
0x1818   : > { %v3651_v50 = vpack.c.bf16 %v3631_v37, %v3627_v33  ;;  %v3632_v55 = vmul.f32 %v3608_v40, %v7319_v45 }
0x1819   : > { %v3650_v26 = vpack.c.bf16 %v3630_v22, %v3626_v29 }
0x181a   : > { %v3652_v11 = vpack.c.bf16 %v3632_v55, %v3628_v53 }
0x181b   : > { %3956 = vmatprep.mubr.bf16.mxu0 %v3650_v26 }
0x181c   : > { %4013 = vmatprep.mubr.bf16.mxu1 %v3652_v11  ;;  %3957 = vmatmul.mubr.bf16.vlgmr.msra.gmra.mrb[60].mxu0 %v3649_v48 }
0x181d   : > { %4014 = vmatmul.mubr.bf16.vlgmr.msra.gmra.mrb[64].mxu1 %v3651_v50 }
0x187f   : > { %v3351_v46 = vpop.f32.mrb[52].mxu0  ;;  %v3414_v13 = vpop.f32.mrb[56].mxu1 }
0x1880   : > { %v7354_v30 = vadd.f32 %v3351_v46, %v7277_v42  ;;  %v7357_v32 = vadd.f32 %v3414_v13, %v7281_v31  ;;  %v3353_v39 = vpop.f32.mrb[53].mxu0  ;;  %v3416_v0 = vpop.f32.mrb[57].mxu1 }
0x1881   : > { %v7360_v61 = vadd.f32 %v3353_v39, %v7285_v54  ;;  %v7363_v45 = vadd.f32 %v3416_v0, %v7287_v8  ;;  %v3355_v1 = vpop.f32.mrb[54].mxu0  ;;  %v3418_v47 = vpop.f32.mrb[58].mxu1 }
0x1882   : > { %v3441_v14 = vmul.f32 %v7354_v30, %v7354_v30  ;;  %v3443_v2 = vmul.f32 %v7357_v32, %v7357_v32  ;;  %v7370_v3 = vadd.f32 %v3355_v1, %v7277_v42  ;;  %v7373_v6 = vadd.f32 %v3418_v47, %v7281_v31  ;;  %v3357_v17 = vpop.f32.mrb[55].mxu0  ;;  %v3420_v7 = vpop.f32.mrb[59].mxu1 }
0x1883   : > { %v3442_v10 = vmul.f32 %v7360_v61, %v7360_v61  ;;  %v3444_v35 = vmul.f32 %v7363_v45, %v7363_v45  ;;  %v7380_v57 = vadd.f32 %v3357_v17, %v7285_v54  ;;  %v7383_v12 = vadd.f32 %v3420_v7, %v7287_v8 }
0x1884   : > { %v3465_v56 = vmul.f32 %v3441_v14, %v7354_v30  ;;  %v3467_v59 = vmul.f32 %v3443_v2, %v7357_v32  ;;  %v3445_v9 = vmul.f32 %v7370_v3, %v7370_v3  ;;  %v3447_v25 = vmul.f32 %v7373_v6, %v7373_v6 }
0x1885   : > { %v3466_v19 = vmul.f32 %v3442_v10, %v7360_v61  ;;  %v3468_v23 = vmul.f32 %v3444_v35, %v7363_v45  ;;  %v3446_v24 = vmul.f32 %v7380_v57, %v7380_v57  ;;  %v3448_v18 = vmul.f32 %v7383_v12, %v7383_v12 }
0x1886   : > { %v3489_v43 = vmul.f32 0.044715, %v3465_v56  ;;  %v3491_v44 = vmul.f32 0.044715, %v3467_v59  ;;  %v3469_v34 = vmul.f32 %v3445_v9, %v7370_v3  ;;  %v3471_v36 = vmul.f32 %v3447_v25, %v7373_v6 }
0x1887   : > { %v3490_v51 = vmul.f32 0.044715, %v3466_v19  ;;  %v3492_v5 = vmul.f32 0.044715, %v3468_v23  ;;  %v3470_v49 = vmul.f32 %v3446_v24, %v7380_v57  ;;  %v3472_v41 = vmul.f32 %v3448_v18, %v7383_v12  ;;  %v3361_v58 = vpop.f32.mrb[56].mxu0  ;;  %v3424_v52 = vpop.f32.mrb[60].mxu1 }
0x1888   : > { %v3513_v16 = vadd.f32 %v3489_v43, %v7354_v30  ;;  %v3515_v20 = vadd.f32 %v3491_v44, %v7357_v32  ;;  %v3493_v38 = vmul.f32 0.044715, %v3469_v34  ;;  %v3495_v28 = vmul.f32 0.044715, %v3471_v36  ;;  %v3363_v27 = vpop.f32.mrb[57].mxu0  ;;  %v3426_v33 = vpop.f32.mrb[61].mxu1 }
0x1889   : > { %v3514_v37 = vadd.f32 %v3490_v51, %v7360_v61  ;;  %v3516_v40 = vadd.f32 %v3492_v5, %v7363_v45  ;;  %v3494_v48 = vmul.f32 0.044715, %v3470_v49  ;;  %v3496_v29 = vmul.f32 0.044715, %v3472_v41  ;;  %v3365_v22 = vpop.f32.mrb[58].mxu0  ;;  %v3428_v50 = vpop.f32.mrb[62].mxu1 }
0x188a   : > { %v3537_v53 = vmul.f32 0.7978846, %v3513_v16  ;;  %v3539_v55 = vmul.f32 0.7978846, %v3515_v20  ;;  %v3517_v26 = vadd.f32 %v3493_v38, %v7370_v3  ;;  %v3519_v11 = vadd.f32 %v3495_v28, %v7373_v6  ;;  %v3367_v46 = vpop.f32.mrb[59].mxu0  ;;  %v3430_v13 = vpop.f32.mrb[63].mxu1 }
0x188b   : > { %v3538_v39 = vmul.f32 0.7978846, %v3514_v37  ;;  %v3540_v0 = vmul.f32 0.7978846, %v3516_v40  ;;  %v3518_v1 = vadd.f32 %v3494_v48, %v7380_v57  ;;  %v3520_v47 = vadd.f32 %v3496_v29, %v7383_v12 }
0x188c   : > { %5669 = vtanh.f32 %v3537_v53  ;;  %v3541_v14 = vmul.f32 0.7978846, %v3517_v26  ;;  %v3543_v2 = vmul.f32 0.7978846, %v3519_v11  ;;  %v7410_v17 = vadd.f32 %v3361_v58, %v7277_v42 }
0x188d   : > { %5671 = vtanh.f32 %v3539_v55  ;;  %v3542_v7 = vmul.f32 0.7978846, %v3518_v1  ;;  %v3544_v10 = vmul.f32 0.7978846, %v3520_v47  ;;  %v7413_v35 = vadd.f32 %v3424_v52, %v7281_v31 }
0x188e   : > { %5673 = vtanh.f32 %v3538_v39  ;;  %v3449_v56 = vmul.f32 %v7410_v17, %v7410_v17  ;;  %v7418_v59 = vadd.f32 %v3363_v27, %v7285_v54  ;;  %v7421_v9 = vadd.f32 %v3426_v33, %v7287_v8 }
0x188f   : > { %5675 = vtanh.f32 %v3540_v0  ;;  %v3451_v25 = vmul.f32 %v7413_v35, %v7413_v35  ;;  %v7426_v19 = vadd.f32 %v3365_v22, %v7277_v42  ;;  %v7429_v23 = vadd.f32 %v3428_v50, %v7281_v31 }
0x1890   : > { %5677 = vtanh.f32 %v3541_v14  ;;  %v3473_v24 = vmul.f32 %v3449_v56, %v7410_v17  ;;  %v3450_v18 = vmul.f32 %v7418_v59, %v7418_v59  ;;  %v3452_v43 = vmul.f32 %v7421_v9, %v7421_v9 }
0x1891   : > { %5679 = vtanh.f32 %v3543_v2  ;;  %v3475_v44 = vmul.f32 %v3451_v25, %v7413_v35  ;;  %v3453_v34 = vmul.f32 %v7426_v19, %v7426_v19  ;;  %v3455_v42 = vmul.f32 %v7429_v23, %v7429_v23 }
0x1892   : > { %5681 = vtanh.f32 %v3542_v7  ;;  %v3497_v31 = vmul.f32 0.044715, %v3473_v24  ;;  %v3474_v36 = vmul.f32 %v3450_v18, %v7418_v59  ;;  %v3476_v51 = vmul.f32 %v3452_v43, %v7421_v9 }
0x1893   : > { %5683 = vtanh.f32 %v3544_v10  ;;  %v3499_v5 = vmul.f32 0.044715, %v3475_v44  ;;  %v3477_v49 = vmul.f32 %v3453_v34, %v7426_v19  ;;  %v3479_v41 = vmul.f32 %v3455_v42, %v7429_v23 }
0x1894   : > { %v3521_v58 = vadd.f32 %v3497_v31, %v7410_v17  ;;  %v3498_v52 = vmul.f32 0.044715, %v3474_v36  ;;  %v3500_v16 = vmul.f32 0.044715, %v3476_v51  ;;  %v7447_v20 = vadd.f32 %v3367_v46, %v7285_v54 }
0x1895   : > { %v3523_v38 = vadd.f32 %v3499_v5, %v7413_v35  ;;  %v3501_v28 = vmul.f32 0.044715, %v3477_v49  ;;  %v3503_v27 = vmul.f32 0.044715, %v3479_v41  ;;  %v7451_v33 = vadd.f32 %v3430_v13, %v7287_v8 }
0x1896   : > { %v5670_v37 = vpop.eup %5669  ;;  %v3545_v40 = vmul.f32 0.7978846, %v3521_v58  ;;  %v3522_v48 = vadd.f32 %v3498_v52, %v7418_v59  ;;  %v3524_v29 = vadd.f32 %v3500_v16, %v7421_v9  ;;  %v3454_v22 = vmul.f32 %v7447_v20, %v7447_v20 }
0x1897   : > { %v5672_v50 = vpop.eup %5671  ;;  %v3547_v53 = vmul.f32 0.7978846, %v3523_v38  ;;  %v3525_v54 = vadd.f32 %v3501_v28, %v7426_v19  ;;  %v3527_v55 = vadd.f32 %v3503_v27, %v7429_v23  ;;  %v3456_v26 = vmul.f32 %v7451_v33, %v7451_v33 }
0x1898   : > { %v5674_v8 = vpop.eup %5673  ;;  %5685 = vtanh.f32 %v3545_v40  ;;  %v3546_v11 = vmul.f32 0.7978846, %v3522_v48  ;;  %v3548_v46 = vmul.f32 0.7978846, %v3524_v29  ;;  %v3478_v13 = vmul.f32 %v3454_v22, %v7447_v20 }
0x1899   : > { %v5676_v39 = vpop.eup %5675  ;;  %5687 = vtanh.f32 %v3547_v53  ;;  %v3549_v0 = vmul.f32 0.7978846, %v3525_v54  ;;  %v3551_v1 = vmul.f32 0.7978846, %v3527_v55  ;;  %v3480_v47 = vmul.f32 %v3456_v26, %v7451_v33 }
0x189a   : > { %v5678_v14 = vpop.eup %5677  ;;  %5689 = vtanh.f32 %v3546_v11  ;;  %v3502_v2 = vmul.f32 0.044715, %v3478_v13  ;;  %v3586_v7 = vadd.f32 1.0, %v5674_v8  ;;  %v3588_v10 = vadd.f32 1.0, %v5676_v39 }
0x189b   : > { %v5680_v56 = vpop.eup %5679  ;;  %5691 = vtanh.f32 %v3548_v46  ;;  %v3504_v25 = vmul.f32 0.044715, %v3480_v47  ;;  %v3585_v24 = vadd.f32 1.0, %v5670_v37  ;;  %v3589_v18 = vadd.f32 1.0, %v5678_v14 }
0x189c   : > { %v5682_v43 = vpop.eup %5681  ;;  %5693 = vtanh.f32 %v3549_v0  ;;  %v3526_v44 = vadd.f32 %v3502_v2, %v7447_v20  ;;  %v3610_v34 = vmul.f32 0.5, %v3586_v7  ;;  %v3612_v41 = vmul.f32 0.5, %v3588_v10 }
0x189d   : > { %v5684_v42 = vpop.eup %5683  ;;  %5695 = vtanh.f32 %v3551_v1  ;;  %v3528_v31 = vadd.f32 %v3504_v25, %v7451_v33  ;;  %v3590_v36 = vadd.f32 1.0, %v5682_v43  ;;  %v3609_v51 = vmul.f32 0.5, %v3585_v24 }
0x189e   : > { %v3550_v5 = vmul.f32 0.7978846, %v3526_v44  ;;  %v3592_v49 = vadd.f32 1.0, %v5684_v42  ;;  %v3634_v16 = vmul.f32 %v3610_v34, %v7360_v61  ;;  %v3613_v38 = vmul.f32 0.5, %v3589_v18 }
0x189f   : > { %v3552_v58 = vmul.f32 0.7978846, %v3528_v31  ;;  %v3614_v52 = vmul.f32 0.5, %v3590_v36  ;;  %v3587_v27 = vadd.f32 1.0, %v5672_v50  ;;  %v3591_v37 = vadd.f32 1.0, %v5680_v56 }
0x18a0   : > { %5697 = vtanh.f32 %v3550_v5  ;;  %v3616_v28 = vmul.f32 0.5, %v3592_v49  ;;  %v3633_v48 = vmul.f32 %v3609_v51, %v7354_v30  ;;  %v3637_v29 = vmul.f32 %v3613_v38, %v7370_v3 }
0x18a1   : > { %5699 = vtanh.f32 %v3552_v58  ;;  %v3638_v40 = vmul.f32 %v3614_v52, %v7380_v57  ;;  %v3636_v53 = vmul.f32 %v3612_v41, %v7363_v45  ;;  %v3611_v55 = vmul.f32 0.5, %v3587_v27 }
0x18a2   : > { %v5686_v22 = vpop.eup %5685  ;;  %v3640_v54 = vmul.f32 %v3616_v28, %v7383_v12  ;;  %v3615_v26 = vmul.f32 0.5, %v3591_v37  ;;  %v3653_v11 = vpack.c.bf16 %v3637_v29, %v3633_v48  ;;  %v4781_v28 = vld [vmem:[%s7635_s4] ss:$0 sm:$0xff] }
0x18a3   : > { %v5688_v61 = vpop.eup %5687  ;;  %v3654_v8 = vpack.c.bf16 %v3638_v40, %v3634_v16  ;;  %v3593_v46 = vadd.f32 1.0, %v5686_v22  ;;  %v3635_v39 = vmul.f32 %v3611_v55, %v7357_v32 }
0x18a4   : > { %v5690_v50 = vpop.eup %5689  ;;  %v3656_v13 = vpack.c.bf16 %v3640_v54, %v3636_v53  ;;  %v3639_v57 = vmul.f32 %v3615_v26, %v7373_v6  ;;  %v3595_v30 = vadd.f32 1.0, %v5688_v61 }
0x18a5   : > { %v5692_v0 = vpop.eup %5691  ;;  %3964 = vmatprep.mubr.bf16.mxu0 %v3654_v8  ;;  %v3594_v1 = vadd.f32 1.0, %v5690_v50  ;;  %v3617_v14 = vmul.f32 0.5, %v3593_v46 }
0x18a6   : > { %v5694_v3 = vpop.eup %5693  ;;  %4021 = vmatprep.mubr.bf16.mxu1 %v3656_v13  ;;  %3965 = vmatmul.mubr.bf16.gmra.mrb[64].mxu0 %v3653_v11  ;;  %v3655_v45 = vpack.c.bf16 %v3639_v57, %v3635_v39  ;;  %v3596_v2 = vadd.f32 1.0, %v5692_v0  ;;  %v3619_v10 = vmul.f32 0.5, %v3595_v30 }
0x18a7   : > { %v5696_v12 = vpop.eup %5695  ;;  %v3597_v47 = vadd.f32 1.0, %v5694_v3  ;;  %v3618_v18 = vmul.f32 0.5, %v3594_v1  ;;  %v3641_v43 = vmul.f32 %v3617_v14, %v7410_v17 }
0x18a8   : > { %4022 = vmatmul.mubr.bf16.gmra.mrb[68].mxu1 %v3655_v45  ;;  %v3599_v7 = vadd.f32 1.0, %v5696_v12  ;;  %v3620_v42 = vmul.f32 0.5, %v3596_v2  ;;  %v3643_v31 = vmul.f32 %v3619_v10, %v7413_v35 }
0x18a9   : > { %v3621_v56 = vmul.f32 0.5, %v3597_v47  ;;  %v3642_v58 = vmul.f32 %v3618_v18, %v7418_v59 }
0x18aa   : > { %v5698_v25 = vpop.eup %5697  ;;  %v3623_v32 = vmul.f32 0.5, %v3599_v7  ;;  %v3644_v16 = vmul.f32 %v3620_v42, %v7421_v9 }
0x18ab   : > { %v5700_v24 = vpop.eup %5699  ;;  %v3598_v6 = vadd.f32 1.0, %v5698_v25  ;;  %v3645_v44 = vmul.f32 %v3621_v56, %v7426_v19 }
0x18ac   : > { %v3600_v34 = vadd.f32 1.0, %v5700_v24  ;;  %v3647_v36 = vmul.f32 %v3623_v32, %v7429_v23 }
0x18ad   : > { %v3622_v51 = vmul.f32 0.5, %v3598_v6  ;;  %v3657_v5 = vpack.c.bf16 %v3645_v44, %v3641_v43 }
0x18ae   : > { %v3624_v49 = vmul.f32 0.5, %v3600_v34  ;;  %v3659_v41 = vpack.c.bf16 %v3647_v36, %v3643_v31 }
0x18af   : > { %v3646_v52 = vmul.f32 %v3622_v51, %v7447_v20 }
0x18b0   : > { %v3648_v17 = vmul.f32 %v3624_v49, %v7451_v33 }
0x18b1   : > { %v3658_v19 = vpack.c.bf16 %v3646_v52, %v3642_v58 }
0x18b2   : > { %v3660_v38 = vpack.c.bf16 %v3648_v17, %v3644_v16 }
0x18b3   : > { %3972 = vmatprep.mubr.bf16.mxu0 %v3658_v19 }
0x18b4   : > { %4029 = vmatprep.mubr.bf16.mxu1 %v3660_v38  ;;  %3973 = vmatmul.mubr.bf16.gmra.mrb[68].mxu0 %v3657_v5 }
0x18b5   : > { %4030 = vmatmul.mubr.bf16.gmra.mrb[72].mxu1 %v3659_v41 }
0x18ef   : > { %v4954_v35 = vpop.f32.mrb[60].mxu0 }
0x18f0   : > { %v4988_v23 = vpop.f32.mrb[64].mxu1  ;;  %v4955_v27 = vpop.f32.mrb[61].mxu0 }
0x18f1   : > { %v4956_v37 = vadd.f32 %v4955_v27, %v4954_v35  ;;  %v4989_v40 = vpop.f32.mrb[65].mxu1  ;;  %v4957_v59 = vpop.f32.mrb[62].mxu0 }
0x18f2   : > { %v4990_v48 = vadd.f32 %v4989_v40, %v4988_v23  ;;  %v4991_v20 = vpop.f32.mrb[66].mxu1  ;;  %v4958_v29 = vpop.f32.mrb[63].mxu0 }
0x18f3   : > { %v3959_v9 = vadd.f32 %v4956_v37, %v4781_v28  ;;  %v4959_v22 = vadd.f32 %v4958_v29, %v4957_v59  ;;  %v4992_v33 = vpop.f32.mrb[67].mxu1 }
0x18f4   : > { %v4993_v53 = vadd.f32 %v4992_v33, %v4991_v20 }
0x18f5   : > { %v4016_v54 = vadd.f32 %v4990_v48, %v3959_v9  ;;  %v3962_v55 = vadd.f32 %v4959_v22, %v4781_v28 }
0x18f7   : > { %v4019_v26 = vadd.f32 %v4993_v53, %v3962_v55  ;;  %v4038_v61 = vadd.f32 %v4016_v54, %v7206_v60 }
0x18f9   : > { %4044 = vadd.xlane.f32.xlu0 %v4038_v61  ;;  %v4039_v8 = vadd.f32 %v4019_v26, %v7209_v62 }
0x18fb   : > { %4046 = vadd.xlane.f32.xlu1 %v4039_v8 }
0x1979   : > { %v4960_v11 = vpop.f32.mrb[64].mxu0 }
0x197a   : > { %v4961_v46 = vpop.f32.mrb[65].mxu0 }
0x197b   : > { %v4994_v50 = vpop.f32.mrb[68].mxu1  ;;  %v4962_v13 = vadd.f32 %v4961_v46, %v4960_v11  ;;  %v4963_v39 = vpop.f32.mrb[66].mxu0 }
0x197c   : > { %v4995_v57 = vpop.f32.mrb[69].mxu1  ;;  %v4964_v30 = vpop.f32.mrb[67].mxu0 }
0x197d   : > { %v3967_v0 = vadd.f32 %v4962_v13, %v4781_v28  ;;  %v4996_v3 = vadd.f32 %v4995_v57, %v4994_v50  ;;  %v4997_v45 = vpop.f32.mrb[70].mxu1  ;;  %v4965_v12 = vadd.f32 %v4964_v30, %v4963_v39  ;;  %v4814_v13 = vld [vmem:[%s7636_s29] ss:$0 sm:$0xff] }
0x197e   : > { %v4998_v1 = vpop.f32.mrb[71].mxu1  ;;  %v4815_v30 = vld [vmem:[%s7637_s20] ss:$0 sm:$0xff] }
0x197f   : > { %v4024_v47 = vadd.f32 %v4996_v3, %v3967_v0  ;;  %v3970_v14 = vadd.f32 %v4965_v12, %v4781_v28  ;;  %v4999_v2 = vadd.f32 %v4998_v1, %v4997_v45 }
0x1981   : > { %v4027_v60 = vadd.f32 %v4999_v2, %v3970_v14  ;;  %v4040_v7 = vadd.f32 %v4024_v47, %v7252_v21 }
0x1983   : > { %4048 = vadd.xlane.f32.xlu0 %v4040_v7  ;;  %v4041_v62 = vadd.f32 %v4027_v60, %v7255_v63 }
0x1985   : > { %4050 = vadd.xlane.f32.xlu1 %v4041_v62 }
0x1986   : > { %v4045_v56 = vpop.xlane.xlu0 %4044 }
0x1987   : > { %v4966_v10 = vpop.f32.mrb[68].mxu0  ;;  %v4056_v51 = vmul.f32 0.0078125, %v4045_v56 }
0x1988   : > { %v5000_v25 = vpop.f32.mrb[72].mxu1  ;;  %v4967_v32 = vpop.f32.mrb[69].mxu0 }
0x1989   : > { %v4968_v24 = vadd.f32 %v4967_v32, %v4966_v10  ;;  %v5001_v6 = vpop.f32.mrb[73].mxu1  ;;  %v4969_v18 = vpop.f32.mrb[70].mxu0  ;;  %v4062_v52 = vsub.f32 %v4038_v61, %v4056_v51 }
0x198a   : > { %v5002_v43 = vadd.f32 %v5001_v6, %v5000_v25  ;;  %v5003_v44 = vpop.f32.mrb[74].mxu1  ;;  %v4970_v34 = vpop.f32.mrb[71].mxu0 }
0x198b   : > { %v3975_v42 = vadd.f32 %v4968_v24, %v4781_v28  ;;  %v4971_v31 = vadd.f32 %v4970_v34, %v4969_v18  ;;  %v5004_v36 = vpop.f32.mrb[75].mxu1  ;;  %v4047_v5 = vpop.xlane.xlu1 %4046  ;;  %v4068_v38 = vmul.f32 %v4062_v52, %v4062_v52 }
0x198c   : > { %v5005_v21 = vadd.f32 %v5004_v36, %v5003_v44  ;;  %v4057_v63 = vmul.f32 0.0078125, %v4047_v5 }
0x198d   : > { %v4032_v49 = vadd.f32 %v5002_v43, %v3975_v42  ;;  %v3978_v41 = vadd.f32 %v4971_v31, %v4781_v28 }
0x198e   : > { %v4063_v17 = vsub.f32 %v4039_v8, %v4057_v63 }
0x198f   : > { %v4035_v58 = vadd.f32 %v5005_v21, %v3978_v41  ;;  %v4042_v16 = vadd.f32 %v4032_v49, %v7269_v15 }
0x1990   : > { %v4069_v35 = vmul.f32 %v4063_v17, %v4063_v17 }
0x1991   : > { %4052 = vadd.xlane.f32.xlu0 %v4042_v16  ;;  %v4043_v19 = vadd.f32 %v4035_v58, %v7266_v4 }
0x1993   : > { %4054 = vadd.xlane.f32.xlu1 %v4043_v19 }
0x1995   : > { %4074 = vadd.xlane.f32.xlu0 %v4068_v38  ;;  %v5720_v38 = vld [vmem:[#allocation16] sm:$0xff] (!%p4816_p2)  }
0x1997   : > { %4076 = vadd.xlane.f32.xlu1 %v4069_v35  ;;  %v5721_v35 = vld [vmem:[#allocation16 + $0x8] sm:$0xff] (!%p4816_p2)  }
0x1a10   : > { %v4049_v23 = vpop.xlane.xlu0 %4048 }
0x1a11   : > { %v4058_v27 = vmul.f32 0.0078125, %v4049_v23  ;;  %v5722_v23 = vld [vmem:[#allocation16 + $0x8] sm:$0xff] (!%p4816_p2)  }
0x1a12   : > { %v4051_v37 = vpop.xlane.xlu1 %4050 }
0x1a13   : > { %v4064_v40 = vsub.f32 %v4040_v7, %v4058_v27  ;;  %v4059_v59 = vmul.f32 0.0078125, %v4051_v37  ;;  %v5723_v27 = vld [vmem:[#allocation16 + $0x10] sm:$0xff] (!%p4816_p2)  }
0x1a14   : > { %v5724_v37 = vld [vmem:[#allocation16 + $0x10] sm:$0xff] (!%p4816_p2)  }
0x1a15   : > { %v4065_v28 = vsub.f32 %v4041_v62, %v4059_v59  ;;  %v4070_v48 = vmul.f32 %v4064_v40, %v4064_v40  ;;  %v5726_v59 = vld [vmem:[#allocation16 + $0x18] sm:$0xff] (!%p4816_p2)  }
0x1a17   : > { %4078 = vadd.xlane.f32.xlu0 %v4070_v48  ;;  %v4071_v20 = vmul.f32 %v4065_v28, %v4065_v28  ;;  %v5728_v48 = vld [vmem:[#allocation16 + $0x20] sm:$0xff] (!%p4816_p2)  }
0x1a19   : > { %4080 = vadd.xlane.f32.xlu1 %v4071_v20  ;;  %v5729_v20 = vld [vmem:[#allocation16 + $0x28] sm:$0xff] (!%p4816_p2)  }
0x1a1e   : > { %v4053_v15 = vpop.xlane.xlu0 %4052 }
0x1a1f   : > { %v4060_v29 = vmul.f32 0.0078125, %v4053_v15  ;;  %v5730_v15 = vld [vmem:[#allocation16 + $0x28] sm:$0xff] (!%p4816_p2)  }
0x1a20   : > { %v4055_v9 = vpop.xlane.xlu1 %4054 }
0x1a21   : > { %v4066_v22 = vsub.f32 %v4042_v16, %v4060_v29  ;;  %v4061_v4 = vmul.f32 0.0078125, %v4055_v9  ;;  %v5731_v29 = vld [vmem:[#allocation16 + $0x30] sm:$0xff] (!%p4816_p2)  }
0x1a22   : > { %v4075_v33 = vpop.xlane.xlu0 %4074  ;;  %v5732_v9 = vld [vmem:[#allocation16 + $0x30] sm:$0xff] (!%p4816_p2)  }
0x1a23   : > { %v4067_v53 = vsub.f32 %v4043_v19, %v4061_v4  ;;  %v4086_v54 = vmul.f32 0.0078125, %v4075_v33  ;;  %v4072_v55 = vmul.f32 %v4066_v22, %v4066_v22  ;;  %v6091_v19 = vmov (!%p4816_p2), 0.0   ;;  %v5734_v4 = vld [vmem:[#allocation16 + $0x38] sm:$0xff] (!%p4816_p2)  }
0x1a24   : > { %v4077_v26 = vpop.xlane.xlu1 %4076  ;;  %5232 = vmatprep.subr.bf16.mxu0 (!%p4816_p2), %v6091_v19  ;;  %5252 = vmatprep.subr.bf16.mxu1 (!%p4816_p2), %v6091_v19 }
0x1a25   : > { %v4092_v61 = vadd.f32 1e-05, %v4086_v54  ;;  %v4087_v8 = vmul.f32 0.0078125, %v4077_v26  ;;  %4082 = vadd.xlane.f32.xlu0 %v4072_v55  ;;  %v4073_v11 = vmul.f32 %v4067_v53, %v4067_v53  ;;  %5248 = vmatprep.mubr.msk.bf16.mxu0 (!%p4816_p2), %vm6092_vm1, %v6091_v19 }
0x1a26   : > { %5253 = vmatpush3.bf16.msra.mxu1 (!%p4816_p2), %v5720_v38  ;;  %5268 = vmatprep.mubr.msk.bf16.mxu1 (!%p4816_p2), %vm6092_vm1, %v6091_v19 }
0x1a27   : > { %5701 = vrsqrt.f32 %v4092_v61  ;;  %v4093_v46 = vadd.f32 1e-05, %v4087_v8  ;;  %4084 = vadd.xlane.f32.xlu1 %v4073_v11  ;;  %5254 = vmatprep.subr.bf16.mxu1 (!%p4816_p2), %v6091_v19 }
0x1a29   : > { %5703 = vrsqrt.f32 %v4093_v46 }
0x1a2a   : > { %5255 = vmatpush3.bf16.msra.mxu1 (!%p4816_p2), %v5722_v23 }
0x1a2b   : > { %5256 = vmatprep.subr.bf16.mxu1 (!%p4816_p2), %v6091_v19 }
0x1a2e   : > { %5257 = vmatpush3.bf16.msra.mxu1 (!%p4816_p2), %v5724_v37 }
0x1a2f   : > { %5258 = vmatprep.subr.bf16.mxu1 (!%p4816_p2), %v6091_v19 }
0x1a31   : > { %v5702_v50 = vpop.eup %5701 }
0x1a32   : > { %v4104_v39 = vmul.f32 %v5702_v50, %v4062_v52  ;;  %5259 = vmatpush3.bf16.msra.mxu1 (!%p4816_p2), %v5726_v59 }
0x1a33   : > { %v5704_v57 = vpop.eup %5703  ;;  %5260 = vmatprep.subr.bf16.mxu1 (!%p4816_p2), %v6091_v19 }
0x1a34   : > { %v4117_v0 = vmul.f32 %v4814_v13, %v4104_v39  ;;  %v4105_v3 = vmul.f32 %v5704_v57, %v4063_v17  ;;  %v5719_v17 = vld [vmem:[#allocation16] sm:$0xff] (!%p4816_p2)  }
0x1a35   : > { %5233 = vmatpush3.bf16.msra.mxu0 (!%p4816_p2), %v5719_v17 }
0x1a36   : > { %v7493_v45 = vadd.f32 %v4815_v30, %v4117_v0  ;;  %v4118_v12 = vmul.f32 %v4814_v13, %v4105_v3  ;;  %5234 = vmatprep.subr.bf16.mxu0 (!%p4816_p2), %v6091_v19  ;;  %5261 = vmatpush3.bf16.msra.mxu1 (!%p4816_p2), %v5728_v48 }
0x1a37   : > { %5262 = vmatprep.subr.bf16.mxu1 (!%p4816_p2), %v6091_v19 }
0x1a38   : > { %4136 = vst [vmem:[#allocation2] sm:$0xff] %v7493_v45  ;;  %v4131_v1 = vadd.f32 %v4815_v30, %v4118_v12  ;;  %v4146_v33 = vpack.c.bf16 (!%p4816_p2), %v7493_v45, %v7493_v45 }
0x1a39   : > { %5235 = vmatpush3.bf16.msra.mxu0 (!%p4816_p2), %v5721_v35 }
0x1a3a   : > { %4137 = vst [vmem:[#allocation2 + $0x8] sm:$0xff] %v4131_v1  ;;  %5236 = vmatprep.subr.bf16.mxu0 (!%p4816_p2), %v6091_v19  ;;  %5263 = vmatpush3.bf16.msra.mxu1 (!%p4816_p2), %v5730_v15 }
0x1a3b   : > { %5264 = vmatprep.subr.bf16.mxu1 (!%p4816_p2), %v6091_v19 }
0x1a3d   : > { %5237 = vmatpush3.bf16.msra.mxu0 (!%p4816_p2), %v5723_v27 }
0x1a3e   : > { %5238 = vmatprep.subr.bf16.mxu0 (!%p4816_p2), %v6091_v19  ;;  %5265 = vmatpush3.bf16.msra.mxu1 (!%p4816_p2), %v5732_v9 }
0x1a3f   : > { %5266 = vmatprep.subr.bf16.mxu1 (!%p4816_p2), %v6091_v19 }
0x1a42   : > { %5267 = vmatpush3.bf16.msra.mxu1 (!%p4816_p2), %v5734_v4 }
0x1aa4   : > { %v4079_v47 = vpop.xlane.xlu0 %4078 }
0x1aa5   : > { %v4088_v14 = vmul.f32 0.0078125, %v4079_v47 }
0x1aa6   : > { %v4081_v2 = vpop.xlane.xlu1 %4080 }
0x1aa7   : > { %v4094_v60 = vadd.f32 1e-05, %v4088_v14  ;;  %v4089_v7 = vmul.f32 0.0078125, %v4081_v2 }
0x1aa9   : > { %5705 = vrsqrt.f32 %v4094_v60  ;;  %v4095_v62 = vadd.f32 1e-05, %v4089_v7 }
0x1aab   : > { %5707 = vrsqrt.f32 %v4095_v62 }
0x1ab2   : > { %v4083_v10 = vpop.xlane.xlu0 %4082 }
0x1ab3   : > { %v5706_v56 = vpop.eup %5705  ;;  %v4090_v25 = vmul.f32 0.0078125, %v4083_v10 }
0x1ab4   : > { %v4106_v32 = vmul.f32 %v5706_v56, %v4064_v40  ;;  %v4085_v24 = vpop.xlane.xlu1 %4084  ;;  %v5725_v40 = vld [vmem:[#allocation16 + $0x18] sm:$0xff] (!%p4816_p2)  }
0x1ab5   : > { %v5708_v6 = vpop.eup %5707  ;;  %v4096_v18 = vadd.f32 1e-05, %v4090_v25  ;;  %v4091_v43 = vmul.f32 0.0078125, %v4085_v24  ;;  %5239 = vmatpush3.bf16.msra.mxu0 (!%p4816_p2), %v5725_v40 }
0x1ab6   : > { %v4119_v44 = vmul.f32 %v4814_v13, %v4106_v32  ;;  %v4107_v34 = vmul.f32 %v5708_v6, %v4065_v28  ;;  %v5727_v28 = vld [vmem:[#allocation16 + $0x20] sm:$0xff] (!%p4816_p2)   ;;  %5240 = vmatprep.subr.bf16.mxu0 (!%p4816_p2), %v6091_v19 }
0x1ab7   : > { %5709 = vrsqrt.f32 %v4096_v18  ;;  %v4097_v42 = vadd.f32 1e-05, %v4091_v43 }
0x1ab8   : > { %v4132_v31 = vadd.f32 %v4815_v30, %v4119_v44  ;;  %v4120_v36 = vmul.f32 %v4814_v13, %v4107_v34 }
0x1ab9   : > { %5711 = vrsqrt.f32 %v4097_v42  ;;  %5241 = vmatpush3.bf16.msra.mxu0 (!%p4816_p2), %v5727_v28 }
0x1aba   : > { %4138 = vst [vmem:[#allocation2 + $0x10] sm:$0xff] %v4132_v31  ;;  %v7496_v51 = vadd.f32 %v4815_v30, %v4120_v36  ;;  %5242 = vmatprep.subr.bf16.mxu0 (!%p4816_p2), %v6091_v19 }
0x1abc   : > { %4139 = vst [vmem:[#allocation2 + $0x18] sm:$0xff] %v7496_v51 }
0x1abd   : > { %5243 = vmatpush3.bf16.msra.mxu0 (!%p4816_p2), %v5729_v20 }
0x1abe   : > { %5244 = vmatprep.subr.bf16.mxu0 (!%p4816_p2), %v6091_v19 }
0x1ac1   : > { %v5710_v5 = vpop.eup %5709  ;;  %5245 = vmatpush3.bf16.msra.mxu0 (!%p4816_p2), %v5731_v29 }
0x1ac2   : > { %v4108_v21 = vmul.f32 %v5710_v5, %v4066_v22  ;;  %v5733_v22 = vld [vmem:[#allocation16 + $0x38] sm:$0xff] (!%p4816_p2)   ;;  %5246 = vmatprep.subr.bf16.mxu0 (!%p4816_p2), %v6091_v19 }
0x1ac3   : > { %v5712_v49 = vpop.eup %5711 }
0x1ac4   : > { %v4121_v41 = vmul.f32 %v4814_v13, %v4108_v21  ;;  %v4109_v63 = vmul.f32 %v5712_v49, %v4067_v53  ;;  %4145 = sbr.rel (%p4816_p2) target bundleno = 7233 (0x1c41), region = 124  ;;  %v4260_v53 = vpack.c.bf16 (!%p4816_p2), %v7496_v51, %v7496_v51 }
0x1ac5   : > { %5247 = vmatpush3.bf16.msra.mxu0 (!%p4816_p2), %v5733_v22 }
0x1ac6   : > { %v4134_v58 = vadd.f32 %v4815_v30, %v4121_v41  ;;  %v4122_v52 = vmul.f32 %v4814_v13, %v4109_v63  ;;  %5269 = vmatmul.mubr.bf16.vlgmr.msra.gmra.mrb[0].mxu1 (!%p4816_p2), %v4260_v53 }
0x1ac8   : > { %4140 = vst [vmem:[#allocation2 + $0x20] sm:$0xff] %v4134_v58  ;;  %v4135_v16 = vadd.f32 %v4815_v30, %v4122_v52  ;;  %5249 = vmatmul.mubr.bf16.vlgmr.msra.gmra.mrb[0].mxu0 (!%p4816_p2), %v4146_v33 }
0x1aca   : > { %4141 = vst [vmem:[#allocation2 + $0x28] sm:$0xff] %v4135_v16 }
0x1b99   : > { %v4359_v26 = vpop.f32.mrb[0].mxu1 }
0x1b9a   : > { %v4365_v8 = vmul.f32 %v4359_v26, %v4359_v26  ;;  %v5270_v46 = vpop.f32.mrb[1].mxu1 }
0x1b9b   : > { %v4245_v54 = vpop.f32.mrb[0].mxu0  ;;  %v4362_v13 = vpop.f32.mrb[2].mxu1 }
0x1b9c   : > { %v5250_v55 = vpop.f32.mrb[1].mxu0  ;;  %v4251_v61 = vmul.f32 %v4245_v54, %v4245_v54  ;;  %v5271_v57 = vpop.f32.mrb[3].mxu1  ;;  %v4366_v30 = vsel %vm4252_vm2, %v4365_v8, 0.0 }
0x1b9d   : > { %v4248_v11 = vpop.f32.mrb[2].mxu0 }
0x1b9e   : > { %v5251_v50 = vpop.f32.mrb[3].mxu0  ;;  %v4253_v39 = vsel %vm4252_vm2, %v4251_v61, 0.0 }
0x1b9f   : > { %4254 = vadd.xlane.f32.xlu0 %v4253_v39 }
0x1ba3   : > { %4367 = vadd.xlane.f32.xlu0 %v4366_v30 }
0x1c2c   : > { %v4255_v0 = vpop.xlane.xlu0 %4254 }
0x1c2d   : > { %v4256_v3 = vadd.f32 1e-12, %v4255_v0 }
0x1c2f   : > { %5735 = vrsqrt.f32 %v4256_v3 }
0x1c30   : > { %v4368_v45 = vpop.xlane.xlu0 %4367 }
0x1c31   : > { %v4369_v12 = vadd.f32 1e-12, %v4368_v45 }
0x1c33   : > { %5737 = vrsqrt.f32 %v4369_v12 }
0x1c39   : > { %v5736_v1 = vpop.eup %5735 }
0x1c3a   : > { %v4258_v47 = vmul.f32 %v5736_v1, %v4245_v54 }
0x1c3c   : > { %4259 = vst [vmem:[#allocation18] sm:$0x1] %v4258_v47 }
0x1c3d   : > { %v5738_v14 = vpop.eup %5737 }
0x1c3e   : > { %v4371_v2 = vmul.f32 %v5738_v14, %v4359_v26 }
0x1c40   : > { %4372 = vst [vmem:[#allocation18 + $0x1] sm:$0x1] %v4371_v2 }
0x1c41 PF: > { %p5351_p11 = scmp.eq.s32.totalorder %s6332_s2, 1  ;;  %s6093_s24 = smov [#allocation18]  }
0x1c42   : > { %s4382_s11 = sshll.u32 %s6093_s24, 4  ;;  %s4383_s11 = int_to_ptr.vmem [resolvable:$true] %s4382_s11 }
0x1c43   : > { %s5977_s9 = scalar_lea.vmem %s4383_s11, 32  ;;  %p5984_p13 = scmp.lt.s32.totalorder %s4383_s11, %s4383_s11 }
0x1c44   : > { %p5978_p0 = scmp.ne.s32.totalorder %s4383_s11, %s5977_s9  ;;  %p5985_p3 = scmp.lt.s32.totalorder %s5977_s9, %s5977_s9 }
0x1c46   : > { %p5979_p7 = pnand %p5978_p0, %p5351_p11  ;;  %p5986_p5 = por %p5985_p3, %p5984_p13 }
0x1c48   : > { %p5980_p4 = pneg %p5979_p7 }
0x1c4a   : > { %p5987_p10 = pnand %p5986_p5, %p5980_p4 }
0x1c4c   : > { %5990 = shalt.err (!%p5987_p10)
}
0x1c4d   : > { %s7638_s19 = sld [smem:[#allocation41_spill]] }
0x1c53   : > { %s5991_s23 = scalar_lea.hbm %s7638_s19, 32 }
0x1c54   : > { %p5992_p8 = scmp.ne.s32.totalorder %s7638_s19, %s5991_s23  ;;  %p5997_p1 = scmp.lt.u32.totalorder %s5991_s23, %s7638_s19 }
0x1c56   : > { %p5993_p9 = pnand %p5992_p8, %p5351_p11 }
0x1c58   : > { %p5994_p12 = pneg %p5993_p9 }
0x1c5a   : > { %p5999_p6 = pnand %p5997_p1, %p5994_p12 }
0x1c5c   : > { %6002 = shalt.err (!%p5999_p6)
}
0x1c5d   : > { %5319 = dma.vmem_to_hbm [thread:$0]  (%p5351_p11), %s4383_s11, 32, %s7638_s19, [#allocation6]  }
0x1c5e   : > { %6048 = dma.done.wait (%p5351_p11), [#allocation6], 32  }
0x1c5f   : > { %6050 = vsyncadd (%p5351_p11), [#allocation6], 4294967264 }
0x1c60 PF: > { %s40_s26 = sadd.s32 1, %s6073_s26   ;;  %s7639_s16 = sld [smem:[#allocation25_spill]] }
0x1c61   : > { %p37_p2 = scmp.ge.s32.totalorder %s40_s26, 4   ;;  %s7640_s23 = sld [smem:[#allocation28_spill]] }
0x1c62   : > { %s7641_s24 = sld [smem:[#allocation26_spill]]  ;;  %s7642_s25 = sld [smem:[#allocation27_spill]] }
0x1c63   : > { %s7643_s21 = smov %s6057_s22  ;;  %39 = sbr.rel (!%p37_p2) target bundleno = 26 (0x1a), region = 225 }
0x1c66   : > { %s7644_s22 = smov %s7639_s16 }
0x1c6a   :  { %4395 = vsyncpa [#allocation5], 1 }
0x1c6b   :  { %4397 = vsyncpa [#allocation5 + $0x1], 1 }
0x1c6c   :  { %4398 = vsyncpa [#allocation8], 1 }
0x1c6d   :  { %4400 = vsyncpa [#allocation8 + $0x1], 1 }
0x1c6e   :  { %4401 = vsyncpa [#allocation11], 1 }
0x1c6f   :  { %4403 = vsyncpa [#allocation11 + $0x1], 1 }
0x1c70   :  { %4404 = vsyncpa [#allocation14], 1 }
0x1c71   :  { %4406 = vsyncpa [#allocation14 + $0x1], 1 }
0x1c72   :  { %4407 = vsyncpa [#allocation17], 1 }
0x1c73   :  { %4408 = vsyncpa [#allocation6], 1 }
0x1c74   :  { %4410 = vsyncpa [#allocation6 + $0x1], 1 }

</bundles_post_ra>
